<compile_context>
chip_gen: v6e
topology: v6e:2x2x1
jax: 0.10.0
libtpu: 0.0.40
codegen_flags: <defaults>
</compile_context>

<pallas_src>
import functools

import jax
import jax.numpy as jnp
import numpy as np
from jax.experimental import pallas as pl
from jax.experimental.pallas import tpu as pltpu

# ----------------------------- hyper-parameters ------------------------------
INPUT_DIM = 8                       # per-state coordinate dim (rocket state)
L = 7                               # positional-mapping octaves
SCALE = 1.0
PI = 3.1415927410125732             # float32(pi), same constant as the module

OUT_DIM = INPUT_DIM * (2 * L + 1)   # 120 = true PositionalMapping output dim
OUT_PAD = 128                       # lane-dense padded output width

# packed-constant row layout
ROW_FREQ = INPUT_DIM                # 2^i * pi * scale on trig lanes, 0 elsewhere
ROW_PHASE = INPUT_DIM + 1           # pi/2 on cos lanes (cos z == sin(z + pi/2))
ROW_ID = INPUT_DIM + 2              # 1.0 on identity lanes
ROW_POST = INPUT_DIM + 3            # 1/scale on trig lanes (used iff scale != 1)
CONST_ROWS = 16                     # rows 0..INPUT_DIM-1: 0/1 replication matrix

MAX_TILE_M = 2048                   # double-buffered in+out stays well under the
                                    # 16 MiB v5e scoped-VMEM default


def _round_up(n, m):
    return ((n + m - 1) // m) * m


# --------------------------- packed constant buffer --------------------------
def build_consts(d=INPUT_DIM, l=L, scale=SCALE, out_pad=OUT_PAD):
    """One (16, 128) f32 buffer holding everything the kernel needs."""
    consts = np.zeros((CONST_ROWS, out_pad), np.float32)
    for c in range(2 * l + 1):                # chunk order: x, sin f0, cos f0, ...
        for dd in range(d):
            k = c * d + dd
            consts[dd, k] = 1.0               # 0/1 lane-replication matrix
            if c == 0:
                consts[ROW_ID, k] = 1.0       # identity lanes
            else:
                i = (c - 1) // 2
                consts[ROW_FREQ, k] = (2.0 ** i) * PI * scale
                consts[ROW_POST, k] = 1.0 / scale
                if c % 2 == 0:                # even chunks (>0) are cos lanes
                    consts[ROW_PHASE, k] = 0.5 * np.pi
    return jnp.asarray(consts)


# ------------------------------- Pallas kernel -------------------------------
def _posmap_kernel(x_ref, c_ref, o_ref, *, apply_post):
    x = x_ref[...]                                        # (TILE_M, INPUT_DIM)
    rep = c_ref[0:INPUT_DIM, :]                           # (INPUT_DIM, OUT_PAD)
    freq = c_ref[ROW_FREQ:ROW_FREQ + 1, :]                # (1, OUT_PAD)
    phase = c_ref[ROW_PHASE:ROW_PHASE + 1, :]             # (1, OUT_PAD)
    id_m = c_ref[ROW_ID:ROW_ID + 1, :]                    # (1, OUT_PAD)

    # Replicate x into every chunk with one tiny K=8 MXU matmul against a 0/1
    # matrix.  HIGHEST precision -> bit-exact replication on all generations.
    x_rep = jnp.dot(x, rep,
                    precision=jax.lax.Precision.HIGHEST,
                    preferred_element_type=jnp.float32)   # (TILE_M, OUT_PAD)

    # ONE sin over the whole tile: cos lanes get a +pi/2 phase, identity and
    # padded lanes have freq = phase = 0 -> sin(0) = 0.
    trig = jnp.sin(x_rep * freq + phase)
    if apply_post:                                        # trace-time decision
        trig = trig * c_ref[ROW_POST:ROW_POST + 1, :]     # 1/scale on trig lanes

    # identity lanes -> x_rep; trig lanes -> trig; padded lanes -> exactly 0.
    o_ref[...] = trig + id_m * x_rep


# ------------------------------- host wrappers -------------------------------
def positional_mapping_padded(x, consts, scale=SCALE):
    """Returns the lane-dense padded output (..., OUT_PAD); extra lanes are 0."""
    lead = x.shape[:-1]
    d = x.shape[-1]
    assert d == INPUT_DIM, "kernel constants were built for INPUT_DIM"
    x2 = jnp.reshape(x, (-1, d)).astype(jnp.float32)
    n = x2.shape[0]

    # Tile selection (perf review):
    #  * tiny batches -> a single grid step (latency-dominated),
    #  * large batches -> 512..2048-row tiles but >= 2 grid steps so the
    #    "parallel" axis actually shards across both TCs on v7x.
    if n <= 1024:
        tile_m = max(8, _round_up(n, 8))
    else:
        tile_m = min(MAX_TILE_M, _round_up(pl.cdiv(n, 2), 256))
    n_pad = _round_up(n, tile_m)
    if n_pad != n:
        x2 = jnp.pad(x2, ((0, n_pad - n), (0, 0)))

    kernel = functools.partial(_posmap_kernel, apply_post=(scale != 1.0))
    out = pl.pallas_call(
        kernel,
        out_shape=jax.ShapeDtypeStruct((n_pad, OUT_PAD), jnp.float32),
        grid_spec=pltpu.PrefetchScalarGridSpec(
            num_scalar_prefetch=0,
            grid=(n_pad // tile_m,),
            in_specs=[
                pl.BlockSpec((tile_m, INPUT_DIM), lambda i: (i, 0)),
                pl.BlockSpec((CONST_ROWS, OUT_PAD), lambda i: (0, 0)),  # resident
            ],
            out_specs=pl.BlockSpec((tile_m, OUT_PAD), lambda i: (i, 0)),
        ),
        compiler_params=pltpu.CompilerParams(
            dimension_semantics=("parallel",)),
    )(x2, consts)

    return out[:n].reshape(lead + (OUT_PAD,))


def positional_mapping(x, consts, scale=SCALE):
    """Module-faithful output (..., OUT_DIM).  Prefer the padded variant in a
    fused consumer to avoid the extra minor-dim slice pass over HBM."""
    return positional_mapping_padded(x, consts, scale)[..., :OUT_DIM]


# ------------------------------ pure-JAX reference ---------------------------
def positional_mapping_ref(x, l=L, scale=SCALE):
    x = x.astype(jnp.float32) * scale
    if l == 0:
        return x
    h = [x]
    for i in range(l):
        h.append(jnp.sin((2.0 ** i) * PI * x))
        h.append(jnp.cos((2.0 ** i) * PI * x))
    return jnp.concatenate(h, axis=-1) / scale


if __name__ == "__main__":
    key = jax.random.PRNGKey(0)
    consts = build_consts()

    # 1) small batch of rocket states (latency path: single grid step)
    x_small = jax.random.normal(key, (256, INPUT_DIM), jnp.float32)
    out = jax.block_until_ready(positional_mapping(x_small, consts))
    ref = positional_mapping_ref(x_small)
    assert out.shape == (256, OUT_DIM)
    # tolerance covers the cos(z) -> sin(z + pi/2) rewrite at |z| up to ~900 rad
    assert jnp.allclose(out, ref, atol=2e-3, rtol=2e-3)

    # 2) padded-lane output path: extra lanes must be exactly zero
    out_pad = jax.block_until_ready(positional_mapping_padded(x_small, consts))
    assert out_pad.shape == (256, OUT_PAD)
    assert bool(jnp.all(out_pad[:, OUT_DIM:] == 0.0))
    assert jnp.allclose(out_pad[:, :OUT_DIM], ref, atol=2e-3, rtol=2e-3)

    # 3) larger batch (throughput path: big tiles, >=2 grid steps, row padding)
    x_big = jax.random.normal(jax.random.PRNGKey(1), (4136, INPUT_DIM), jnp.float32)
    out_big = jax.block_until_ready(positional_mapping(x_big, consts))
    ref_big = positional_mapping_ref(x_big)
    assert jnp.allclose(out_big, ref_big, atol=2e-3, rtol=2e-3)

    # 4) scale != 1 path (exercises the folded 1/scale post-scale row)
    consts_s = build_consts(scale=0.5)
    out_s = jax.block_until_ready(positional_mapping(x_small, consts_s, scale=0.5))
    ref_s = positional_mapping_ref(x_small, scale=0.5)
    assert jnp.allclose(out_s, ref_s, atol=2e-3, rtol=2e-3)

    print("KERNEL_OK")
</pallas_src>

<mosaic_0001>
module attributes {stable_mosaic.version = 11 : i64} {
  func.func @_posmap_kernel(%arg0: i32, %arg1: memref<256x8xf32, #tpu.memory_space<vmem>>, %arg2: memref<16x128xf32, #tpu.memory_space<vmem>>, %arg3: memref<256x128xf32, #tpu.memory_space<vmem>>) attributes {dimension_semantics = [#tpu.dimension_semantics<parallel>], iteration_bounds = array<i64: 1>, scalar_prefetch = 0 : i64, scratch_operands = 0 : i64, tpu.core_type = #tpu.core_type<tc>, window_params = [{transform_indices = @transform_0, window_bounds = array<i64: 256, 8>}, {pipeline_mode = #tpu.pipeline_mode<synchronous>, transform_indices = @transform_1, window_bounds = array<i64: 16, 128>}, {transform_indices = @transform_2, window_bounds = array<i64: 256, 128>}]} {
    %c0 = arith.constant 0 : index
    %c0_0 = arith.constant 0 : index
    %0 = vector.load %arg1[%c0, %c0_0] : memref<256x8xf32, #tpu.memory_space<vmem>>, vector<256x8xf32>
    %c0_1 = arith.constant 0 : index
    %c0_2 = arith.constant 0 : index
    %1 = vector.load %arg2[%c0_1, %c0_2] : memref<16x128xf32, #tpu.memory_space<vmem>>, vector<8x128xf32>
    %c8 = arith.constant 8 : index
    %c0_3 = arith.constant 0 : index
    %2 = vector.load %arg2[%c8, %c0_3] : memref<16x128xf32, #tpu.memory_space<vmem>>, vector<1x128xf32>
    %c9 = arith.constant 9 : index
    %c0_4 = arith.constant 0 : index
    %3 = vector.load %arg2[%c9, %c0_4] : memref<16x128xf32, #tpu.memory_space<vmem>>, vector<1x128xf32>
    %c10 = arith.constant 10 : index
    %c0_5 = arith.constant 0 : index
    %4 = vector.load %arg2[%c10, %c0_5] : memref<16x128xf32, #tpu.memory_space<vmem>>, vector<1x128xf32>
    %cst = arith.constant dense<0.000000e+00> : vector<256x128xf32>
    %5 = tpu.matmul %0, %1, %cst {dimension_numbers = #tpu.dot_dimension_numbers<[1], [0], [0], [1], [0, 0, 1, 1], [], []>, precision = #tpu.contract_precision<fp32>} : vector<256x8xf32>, vector<8x128xf32>, vector<256x128xf32> -> vector<256x128xf32>
    %6 = vector.broadcast %2 : vector<1x128xf32> to vector<256x128xf32>
    %7 = arith.mulf %5, %6 : vector<256x128xf32>
    %8 = vector.broadcast %3 : vector<1x128xf32> to vector<256x128xf32>
    %9 = arith.addf %7, %8 : vector<256x128xf32>
    %10 = math.sin %9 : vector<256x128xf32>
    %11 = vector.broadcast %4 : vector<1x128xf32> to vector<256x128xf32>
    %12 = arith.mulf %11, %5 : vector<256x128xf32>
    %13 = arith.addf %10, %12 : vector<256x128xf32>
    %c0_6 = arith.constant 0 : index
    %c0_7 = arith.constant 0 : index
    %14 = vector.load %arg3[%c0_6, %c0_7] : memref<256x128xf32, #tpu.memory_space<vmem>>, vector<256x128xf32>
    tpu.vector_store %arg3[%c0_6, %c0_7], %13 {strides = array<i32>} : memref<256x128xf32, #tpu.memory_space<vmem>>, vector<256x128xf32>,
    return
  }
  func.func @transform_0(%arg0: i32) -> (i32, i32) {
    %c0_i32 = arith.constant 0 : i32
    %c0_i32_0 = arith.constant 0 : i32
    return %arg0, %c0_i32 : i32, i32
  }
  func.func @transform_1(%arg0: i32) -> (i32, i32) {
    %c0_i32 = arith.constant 0 : i32
    %c0_i32_0 = arith.constant 0 : i32
    %c0_i32_1 = arith.constant 0 : i32
    return %c0_i32, %c0_i32_0 : i32, i32
  }
  func.func @transform_2(%arg0: i32) -> (i32, i32) {
    %c0_i32 = arith.constant 0 : i32
    %c0_i32_0 = arith.constant 0 : i32
    return %arg0, %c0_i32 : i32, i32
  }
}

</mosaic_0001>

<bundles_post_ra>
// kernel: tpu_custom_call.1
= control target key start
LH: loop header
LB: loop body
LE: loop exit
PB: predicated region body
PF: predicated region fallthrough
CT: control target
= control target key end

     0   :  { %vm48_vm0 = vcmask 64512   ;;  %s10029_s0 = inlined_call_operand.vmem [shape: f32[256,8], index: 0, kind: input, shape index: {}]   ;;  %s10030_s1 = inlined_call_operand.vmem [shape: f32[16,128], index: 1, kind: input, shape index: {}]   ;;  %s10031_s2 = inlined_call_operand.hbm [shape: f32[256,128], index: 2, kind: output, shape index: {}]  }
   0x1   :  { %v44_v0 = vld [vmem:[%s10030_s1] sm:$0xff]  ;;  %v13_v2 = vld [vmem:[%s10029_s0 + $0x8] sm:$0xff]  ;;  %v14_v6 = vld [vmem:[%s10029_s0 + $0x10] sm:$0xff] }
   0x2   :  { %v12_v1 = vld [vmem:[%s10029_s0] sm:$0xff]  ;;  %v6404_v3 = vand.u32 4294901760, %v44_v0  ;;  %v53_v5 = vsel %vm48_vm0, %v13_v2, 0  ;;  %v15_v7 = vld [vmem:[%s10029_s0 + $0x18] sm:$0xff]  ;;  %v56_v11 = vsel %vm48_vm0, %v14_v6, 0  ;;  %v17_v13 = vld [vmem:[%s10029_s0 + $0x28] sm:$0xff] }
   0x3   :  { %v50_v4 = vsel %vm48_vm0, %v12_v1, 0  ;;  %v16_v8 = vld [vmem:[%s10029_s0 + $0x20] sm:$0xff]  ;;  %v6419_v10 = vand.u32 4294901760, %v53_v5  ;;  %v59_v12 = vsel %vm48_vm0, %v15_v7, 0  ;;  %v6428_v15 = vand.u32 4294901760, %v56_v11  ;;  %v18_v18 = vld [vmem:[%s10029_s0 + $0x30] sm:$0xff] }
   0x4   :  { %v6417_v9 = vand.u32 4294901760, %v50_v4  ;;  %5769 = vmatprep.subr.mxu0 %v6404_v3  ;;  %v563_v14 = vsub.f32 %v44_v0, %v6404_v3  ;;  %v6430_v16 = vand.u32 4294901760, %v59_v12  ;;  %v62_v17 = vsel %vm48_vm0, %v16_v8, 0  ;;  %v19_v39 = vld [vmem:[%s10029_s0 + $0x38] sm:$0xff]  ;;  %v20_v44 = vld [vmem:[%s10029_s0 + $0x40] sm:$0xff]  ;;  %v21_v49 = vld [vmem:[%s10029_s0 + $0x48] sm:$0xff] }
   0x5   :  { %5770 = vmatpush3.msra.mxu0 %v6404_v3  ;;  %v6442_v20 = vsub.f32 %v53_v5, %v6419_v10  ;;  %v6444_v21 = vand.u32 4294901760, %v62_v17  ;;  %v65_v22 = vsel %vm48_vm0, %v17_v13, 0  ;;  %v6450_v24 = vsub.f32 %v56_v11, %v6428_v15  ;;  %v22_v50 = vld [vmem:[%s10029_s0 + $0x50] sm:$0xff]  ;;  %v23_v55 = vld [vmem:[%s10029_s0 + $0x58] sm:$0xff] }
   0x6   :  { %v6438_v19 = vsub.f32 %v50_v4, %v6417_v9  ;;  %5821 = vmatprep.mubr.f32.mxu1 %v6417_v9  ;;  %v6447_v23 = vand.u32 4294901760, %v563_v14  ;;  %5869 = vmatprep.subr.mxu0 %v563_v14  ;;  %v6453_v25 = vsub.f32 %v59_v12, %v6430_v16  ;;  %v6455_v26 = vand.u32 4294901760, %v65_v22 }
   0x7   :  { %v10046_v28 = vand.u32 4294901760, %v6442_v20  ;;  %v6460_v29 = vsub.f32 %v62_v17, %v6444_v21  ;;  %v68_v30 = vsel %vm48_vm0, %v18_v18, 0  ;;  %v10045_v32 = vand.u32 4294901760, %v6450_v24 }
   0x8   :  { %v10047_v27 = vand.u32 4294901760, %v6438_v19  ;;  %v565_v31 = vsub.f32 %v563_v14, %v6447_v23  ;;  %v10043_v33 = vand.u32 4294901760, %v6453_v25  ;;  %v6467_v34 = vsub.f32 %v65_v22, %v6455_v26 }
   0x9   :  { %v224_v36 = vsub.f32 %v6442_v20, %v10046_v28  ;;  %v10041_v37 = vand.u32 4294901760, %v6460_v29  ;;  %v6476_v38 = vand.u32 4294901760, %v68_v30  ;;  %v234_v41 = vsub.f32 %v6450_v24, %v10045_v32 }
   0xa   :  { %v214_v35 = vsub.f32 %v6438_v19, %v10047_v27  ;;  %v566_v40 = vand.u32 4294901760, %v565_v31  ;;  %v244_v42 = vsub.f32 %v6453_v25, %v10043_v33  ;;  %v10040_v43 = vand.u32 4294901760, %v6467_v34 }
   0xb   :  { %v225_v46 = vand.u32 4294901760, %v224_v36  ;;  %v254_v47 = vsub.f32 %v6460_v29, %v10041_v37  ;;  %v6495_v48 = vsub.f32 %v68_v30, %v6476_v38  ;;  %v235_v51 = vand.u32 4294901760, %v234_v41 }
   0xc   :  { %v215_v45 = vand.u32 4294901760, %v214_v35  ;;  %5819 = vmatprep.subr.mxu1 %v566_v40  ;;  %v245_v52 = vand.u32 4294901760, %v244_v42  ;;  %v264_v53 = vsub.f32 %v6467_v34, %v10040_v43  ;;  %v71_v54 = vsel %vm48_vm0, %v19_v39, 0 }
   0xd   :  { %7 = vsyncpa [#allocation3], 0  ;;  %5820 = vmatpush3.msra.mxu1 %v566_v40  ;;  %v255_v56 = vand.u32 4294901760, %v254_v47  ;;  %v10038_v57 = vand.u32 4294901760, %v6495_v48  ;;  %v6511_v58 = vand.u32 4294901760, %v71_v54  ;;  %v74_v59 = vsel %vm48_vm0, %v20_v44, 0 }
   0xe   :  { %5771 = vmatprep.mubr.f32.mxu0 %v215_v45  ;;  %v24_v60 = vld [vmem:[%s10029_s0 + $0x60] sm:$0xff]  ;;  %v25_v61 = vld [vmem:[%s10029_s0 + $0x68] sm:$0xff]  ;;  %5822 = vmatmul.mubr.f32.vlgmr.msra.gmra.mxu1 %v6419_v10  ;;  %v265_v62 = vand.u32 4294901760, %v264_v53  ;;  %v6521_v63 = vand.u32 4294901760, %v74_v59  ;;  %v77_v0 = vsel %vm48_vm0, %v21_v49, 0  ;;  %v80_v1 = vsel %vm48_vm0, %v22_v50, 0 }
   0xf   :  { %10095 = vst [vmem:[#allocation5_spill] sm:$0xff] %v6511_v58  ;;  %5772 = vmatmul.mubr.f32.vlgmr.msra.gmra.mxu0 %v225_v46  ;;  %5919 = vmatprep.subr.mxu1 %v6404_v3  ;;  %v274_v2 = vsub.f32 %v6495_v48, %v10038_v57  ;;  %v6530_v4 = vsub.f32 %v71_v54, %v6511_v58  ;;  %v6532_v5 = vand.u32 4294901760, %v77_v0  ;;  %v6534_v6 = vand.u32 4294901760, %v80_v1  ;;  %v26_v13 = vld [vmem:[%s10029_s0 + $0x70] sm:$0xff]  ;;  %v27_v49 = vld [vmem:[%s10029_s0 + $0x78] sm:$0xff] }
  0x10   :  { %10096 = vst [vmem:[#allocation6_spill] sm:$0xff] %v6521_v63  ;;  %5870 = vmatpush3.msra.mxu0 %v563_v14  ;;  %5920 = vmatpush3.msra.mxu1 %v6404_v3  ;;  %v6538_v7 = vsub.f32 %v74_v59, %v6521_v63  ;;  %v83_v8 = vsel %vm48_vm0, %v23_v55, 0  ;;  %v86_v11 = vsel %vm48_vm0, %v24_v60, 0  ;;  %v89_v12 = vsel %vm48_vm0, %v25_v61, 0  ;;  %v29_v59 = vld [vmem:[%s10029_s0 + $0x88] sm:$0xff]  ;;  %v30_v60 = vld [vmem:[%s10029_s0 + $0x90] sm:$0xff] }
  0x11   :  { %10097 = vst [vmem:[#allocation7_spill] sm:$0xff] %v6532_v5  ;;  %10098 = vst [vmem:[#allocation8_spill] sm:$0xff] %v6534_v6  ;;  %5774 = vmatprep.mubr.f32.mxu0 %v235_v51  ;;  %5824 = vmatprep.mubr.f32.mxu1 %v6428_v15  ;;  %v275_v14 = vand.u32 4294901760, %v274_v2  ;;  %v10037_v17 = vand.u32 4294901760, %v6530_v4  ;;  %v6549_v18 = vsub.f32 %v77_v0, %v6532_v5  ;;  %v6557_v31 = vand.u32 4294901760, %v83_v8 }
  0x12   :  { %v6552_v22 = vsub.f32 %v80_v1, %v6534_v6  ;;  %5969 = vmatprep.subr.mxu0 %v6447_v23  ;;  %5825 = vmatmul.mubr.f32.gmra.mxu1 %v6430_v16  ;;  %v10036_v30 = vand.u32 4294901760, %v6538_v7  ;;  %v6559_v35 = vand.u32 4294901760, %v86_v11  ;;  %v6561_v36 = vand.u32 4294901760, %v89_v12 }
  0x13   :  { %5775 = vmatmul.mubr.f32.gmra.mxu0 %v245_v52  ;;  %10099 = vst [vmem:[#allocation9_spill] sm:$0xff] %v6557_v31  ;;  %5827 = vmatprep.mubr.f32.mxu1 %v6444_v21  ;;  %v284_v39 = vsub.f32 %v6530_v4, %v10037_v17  ;;  %v10035_v40 = vand.u32 4294901760, %v6549_v18  ;;  %v92_v42 = vsel %vm48_vm0, %v26_v13, 0  ;;  %v6574_v45 = vsub.f32 %v83_v8, %v6557_v31 }
  0x14   :  { %10100 = vst [vmem:[#allocation10_spill] sm:$0xff] %v6559_v35  ;;  %10101 = vst [vmem:[#allocation11_spill] sm:$0xff] %v6561_v36  ;;  %5777 = vmatprep.mubr.f32.mxu0 %v255_v56  ;;  %v10034_v41 = vand.u32 4294901760, %v6552_v22  ;;  %v294_v44 = vsub.f32 %v6538_v7, %v10036_v30  ;;  %v6577_v46 = vsub.f32 %v86_v11, %v6559_v35  ;;  %6019 = vmatprep.subr.mxu1 %v6404_v3  ;;  %v28_v56 = vld [vmem:[%s10029_s0 + $0x80] sm:$0xff] }
  0x15   :  { %v6580_v47 = vsub.f32 %v89_v12, %v6561_v36  ;;  %v285_v50 = vand.u32 4294901760, %v284_v39  ;;  %v6586_v51 = vand.u32 4294901760, %v92_v42  ;;  %v304_v52 = vsub.f32 %v6549_v18, %v10035_v40  ;;  %v32_v39 = vld [vmem:[%s10029_s0 + $0xa0] sm:$0xff] }
  0x16   :  { %5828 = vmatmul.mubr.f32.gmra.mxu1 %v6455_v26  ;;  %v314_v53 = vsub.f32 %v6552_v22, %v10034_v41  ;;  %v10032_v54 = vand.u32 4294901760, %v6574_v45  ;;  %v10033_v55 = vand.u32 4294901760, %v6577_v46  ;;  %v295_v61 = vand.u32 4294901760, %v294_v44 }
  0x17   :  { %10102 = vst [vmem:[#allocation12_spill] sm:$0xff] %v6586_v51  ;;  %5778 = vmatmul.mubr.f32.gmra.mxu0 %v265_v62  ;;  %5830 = vmatprep.mubr.f32.mxu1 %v6476_v38  ;;  %v6608_v62 = vsub.f32 %v92_v42, %v6586_v51  ;;  %v95_v0 = vsel %vm48_vm0, %v27_v49, 0  ;;  %v10039_v1 = vand.u32 4294901760, %v6580_v47  ;;  %v98_v11 = vsel %vm48_vm0, %v28_v56, 0 }
  0x18   :  { %5780 = vmatprep.mubr.f32.mxu0 %v275_v14  ;;  %v6612_v2 = vand.u32 4294901760, %v95_v0  ;;  %v324_v8 = vsub.f32 %v6574_v45, %v10032_v54  ;;  %v101_v12 = vsel %vm48_vm0, %v29_v59, 0  ;;  %v104_v13 = vsel %vm48_vm0, %v30_v60, 0  ;;  %v31_v14 = vld [vmem:[%s10029_s0 + $0x98] sm:$0xff] }
  0x19   :  { %v305_v42 = vand.u32 4294901760, %v304_v52  ;;  %v315_v44 = vand.u32 4294901760, %v314_v53  ;;  %v334_v49 = vsub.f32 %v6577_v46, %v10033_v55  ;;  %v10042_v59 = vand.u32 4294901760, %v6608_v62  ;;  %v33_v52 = vld [vmem:[%s10029_s0 + $0xa8] sm:$0xff]  ;;  %v34_v55 = vld [vmem:[%s10029_s0 + $0xb0] sm:$0xff] }
  0x1a   :  { %10103 = vst [vmem:[#allocation13_spill] sm:$0xff] %v6612_v2  ;;  %5831 = vmatmul.mubr.f32.gmra.mxu1 %v6511_v58  ;;  %v6631_v56 = vsub.f32 %v95_v0, %v6612_v2  ;;  %v6635_v60 = vand.u32 4294901760, %v98_v11  ;;  %v6637_v54 = vand.u32 4294901760, %v101_v12  ;;  %v107_v0 = vsel %vm48_vm0, %v31_v14, 0 }
  0x1b   :  { %5781 = vmatmul.mubr.f32.gmra.mxu0 %v285_v50  ;;  %5833 = vmatprep.mubr.f32.mxu1 %v6521_v63  ;;  %v6639_v50 = vand.u32 4294901760, %v104_v13  ;;  %v325_v41 = vand.u32 4294901760, %v324_v8  ;;  %v344_v40 = vsub.f32 %v6580_v47, %v10039_v1  ;;  %v113_v8 = vsel %vm48_vm0, %v33_v52, 0 }
  0x1c   :  { %5783 = vmatprep.mubr.f32.mxu0 %v295_v61  ;;  %10104 = vst [vmem:[#allocation14_spill] sm:$0xff] %v6635_v60  ;;  %10105 = vst [vmem:[#allocation15_spill] sm:$0xff] %v6637_v54  ;;  %v10044_v53 = vand.u32 4294901760, %v6631_v56  ;;  %v110_v61 = vsel %vm48_vm0, %v32_v39, 0  ;;  %v6654_v30 = vsub.f32 %v98_v11, %v6635_v60  ;;  %v6657_v17 = vsub.f32 %v101_v12, %v6637_v54 }
  0x1d   :  { %v6661_v14 = vsub.f32 %v104_v13, %v6639_v50  ;;  %v6663_v39 = vand.u32 4294901760, %v107_v0  ;;  %v6665_v57 = vand.u32 4294901760, %v110_v61  ;;  %v335_v11 = vand.u32 4294901760, %v334_v49  ;;  %v35_v13 = vld [vmem:[%s10029_s0 + $0xb8] sm:$0xff] }
  0x1e   :  { %5834 = vmatmul.mubr.f32.gmra.mxu1 %v6532_v5  ;;  %v354_v12 = vsub.f32 %v6608_v62, %v10042_v59  ;;  %v116_v1 = vsel %vm48_vm0, %v34_v55, 0  ;;  %v364_v52 = vsub.f32 %v6631_v56, %v10044_v53  ;;  %v10053_v43 = vand.u32 4294901760, %v6657_v17 }
  0x1f   :  { %5784 = vmatmul.mubr.f32.gmra.mxu0 %v305_v42  ;;  %10106 = vst [vmem:[#allocation16_spill] sm:$0xff] %v6663_v39  ;;  %10107 = vst [vmem:[#allocation17_spill] sm:$0xff] %v6665_v57  ;;  %5836 = vmatprep.mubr.f32.mxu1 %v6534_v6  ;;  %v10048_v42 = vand.u32 4294901760, %v6654_v30  ;;  %v6681_v49 = vand.u32 4294901760, %v113_v8  ;;  %v6683_v37 = vand.u32 4294901760, %v116_v1  ;;  %v10054_v55 = vand.u32 4294901760, %v6661_v14 }
  0x20   :  { %5786 = vmatprep.mubr.f32.mxu0 %v315_v44  ;;  %v345_v44 = vand.u32 4294901760, %v344_v40  ;;  %v6688_v59 = vsub.f32 %v107_v0, %v6663_v39  ;;  %v6691_v33 = vsub.f32 %v110_v61, %v6665_v57  ;;  %v119_v53 = vsel %vm48_vm0, %v35_v13, 0  ;;  %v36_v40 = vld [vmem:[%s10029_s0 + $0xc0] sm:$0xff]  ;;  %v37_v0 = vld [vmem:[%s10029_s0 + $0xc8] sm:$0xff]  ;;  %v38_v61 = vld [vmem:[%s10029_s0 + $0xd0] sm:$0xff] }
  0x21   :  { %10108 = vst [vmem:[#allocation18_spill] sm:$0xff] %v6681_v49  ;;  %v374_v32 = vsub.f32 %v6654_v30, %v10048_v42  ;;  %v365_v28 = vand.u32 4294901760, %v364_v52  ;;  %v6708_v13 = vsub.f32 %v113_v8, %v6681_v49  ;;  %v122_v27 = vsel %vm48_vm0, %v36_v40, 0 }
  0x22   :  { %5837 = vmatmul.mubr.f32.gmra.mxu1 %v6557_v31  ;;  %v384_v52 = vsub.f32 %v6657_v17, %v10053_v43  ;;  %v394_v42 = vsub.f32 %v6661_v14, %v10054_v55  ;;  %v6726_v40 = vand.u32 4294901760, %v122_v27  ;;  %v39_v43 = vld [vmem:[%s10029_s0 + $0xd8] sm:$0xff]  ;;  %v10110_v8 = vand.u32 4294901760, %v6691_v33 }
  0x23   :  { %5787 = vmatmul.mubr.f32.gmra.mxu0 %v325_v41  ;;  %5839 = vmatprep.mubr.f32.mxu1 %v6559_v35  ;;  %v355_v41 = vand.u32 4294901760, %v354_v12  ;;  %v6713_v12 = vand.u32 4294901760, %v119_v53  ;;  %v375_v35 = vand.u32 4294901760, %v374_v32  ;;  %v40_v32 = vld [vmem:[%s10029_s0 + $0xe0] sm:$0xff] }
  0x24   :  { %5789 = vmatprep.mubr.f32.mxu0 %v335_v11  ;;  %v6711_v11 = vsub.f32 %v116_v1, %v6683_v37  ;;  %v414_v31 = vsub.f32 %v6691_v33, %v10110_v8 }
  0x25   :  { %v6736_v1 = vsub.f32 %v119_v53, %v6713_v12  ;;  %v395_v53 = vand.u32 4294901760, %v394_v42 }
  0x26   :  { %5840 = vmatmul.mubr.f32.gmra.mxu1 %v6561_v36  ;;  %v128_v36 = vsel %vm48_vm0, %v38_v61, 0  ;;  %v10112_v42 = vand.u32 4294901760, %v6711_v11 }
  0x27   :  { %5790 = vmatmul.mubr.f32.gmra.mxu0 %v345_v44  ;;  %5842 = vmatprep.mubr.f32.mxu1 %v6586_v51  ;;  %v125_v44 = vsel %vm48_vm0, %v37_v0, 0  ;;  %v10109_v0 = vand.u32 4294901760, %v6688_v59  ;;  %v6747_v55 = vand.u32 4294901760, %v128_v36  ;;  %v10113_v58 = vand.u32 4294901760, %v6736_v1 }
  0x28   :  { %5792 = vmatprep.mubr.f32.mxu0 %v355_v41  ;;  %v385_v41 = vand.u32 4294901760, %v384_v52  ;;  %v6745_v51 = vand.u32 4294901760, %v125_v44  ;;  %v131_v52 = vsel %vm48_vm0, %v39_v43, 0  ;;  %v434_v6 = vsub.f32 %v6711_v11, %v10112_v42 }
  0x29   :  { %v404_v61 = vsub.f32 %v6688_v59, %v10109_v0  ;;  %v41_v0 = vld [vmem:[%s10029_s0 + $0xe8] sm:$0xff]  ;;  %v6776_v5 = vsub.f32 %v128_v36, %v6747_v55  ;;  %v415_v42 = vand.u32 4294901760, %v414_v31 }
  0x2a   :  { %5843 = vmatmul.mubr.f32.gmra.mxu1 %v6612_v2  ;;  %v134_v2 = vsel %vm48_vm0, %v40_v32, 0  ;;  %v6773_v32 = vsub.f32 %v125_v44, %v6745_v51  ;;  %v43_v44 = vld [vmem:[%s10029_s0 + $0xf8] sm:$0xff] }
  0x2b   :  { %5793 = vmatmul.mubr.f32.gmra.mxu0 %v365_v28  ;;  %5845 = vmatprep.mubr.f32.mxu1 %v6635_v60  ;;  %v6754_v28 = vsub.f32 %v122_v27, %v6726_v40  ;;  %v42_v27 = vld [vmem:[%s10029_s0 + $0xf0] sm:$0xff]  ;;  %v405_v43 = vand.u32 4294901760, %v404_v61  ;;  %v6782_v63 = vand.u32 4294901760, %v134_v2  ;;  %v143_v31 = vsel %vm48_vm0, %v43_v44, 0 }
  0x2c   :  { %5795 = vmatprep.mubr.f32.mxu0 %v375_v35  ;;  %v10111_v35 = vand.u32 4294901760, %v6708_v13  ;;  %v140_v61 = vsel %vm48_vm0, %v42_v27, 0  ;;  %v10116_v44 = vand.u32 4294901760, %v6776_v5 }
  0x2e   :  { %v424_v60 = vsub.f32 %v6708_v13, %v10111_v35  ;;  %5846 = vmatmul.mubr.f32.gmra.mxu1 %v6637_v54  ;;  %v6778_v35 = vand.u32 4294901760, %v131_v52  ;;  %v435_v54 = vand.u32 4294901760, %v434_v6  ;;  %v10114_v6 = vand.u32 4294901760, %v6754_v28 }
  0x2f   :  { %5796 = vmatmul.mubr.f32.gmra.mxu0 %v385_v41  ;;  %5848 = vmatprep.mubr.f32.mxu1 %v6639_v50  ;;  %v137_v41 = vsel %vm48_vm0, %v41_v0, 0 }
  0x30   :  { %5798 = vmatprep.mubr.f32.mxu0 %v395_v53  ;;  %v425_v36 = vand.u32 4294901760, %v424_v60  ;;  %v444_v53 = vsub.f32 %v6736_v1, %v10113_v58  ;;  %v6796_v0 = vsub.f32 %v131_v52, %v6778_v35  ;;  %v6798_v27 = vand.u32 4294901760, %v137_v41 }
  0x31   :  { %v454_v60 = vsub.f32 %v6754_v28, %v10114_v6  ;;  %v6805_v58 = vsub.f32 %v134_v2, %v6782_v63  ;;  %v10115_v52 = vand.u32 4294901760, %v6773_v32  ;;  %v6818_v6 = vand.u32 4294901760, %v143_v31 }
  0x32   :  { %5849 = vmatmul.mubr.f32.gmra.mxu1 %v6663_v39  ;;  %v445_v8 = vand.u32 4294901760, %v444_v53  ;;  %v6816_v39 = vsub.f32 %v137_v41, %v6798_v27 }
  0x33   :  { %5799 = vmatmul.mubr.f32.gmra.mxu0 %v405_v43  ;;  %5851 = vmatprep.mubr.f32.mxu1 %v6665_v57  ;;  %v6807_v43 = vand.u32 4294901760, %v140_v61  ;;  %v10079_v57 = vand.u32 4294901760, %v6796_v0  ;;  %v455_v2 = vand.u32 4294901760, %v454_v60  ;;  %v493_v53 = vand.u32 4294901760, %v6805_v58 }
  0x34   :  { %5801 = vmatprep.mubr.f32.mxu0 %v415_v42  ;;  %v464_v42 = vsub.f32 %v6773_v32, %v10115_v52  ;;  %v10080_v52 = vand.u32 4294901760, %v6816_v39  ;;  %v6834_v60 = vsub.f32 %v143_v31, %v6818_v6 }
  0x36   :  { %5852 = vmatmul.mubr.f32.gmra.mxu1 %v6681_v49  ;;  %v6826_v49 = vsub.f32 %v140_v61, %v6807_v43  ;;  %v465_v41 = vand.u32 4294901760, %v464_v42  ;;  %v523_v31 = vand.u32 4294901760, %v6834_v60 }
  0x37   :  { %5802 = vmatmul.mubr.f32.gmra.mxu0 %v425_v36  ;;  %5854 = vmatprep.mubr.f32.mxu1 %v6683_v37  ;;  %v474_v36 = vsub.f32 %v6776_v5, %v10116_v44 }
  0x38   :  { %5804 = vmatprep.mubr.f32.mxu0 %v435_v54  ;;  %v484_v54 = vsub.f32 %v6796_v0, %v10079_v57  ;;  %v513_v61 = vand.u32 4294901760, %v6826_v49  ;;  %v504_v57 = vsub.f32 %v6816_v39, %v10080_v52 }
  0x39   :  { %v475_v44 = vand.u32 4294901760, %v474_v36 }
  0x3a   :  { %5855 = vmatmul.mubr.f32.gmra.mxu1 %v6713_v12  ;;  %v485_v42 = vand.u32 4294901760, %v484_v54  ;;  %v514_v36 = vsub.f32 %v6826_v49, %v513_v61  ;;  %v524_v54 = vsub.f32 %v6834_v60, %v523_v31 }
  0x3b   :  { %5805 = vmatmul.mubr.f32.gmra.mxu0 %v445_v8  ;;  %5857 = vmatprep.mubr.f32.mxu1 %v6726_v40  ;;  %v494_v8 = vsub.f32 %v6805_v58, %v493_v53 }
  0x3c   :  { %5807 = vmatprep.mubr.f32.mxu0 %v455_v2  ;;  %v515_v52 = vand.u32 4294901760, %v514_v36 }
  0x3d   :  { %v495_v2 = vand.u32 4294901760, %v494_v8  ;;  %v10118_v8 = vand.u32 4294901760, %v6442_v20 }
  0x3e   :  { %5858 = vmatmul.mubr.f32.gmra.mxu1 %v6745_v51 }
  0x3f   :  { %5808 = vmatmul.mubr.f32.gmra.mxu0 %v465_v41  ;;  %5860 = vmatprep.mubr.f32.mxu1 %v6747_v55  ;;  %v505_v41 = vand.u32 4294901760, %v504_v57  ;;  %v10117_v57 = vand.u32 4294901760, %v6438_v19 }
  0x40   :  { %5810 = vmatprep.mubr.f32.mxu0 %v475_v44  ;;  %v525_v44 = vand.u32 4294901760, %v524_v54 }
  0x42   :  { %5861 = vmatmul.mubr.f32.gmra.mxu1 %v6778_v35 }
  0x43   :  { %5811 = vmatmul.mubr.f32.gmra.mxu0 %v485_v42  ;;  %5863 = vmatprep.mubr.f32.mxu1 %v6782_v63  ;;  %v10120_v42 = vand.u32 4294901760, %v6453_v25 }
  0x44   :  { %5813 = vmatprep.mubr.f32.mxu0 %v495_v2 }
  0x46   :  { %5864 = vmatmul.mubr.f32.gmra.mxu1 %v6798_v27 }
  0x47   :  { %5814 = vmatmul.mubr.f32.gmra.mxu0 %v505_v41  ;;  %5866 = vmatprep.mubr.f32.mxu1 %v6807_v43 }
  0x48   :  { %5816 = vmatprep.mubr.f32.mxu0 %v515_v52  ;;  %v10119_v52 = vand.u32 4294901760, %v6450_v24 }
  0x4a   :  { %5867 = vmatmul.mubr.f32.gmra.mxu1 %v6818_v6 }
  0x4b   :  { %5817 = vmatmul.mubr.f32.gmra.mxu0 %v525_v44  ;;  %5921 = vmatprep.mubr.f32.mxu1 %v10117_v57 }
  0x4c   :  { %5871 = vmatprep.mubr.f32.mxu0 %v6438_v19  ;;  %v10121_v19 = vand.u32 4294901760, %v6460_v29 }
  0x4e   :  { %5922 = vmatmul.mubr.f32.vlgmr.msra.gmra.mxu1 %v10118_v8 }
  0x4f   :  { %5872 = vmatmul.mubr.f32.vlgmr.msra.gmra.mxu0 %v6442_v20  ;;  %6020 = vmatpush3.msra.mxu1 %v6404_v3  ;;  %v10122_v20 = vand.u32 4294901760, %v6467_v34  ;;  %v10123_v3 = vand.u32 4294901760, %v6495_v48 }
  0x50   :  { %5970 = vmatpush3.msra.mxu0 %v6447_v23  ;;  %5874 = vmatprep.mubr.f32.mxu0 %v6450_v24  ;;  %v10124_v23 = vand.u32 4294901760, %v6530_v4  ;;  %v10125_v24 = vand.u32 4294901760, %v6538_v7 }
  0x51   :  { %5924 = vmatprep.mubr.f32.mxu1 %v10119_v52 }
  0x52   :  { %5925 = vmatmul.mubr.f32.gmra.mxu1 %v10120_v42 }
  0x53   :  { %5875 = vmatmul.mubr.f32.gmra.mxu0 %v6453_v25  ;;  %5927 = vmatprep.mubr.f32.mxu1 %v10121_v19  ;;  %v10126_v25 = vand.u32 4294901760, %v6549_v18 }
  0x54   :  { %5877 = vmatprep.mubr.f32.mxu0 %v6460_v29  ;;  %v10127_v29 = vand.u32 4294901760, %v6552_v22 }
  0x56   :  { %5928 = vmatmul.mubr.f32.gmra.mxu1 %v10122_v20 }
  0x57   :  { %5878 = vmatmul.mubr.f32.gmra.mxu0 %v6467_v34  ;;  %5930 = vmatprep.mubr.f32.mxu1 %v10123_v3  ;;  %v10128_v34 = vand.u32 4294901760, %v6574_v45 }
  0x58   :  { %5880 = vmatprep.mubr.f32.mxu0 %v6495_v48  ;;  %v10129_v48 = vand.u32 4294901760, %v6577_v46 }
  0x5a   :  { %5931 = vmatmul.mubr.f32.gmra.mxu1 %v10124_v23 }
  0x5b   :  { %5881 = vmatmul.mubr.f32.gmra.mxu0 %v6530_v4  ;;  %5933 = vmatprep.mubr.f32.mxu1 %v10125_v24  ;;  %v10130_v4 = vand.u32 4294901760, %v6580_v47 }
  0x5c   :  { %5883 = vmatprep.mubr.f32.mxu0 %v6538_v7  ;;  %v10131_v7 = vand.u32 4294901760, %v6608_v62 }
  0x5e   :  { %5934 = vmatmul.mubr.f32.gmra.mxu1 %v10126_v25 }
  0x5f   :  { %5884 = vmatmul.mubr.f32.gmra.mxu0 %v6549_v18  ;;  %5936 = vmatprep.mubr.f32.mxu1 %v10127_v29  ;;  %v10132_v18 = vand.u32 4294901760, %v6631_v56 }
  0x60   :  { %5886 = vmatprep.mubr.f32.mxu0 %v6552_v22  ;;  %v10133_v22 = vand.u32 4294901760, %v6654_v30 }
  0x62   :  { %5937 = vmatmul.mubr.f32.gmra.mxu1 %v10128_v34 }
  0x63   :  { %5887 = vmatmul.mubr.f32.gmra.mxu0 %v6574_v45  ;;  %5939 = vmatprep.mubr.f32.mxu1 %v10129_v48  ;;  %v10134_v45 = vand.u32 4294901760, %v6657_v17 }
  0x64   :  { %5889 = vmatprep.mubr.f32.mxu0 %v6577_v46  ;;  %v10135_v46 = vand.u32 4294901760, %v6661_v14 }
  0x66   :  { %5940 = vmatmul.mubr.f32.gmra.mxu1 %v10130_v4 }
  0x67   :  { %5890 = vmatmul.mubr.f32.gmra.mxu0 %v6580_v47  ;;  %5942 = vmatprep.mubr.f32.mxu1 %v10131_v7  ;;  %v10136_v47 = vand.u32 4294901760, %v6688_v59 }
  0x68   :  { %5892 = vmatprep.mubr.f32.mxu0 %v6608_v62  ;;  %v10139_v62 = vand.u32 4294901760, %v6711_v11 }
  0x6a   :  { %5943 = vmatmul.mubr.f32.gmra.mxu1 %v10132_v18 }
  0x6b   :  { %5893 = vmatmul.mubr.f32.gmra.mxu0 %v6631_v56  ;;  %5945 = vmatprep.mubr.f32.mxu1 %v10133_v22  ;;  %v10140_v56 = vand.u32 4294901760, %v6736_v1 }
  0x6c   :  { %5895 = vmatprep.mubr.f32.mxu0 %v6654_v30  ;;  %v10137_v30 = vand.u32 4294901760, %v6691_v33 }
  0x6e   :  { %5946 = vmatmul.mubr.f32.gmra.mxu1 %v10134_v45 }
  0x6f   :  { %5896 = vmatmul.mubr.f32.gmra.mxu0 %v6657_v17  ;;  %5948 = vmatprep.mubr.f32.mxu1 %v10135_v46  ;;  %v10138_v17 = vand.u32 4294901760, %v6708_v13 }
  0x70   :  { %5898 = vmatprep.mubr.f32.mxu0 %v6661_v14  ;;  %v10143_v14 = vand.u32 4294901760, %v6776_v5 }
  0x72   :  { %5949 = vmatmul.mubr.f32.gmra.mxu1 %v10136_v47 }
  0x73   :  { %5899 = vmatmul.mubr.f32.gmra.mxu0 %v6688_v59  ;;  %5951 = vmatprep.mubr.f32.mxu1 %v10137_v30  ;;  %v10142_v59 = vand.u32 4294901760, %v6773_v32 }
  0x74   :  { %5901 = vmatprep.mubr.f32.mxu0 %v6691_v33  ;;  %v10141_v33 = vand.u32 4294901760, %v6754_v28 }
  0x76   :  { %5952 = vmatmul.mubr.f32.gmra.mxu1 %v10138_v17 }
  0x77   :  { %5902 = vmatmul.mubr.f32.gmra.mxu0 %v6708_v13  ;;  %5954 = vmatprep.mubr.f32.mxu1 %v10139_v62  ;;  %v10144_v13 = vand.u32 4294901760, %v6796_v0 }
  0x78   :  { %5904 = vmatprep.mubr.f32.mxu0 %v6711_v11  ;;  %v10145_v11 = vand.u32 4294901760, %v6816_v39 }
  0x7a   :  { %5955 = vmatmul.mubr.f32.gmra.mxu1 %v10140_v56 }
  0x7b   :  { %5905 = vmatmul.mubr.f32.gmra.mxu0 %v6736_v1  ;;  %5957 = vmatprep.mubr.f32.mxu1 %v10141_v33  ;;  %v10156_v1 = vld [vmem:[#allocation15_spill] sm:$0xff] }
  0x7c   :  { %5907 = vmatprep.mubr.f32.mxu0 %v6754_v28  ;;  %v10157_v28 = vld [vmem:[#allocation16_spill] sm:$0xff] }
  0x7e   :  { %5958 = vmatmul.mubr.f32.gmra.mxu1 %v10142_v59 }
  0x7f   :  { %5908 = vmatmul.mubr.f32.gmra.mxu0 %v6773_v32  ;;  %5960 = vmatprep.mubr.f32.mxu1 %v10143_v14  ;;  %v10158_v32 = vld [vmem:[#allocation17_spill] sm:$0xff] }
  0x80   :  { %5910 = vmatprep.mubr.f32.mxu0 %v6776_v5  ;;  %v10153_v5 = vld [vmem:[#allocation12_spill] sm:$0xff] }
  0x82   :  { %5961 = vmatmul.mubr.f32.gmra.mxu1 %v10144_v13 }
  0x83   :  { %5911 = vmatmul.mubr.f32.gmra.mxu0 %v6796_v0  ;;  %5963 = vmatprep.mubr.f32.mxu1 %v493_v53  ;;  %v10159_v0 = vld [vmem:[#allocation18_spill] sm:$0xff] }
  0x84   :  { %5913 = vmatprep.mubr.f32.mxu0 %v6805_v58 }
  0x86   :  { %5964 = vmatmul.mubr.f32.gmra.mxu1 %v10145_v11 }
  0x87   :  { %5914 = vmatmul.mubr.f32.gmra.mxu0 %v6816_v39  ;;  %5966 = vmatprep.mubr.f32.mxu1 %v513_v61  ;;  %v10154_v39 = vld [vmem:[#allocation13_spill] sm:$0xff] }
  0x88   :  { %5916 = vmatprep.mubr.f32.mxu0 %v6826_v49  ;;  %v10155_v49 = vld [vmem:[#allocation14_spill] sm:$0xff] }
  0x8a   :  { %5967 = vmatmul.mubr.f32.gmra.mxu1 %v523_v31 }
  0x8b   :  { %5917 = vmatmul.mubr.f32.gmra.mxu0 %v6834_v60  ;;  %6021 = vmatprep.mubr.f32.mxu1 %v6417_v9 }
  0x8c   :  { %5971 = vmatprep.mubr.f32.mxu0 %v6417_v9  ;;  %v10146_v9 = vld [vmem:[#allocation5_spill] sm:$0xff] }
  0x8e   :  { %6022 = vmatmul.mubr.f32.vlgmr.msra.gmra.mxu1 %v6419_v10 }
  0x8f   :  { %5972 = vmatmul.mubr.f32.vlgmr.msra.gmra.mxu0 %v6419_v10  ;;  %6024 = vmatprep.mubr.f32.mxu1 %v6428_v15  ;;  %v10147_v10 = vld [vmem:[#allocation6_spill] sm:$0xff] }
  0x90   :  { %5974 = vmatprep.mubr.f32.mxu0 %v6428_v15  ;;  %v10148_v15 = vld [vmem:[#allocation7_spill] sm:$0xff] }
  0x92   :  { %6025 = vmatmul.mubr.f32.gmra.mxu1 %v6430_v16 }
  0x93   :  { %5975 = vmatmul.mubr.f32.gmra.mxu0 %v6430_v16  ;;  %6027 = vmatprep.mubr.f32.mxu1 %v6444_v21  ;;  %v10149_v16 = vld [vmem:[#allocation8_spill] sm:$0xff] }
  0x94   :  { %5977 = vmatprep.mubr.f32.mxu0 %v6444_v21  ;;  %v10150_v21 = vld [vmem:[#allocation9_spill] sm:$0xff] }
  0x96   :  { %6028 = vmatmul.mubr.f32.gmra.mxu1 %v6455_v26 }
  0x97   :  { %5978 = vmatmul.mubr.f32.gmra.mxu0 %v6455_v26  ;;  %6030 = vmatprep.mubr.f32.mxu1 %v6476_v38  ;;  %v10151_v26 = vld [vmem:[#allocation10_spill] sm:$0xff] }
  0x98   :  { %5980 = vmatprep.mubr.f32.mxu0 %v6476_v38  ;;  %v10152_v38 = vld [vmem:[#allocation11_spill] sm:$0xff] }
  0x9a   :  { %6031 = vmatmul.mubr.f32.gmra.mxu1 %v10146_v9 }
  0x9b   :  { %5981 = vmatmul.mubr.f32.gmra.mxu0 %v10146_v9  ;;  %6033 = vmatprep.mubr.f32.mxu1 %v10147_v10 }
  0x9c   :  { %5983 = vmatprep.mubr.f32.mxu0 %v10147_v10 }
  0x9e   :  { %6034 = vmatmul.mubr.f32.gmra.mxu1 %v10148_v15 }
  0x9f   :  { %5984 = vmatmul.mubr.f32.gmra.mxu0 %v10148_v15  ;;  %6036 = vmatprep.mubr.f32.mxu1 %v10149_v16 }
  0xa0   :  { %5986 = vmatprep.mubr.f32.mxu0 %v10149_v16 }
  0xa2   :  { %6037 = vmatmul.mubr.f32.gmra.mxu1 %v10150_v21 }
  0xa3   :  { %5987 = vmatmul.mubr.f32.gmra.mxu0 %v10150_v21  ;;  %6039 = vmatprep.mubr.f32.mxu1 %v10151_v26 }
  0xa4   :  { %5989 = vmatprep.mubr.f32.mxu0 %v10151_v26 }
  0xa6   :  { %6040 = vmatmul.mubr.f32.gmra.mxu1 %v10152_v38 }
  0xa7   :  { %5990 = vmatmul.mubr.f32.gmra.mxu0 %v10152_v38  ;;  %6042 = vmatprep.mubr.f32.mxu1 %v10153_v5 }
  0xa8   :  { %5992 = vmatprep.mubr.f32.mxu0 %v10153_v5 }
  0xaa   :  { %6043 = vmatmul.mubr.f32.gmra.mxu1 %v10154_v39 }
  0xab   :  { %5993 = vmatmul.mubr.f32.gmra.mxu0 %v10154_v39  ;;  %6045 = vmatprep.mubr.f32.mxu1 %v10155_v49 }
  0xac   :  { %5995 = vmatprep.mubr.f32.mxu0 %v10155_v49 }
  0xae   :  { %6046 = vmatmul.mubr.f32.gmra.mxu1 %v10156_v1 }
  0xaf   :  { %5996 = vmatmul.mubr.f32.gmra.mxu0 %v10156_v1  ;;  %6048 = vmatprep.mubr.f32.mxu1 %v6639_v50 }
  0xb0   :  { %5998 = vmatprep.mubr.f32.mxu0 %v6639_v50 }
  0xb2   :  { %6049 = vmatmul.mubr.f32.gmra.mxu1 %v10157_v28 }
  0xb3   :  { %5999 = vmatmul.mubr.f32.gmra.mxu0 %v10157_v28  ;;  %6051 = vmatprep.mubr.f32.mxu1 %v10158_v32 }
  0xb4   :  { %6001 = vmatprep.mubr.f32.mxu0 %v10158_v32 }
  0xb6   :  { %6052 = vmatmul.mubr.f32.gmra.mxu1 %v10159_v0 }
  0xb7   :  { %6002 = vmatmul.mubr.f32.gmra.mxu0 %v10159_v0  ;;  %6054 = vmatprep.mubr.f32.mxu1 %v6683_v37 }
  0xb8   :  { %6004 = vmatprep.mubr.f32.mxu0 %v6683_v37 }
  0xba   :  { %6055 = vmatmul.mubr.f32.gmra.mxu1 %v6713_v12 }
  0xbb   :  { %6005 = vmatmul.mubr.f32.gmra.mxu0 %v6713_v12  ;;  %6057 = vmatprep.mubr.f32.mxu1 %v6726_v40 }
  0xbc   :  { %6007 = vmatprep.mubr.f32.mxu0 %v6726_v40 }
  0xbe   :  { %6058 = vmatmul.mubr.f32.gmra.mxu1 %v6745_v51 }
  0xbf   :  { %6008 = vmatmul.mubr.f32.gmra.mxu0 %v6745_v51  ;;  %6060 = vmatprep.mubr.f32.mxu1 %v6747_v55 }
  0xc0   :  { %6010 = vmatprep.mubr.f32.mxu0 %v6747_v55 }
  0xc2   :  { %6061 = vmatmul.mubr.f32.gmra.mxu1 %v6778_v35 }
  0xc3   :  { %6011 = vmatmul.mubr.f32.gmra.mxu0 %v6778_v35  ;;  %6063 = vmatprep.mubr.f32.mxu1 %v6782_v63 }
  0xc4   :  { %6013 = vmatprep.mubr.f32.mxu0 %v6782_v63 }
  0xc6   :  { %6064 = vmatmul.mubr.f32.gmra.mxu1 %v6798_v27 }
  0xc7   :  { %6014 = vmatmul.mubr.f32.gmra.mxu0 %v6798_v27  ;;  %6066 = vmatprep.mubr.f32.mxu1 %v6807_v43 }
  0xc8   :  { %6016 = vmatprep.mubr.f32.mxu0 %v6807_v43 }
  0xca   :  { %6067 = vmatmul.mubr.f32.gmra.mxu1 %v6818_v6 }
  0xcb   :  { %6017 = vmatmul.mubr.f32.gmra.mxu0 %v6818_v6 }
  0xce   :  { %v5823_v51 = vpop.f32.mrf.mxu1 }
  0xcf   :  { %v5773_v37 = vpop.f32.mrf.mxu0 }
  0xd0   :  { %v7020_v50 = vadd.f32 %v5823_v51, %v5773_v37  ;;  %v603_v12 = vpop.f32.mrf.mxu1 }
  0xd1   :  { %v217_v55 = vpop.f32.mrf.mxu0 }
  0xd2   :  { %v7022_v40 = vadd.f32 %v603_v12, %v217_v55  ;;  %v5826_v35 = vpop.f32.mrf.mxu1 }
  0xd3   :  { %v5776_v63 = vpop.f32.mrf.mxu0 }
  0xd4   :  { %v7024_v58 = vadd.f32 %v5826_v35, %v5776_v63  ;;  %v615_v53 = vpop.f32.mrf.mxu1 }
  0xd5   :  { %v237_v27 = vpop.f32.mrf.mxu0 }
  0xd6   :  { %v7026_v60 = vadd.f32 %v615_v53, %v237_v27  ;;  %v5829_v61 = vpop.f32.mrf.mxu1 }
  0xd7   :  { %v5779_v43 = vpop.f32.mrf.mxu0 }
  0xd8   :  { %v7028_v31 = vadd.f32 %v5829_v61, %v5779_v43  ;;  %v627_v2 = vpop.f32.mrf.mxu1 }
  0xd9   :  { %v257_v6 = vpop.f32.mrf.mxu0 }
  0xda   :  { %v7030_v36 = vadd.f32 %v627_v2, %v257_v6  ;;  %v5832_v54 = vpop.f32.mrf.mxu1 }
  0xdb   :  { %v5782_v41 = vpop.f32.mrf.mxu0 }
  0xdc   :  { %v7032_v44 = vadd.f32 %v5832_v54, %v5782_v41  ;;  %v639_v8 = vpop.f32.mrf.mxu1 }
  0xdd   :  { %v277_v57 = vpop.f32.mrf.mxu0 }
  0xde   :  { %v7034_v52 = vadd.f32 %v639_v8, %v277_v57  ;;  %v5835_v19 = vpop.f32.mrf.mxu1 }
  0xdf   :  { %v5785_v42 = vpop.f32.mrf.mxu0 }
  0xe0   :  { %v7036_v20 = vadd.f32 %v5835_v19, %v5785_v42  ;;  %v651_v23 = vpop.f32.mrf.mxu1 }
  0xe1   :  { %v297_v3 = vpop.f32.mrf.mxu0 }
  0xe2   :  { %v7038_v24 = vadd.f32 %v651_v23, %v297_v3  ;;  %v5838_v29 = vpop.f32.mrf.mxu1 }
  0xe3   :  { %v5788_v25 = vpop.f32.mrf.mxu0 }
  0xe4   :  { %v7040_v34 = vadd.f32 %v5838_v29, %v5788_v25  ;;  %v663_v4 = vpop.f32.mrf.mxu1 }
  0xe5   :  { %v317_v48 = vpop.f32.mrf.mxu0 }
  0xe6   :  { %v7042_v7 = vadd.f32 %v663_v4, %v317_v48  ;;  %v5841_v22 = vpop.f32.mrf.mxu1 }
  0xe7   :  { %v5791_v18 = vpop.f32.mrf.mxu0 }
  0xe8   :  { %v7044_v45 = vadd.f32 %v5841_v22, %v5791_v18  ;;  %v675_v47 = vpop.f32.mrf.mxu1 }
  0xe9   :  { %v337_v46 = vpop.f32.mrf.mxu0 }
  0xea   :  { %v7046_v30 = vadd.f32 %v675_v47, %v337_v46  ;;  %v5844_v62 = vpop.f32.mrf.mxu1 }
  0xeb   :  { %v5794_v17 = vpop.f32.mrf.mxu0 }
  0xec   :  { %v7048_v56 = vadd.f32 %v5844_v62, %v5794_v17  ;;  %v687_v59 = vpop.f32.mrf.mxu1 }
  0xed   :  { %v357_v33 = vpop.f32.mrf.mxu0 }
  0xee   :  { %v7050_v14 = vadd.f32 %v687_v59, %v357_v33  ;;  %v5847_v11 = vpop.f32.mrf.mxu1 }
  0xef   :  { %v5797_v13 = vpop.f32.mrf.mxu0 }
  0xf0   :  { %v7052_v9 = vadd.f32 %v5847_v11, %v5797_v13  ;;  %v699_v15 = vpop.f32.mrf.mxu1 }
  0xf1   :  { %v377_v10 = vpop.f32.mrf.mxu0 }
  0xf2   :  { %v7054_v16 = vadd.f32 %v699_v15, %v377_v10  ;;  %v5850_v26 = vpop.f32.mrf.mxu1 }
  0xf3   :  { %v5800_v21 = vpop.f32.mrf.mxu0 }
  0xf4   :  { %v7056_v38 = vadd.f32 %v5850_v26, %v5800_v21  ;;  %v711_v39 = vpop.f32.mrf.mxu1 }
  0xf5   :  { %v397_v5 = vpop.f32.mrf.mxu0 }
  0xf6   :  { %v7058_v49 = vadd.f32 %v711_v39, %v397_v5  ;;  %v5853_v28 = vpop.f32.mrf.mxu1 }
  0xf7   :  { %v5803_v1 = vpop.f32.mrf.mxu0 }
  0xf8   :  { %v7060_v32 = vadd.f32 %v5853_v28, %v5803_v1  ;;  %v723_v37 = vpop.f32.mrf.mxu1 }
  0xf9   :  { %v417_v0 = vpop.f32.mrf.mxu0 }
  0xfa   :  { %v7062_v51 = vadd.f32 %v723_v37, %v417_v0  ;;  %v5856_v12 = vpop.f32.mrf.mxu1 }
  0xfb   :  { %v5806_v55 = vpop.f32.mrf.mxu0 }
  0xfc   :  { %v7064_v63 = vadd.f32 %v5856_v12, %v5806_v55  ;;  %v735_v27 = vpop.f32.mrf.mxu1 }
  0xfd   :  { %v437_v35 = vpop.f32.mrf.mxu0 }
  0xfe   :  { %v7066_v53 = vadd.f32 %v735_v27, %v437_v35  ;;  %v5859_v61 = vpop.f32.mrf.mxu1 }
  0xff   :  { %v5809_v43 = vpop.f32.mrf.mxu0 }
 0x100   :  { %v7068_v6 = vadd.f32 %v5859_v61, %v5809_v43  ;;  %v747_v41 = vpop.f32.mrf.mxu1 }
 0x101   :  { %v457_v2 = vpop.f32.mrf.mxu0 }
 0x102   :  { %v7070_v54 = vadd.f32 %v747_v41, %v457_v2  ;;  %v5862_v8 = vpop.f32.mrf.mxu1 }
 0x103   :  { %v5812_v57 = vpop.f32.mrf.mxu0 }
 0x104   :  { %v7072_v42 = vadd.f32 %v5862_v8, %v5812_v57  ;;  %v759_v3 = vpop.f32.mrf.mxu1 }
 0x105   :  { %v477_v19 = vpop.f32.mrf.mxu0 }
 0x106   :  { %v7074_v23 = vadd.f32 %v759_v3, %v477_v19  ;;  %v5865_v29 = vpop.f32.mrf.mxu1 }
 0x107   :  { %v5815_v25 = vpop.f32.mrf.mxu0 }
 0x108   :  { %v7076_v48 = vadd.f32 %v5865_v29, %v5815_v25  ;;  %v771_v18 = vpop.f32.mrf.mxu1 }
 0x109   :  { %v497_v4 = vpop.f32.mrf.mxu0 }
 0x10a   :  { %v7078_v22 = vadd.f32 %v771_v18, %v497_v4  ;;  %v5868_v47 = vpop.f32.mrf.mxu1 }
 0x10b   :  { %v5818_v46 = vpop.f32.mrf.mxu0 }
 0x10c   :  { %v7080_v17 = vadd.f32 %v5868_v47, %v5818_v46  ;;  %v783_v33 = vpop.f32.mrf.mxu1 }
 0x10d   :  { %v517_v62 = vpop.f32.mrf.mxu0 }
 0x10e   :  { %v7082_v59 = vadd.f32 %v783_v33, %v517_v62  ;;  %v7086_v11 = vpop.f32.mrf.mxu1 }
 0x10f   :  { %v7084_v13 = vpop.f32.mrf.mxu0 }
 0x110   :  { %v1154_v15 = vpop.f32.mrf.mxu1 }
 0x111   :  { %v863_v10 = vpop.f32.mrf.mxu0 }
 0x112   :  { %v864_v21 = vadd.f32 %v863_v10, %v7022_v40  ;;  %v5926_v5 = vpop.f32.mrf.mxu1 }
 0x113   :  { %v5876_v26 = vpop.f32.mrf.mxu0 }
 0x114   :  { %v7089_v39 = vadd.f32 %v1154_v15, %v864_v21  ;;  %v885_v1 = vadd.f32 %v5876_v26, %v7024_v58  ;;  %v1170_v0 = vpop.f32.mrf.mxu1 }
 0x115   :  { %v877_v28 = vpop.f32.mrf.mxu0 }
 0x116   :  { %v7092_v37 = vadd.f32 %v5926_v5, %v885_v1  ;;  %v878_v55 = vadd.f32 %v877_v28, %v7026_v60  ;;  %v5929_v35 = vpop.f32.mrf.mxu1 }
 0x117   :  { %v5879_v12 = vpop.f32.mrf.mxu0 }
 0x118   :  { %v7095_v27 = vadd.f32 %v1170_v0, %v878_v55  ;;  %v899_v43 = vadd.f32 %v5879_v12, %v7028_v31  ;;  %v1186_v40 = vpop.f32.mrf.mxu1 }
 0x119   :  { %v891_v61 = vpop.f32.mrf.mxu0 }
 0x11a   :  { %v7098_v2 = vadd.f32 %v5929_v35, %v899_v43  ;;  %v892_v41 = vadd.f32 %v891_v61, %v7030_v36  ;;  %v5932_v58 = vpop.f32.mrf.mxu1 }
 0x11b   :  { %v5882_v57 = vpop.f32.mrf.mxu0 }
 0x11c   :  { %v7101_v8 = vadd.f32 %v1186_v40, %v892_v41  ;;  %v913_v19 = vadd.f32 %v5882_v57, %v7032_v44  ;;  %v1202_v60 = vpop.f32.mrf.mxu1 }
 0x11d   :  { %v905_v3 = vpop.f32.mrf.mxu0 }
 0x11e   :  { %v7104_v25 = vadd.f32 %v5932_v58, %v913_v19  ;;  %v906_v29 = vadd.f32 %v905_v3, %v7034_v52  ;;  %v5935_v31 = vpop.f32.mrf.mxu1 }
 0x11f   :  { %v5885_v4 = vpop.f32.mrf.mxu0 }
 0x120   :  { %v7107_v18 = vadd.f32 %v1202_v60, %v906_v29  ;;  %v927_v46 = vadd.f32 %v5885_v4, %v7036_v20  ;;  %v1218_v36 = vpop.f32.mrf.mxu1 }
 0x121   :  { %v919_v47 = vpop.f32.mrf.mxu0 }
 0x122   :  { %v7110_v62 = vadd.f32 %v5935_v31, %v927_v46  ;;  %v920_v33 = vadd.f32 %v919_v47, %v7038_v24  ;;  %v5938_v44 = vpop.f32.mrf.mxu1 }
 0x123   :  { %v5888_v10 = vpop.f32.mrf.mxu0 }
 0x124   :  { %v7113_v15 = vadd.f32 %v1218_v36, %v920_v33  ;;  %v941_v21 = vadd.f32 %v5888_v10, %v7040_v34  ;;  %v1234_v52 = vpop.f32.mrf.mxu1 }
 0x125   :  { %v933_v26 = vpop.f32.mrf.mxu0 }
 0x126   :  { %v7116_v5 = vadd.f32 %v5938_v44, %v941_v21  ;;  %v934_v1 = vadd.f32 %v933_v26, %v7042_v7  ;;  %v5941_v20 = vpop.f32.mrf.mxu1 }
 0x127   :  { %v5891_v28 = vpop.f32.mrf.mxu0 }
 0x128   :  { %v7119_v0 = vadd.f32 %v1234_v52, %v934_v1  ;;  %v955_v55 = vadd.f32 %v5891_v28, %v7044_v45  ;;  %v1250_v24 = vpop.f32.mrf.mxu1 }
 0x129   :  { %v947_v12 = vpop.f32.mrf.mxu0 }
 0x12a   :  { %v7122_v35 = vadd.f32 %v5941_v20, %v955_v55  ;;  %v948_v43 = vadd.f32 %v947_v12, %v7046_v30  ;;  %v5944_v34 = vpop.f32.mrf.mxu1 }
 0x12b   :  { %v5894_v61 = vpop.f32.mrf.mxu0 }
 0x12c   :  { %v7125_v40 = vadd.f32 %v1250_v24, %v948_v43  ;;  %v969_v41 = vadd.f32 %v5894_v61, %v7048_v56  ;;  %v1266_v7 = vpop.f32.mrf.mxu1 }
 0x12d   :  { %v961_v57 = vpop.f32.mrf.mxu0 }
 0x12e   :  { %v7128_v58 = vadd.f32 %v5944_v34, %v969_v41  ;;  %v962_v19 = vadd.f32 %v961_v57, %v7050_v14  ;;  %v5947_v45 = vpop.f32.mrf.mxu1 }
 0x12f   :  { %v5897_v3 = vpop.f32.mrf.mxu0 }
 0x130   :  { %v7131_v60 = vadd.f32 %v1266_v7, %v962_v19  ;;  %v983_v29 = vadd.f32 %v5897_v3, %v7052_v9  ;;  %v1282_v30 = vpop.f32.mrf.mxu1 }
 0x131   :  { %v975_v4 = vpop.f32.mrf.mxu0 }
 0x132   :  { %v7134_v31 = vadd.f32 %v5947_v45, %v983_v29  ;;  %v976_v46 = vadd.f32 %v975_v4, %v7054_v16  ;;  %v5950_v56 = vpop.f32.mrf.mxu1 }
 0x133   :  { %v5900_v47 = vpop.f32.mrf.mxu0 }
 0x134   :  { %v7137_v36 = vadd.f32 %v1282_v30, %v976_v46  ;;  %v997_v33 = vadd.f32 %v5900_v47, %v7056_v38  ;;  %v1298_v14 = vpop.f32.mrf.mxu1 }
 0x135   :  { %v989_v10 = vpop.f32.mrf.mxu0 }
 0x136   :  { %10160 = vst [vmem:[#allocation5_spill] sm:$0xff] %v7137_v36  ;;  %v7140_v44 = vadd.f32 %v5950_v56, %v997_v33  ;;  %v990_v21 = vadd.f32 %v989_v10, %v7058_v49  ;;  %v5953_v9 = vpop.f32.mrf.mxu1 }
 0x137   :  { %v5903_v26 = vpop.f32.mrf.mxu0 }
 0x138   :  { %10161 = vst [vmem:[#allocation6_spill] sm:$0xff] %v7140_v44  ;;  %v7143_v52 = vadd.f32 %v1298_v14, %v990_v21  ;;  %v1011_v1 = vadd.f32 %v5903_v26, %v7060_v32  ;;  %v1314_v16 = vpop.f32.mrf.mxu1 }
 0x139   :  { %v1003_v28 = vpop.f32.mrf.mxu0 }
 0x13a   :  { %10162 = vst [vmem:[#allocation7_spill] sm:$0xff] %v7143_v52  ;;  %v7146_v20 = vadd.f32 %v5953_v9, %v1011_v1  ;;  %v1004_v55 = vadd.f32 %v1003_v28, %v7062_v51  ;;  %v5956_v38 = vpop.f32.mrf.mxu1  ;;  %v871_v9 = vadd.f32 %v7084_v13, %v7020_v50 }
 0x13b   :  { %v5906_v12 = vpop.f32.mrf.mxu0 }
 0x13c   :  { %10163 = vst [vmem:[#allocation8_spill] sm:$0xff] %v7146_v20  ;;  %v7149_v24 = vadd.f32 %v1314_v16, %v1004_v55  ;;  %v1025_v43 = vadd.f32 %v5906_v12, %v7064_v63  ;;  %v1330_v49 = vpop.f32.mrf.mxu1 }
 0x13d   :  { %v1017_v61 = vpop.f32.mrf.mxu0 }
 0x13e   :  { %10164 = vst [vmem:[#allocation9_spill] sm:$0xff] %v7149_v24  ;;  %v7152_v34 = vadd.f32 %v5956_v38, %v1025_v43  ;;  %v1018_v41 = vadd.f32 %v1017_v61, %v7066_v53  ;;  %v5959_v32 = vpop.f32.mrf.mxu1  ;;  %v1163_v43 = vadd.f32 %v7086_v11, %v871_v9 }
 0x13f   :  { %v5909_v57 = vpop.f32.mrf.mxu0 }
 0x140   :  { %10165 = vst [vmem:[#allocation10_spill] sm:$0xff] %v7152_v34  ;;  %v7155_v7 = vadd.f32 %v1330_v49, %v1018_v41  ;;  %v1039_v19 = vadd.f32 %v5909_v57, %v7068_v6  ;;  %v1346_v51 = vpop.f32.mrf.mxu1 }
 0x141   :  { %v1031_v3 = vpop.f32.mrf.mxu0 }
 0x142   :  { %10166 = vst [vmem:[#allocation11_spill] sm:$0xff] %v7155_v7  ;;  %v7158_v45 = vadd.f32 %v5959_v32, %v1039_v19  ;;  %v1032_v29 = vadd.f32 %v1031_v3, %v7070_v54  ;;  %v5962_v63 = vpop.f32.mrf.mxu1 }
 0x143   :  { %v5912_v4 = vpop.f32.mrf.mxu0 }
 0x144   :  { %10167 = vst [vmem:[#allocation12_spill] sm:$0xff] %v7158_v45  ;;  %v7161_v30 = vadd.f32 %v1346_v51, %v1032_v29  ;;  %v1053_v46 = vadd.f32 %v5912_v4, %v7072_v42  ;;  %v1362_v53 = vpop.f32.mrf.mxu1 }
 0x145   :  { %v1045_v47 = vpop.f32.mrf.mxu0 }
 0x146   :  { %10168 = vst [vmem:[#allocation13_spill] sm:$0xff] %v7161_v30  ;;  %v7164_v56 = vadd.f32 %v5962_v63, %v1053_v46  ;;  %v1046_v33 = vadd.f32 %v1045_v47, %v7074_v23  ;;  %v5965_v6 = vpop.f32.mrf.mxu1 }
 0x147   :  { %v5915_v10 = vpop.f32.mrf.mxu0 }
 0x148   :  { %10169 = vst [vmem:[#allocation14_spill] sm:$0xff] %v7164_v56  ;;  %v7167_v14 = vadd.f32 %v1362_v53, %v1046_v33  ;;  %v1067_v21 = vadd.f32 %v5915_v10, %v7076_v48  ;;  %v1378_v54 = vpop.f32.mrf.mxu1 }
 0x149   :  { %v1059_v26 = vpop.f32.mrf.mxu0 }
 0x14a   :  { %10170 = vst [vmem:[#allocation15_spill] sm:$0xff] %v7167_v14  ;;  %v7172_v1 = vadd.f32 %v5965_v6, %v1067_v21  ;;  %v1060_v42 = vadd.f32 %v1059_v26, %v7078_v22  ;;  %v5968_v16 = vpop.f32.mrf.mxu1  ;;  %v7187_v22 = vld [vmem:[%s10030_s1 + $0x8] ss:$0 sm:$0xff] }
 0x14b   :  { %v5918_v28 = vpop.f32.mrf.mxu0 }
 0x14c   :  { %10171 = vst [vmem:[#allocation16_spill] sm:$0xff] %v7172_v1  ;;  %v7175_v55 = vadd.f32 %v1378_v54, %v1060_v42  ;;  %v1081_v23 = vadd.f32 %v5918_v28, %v7080_v17  ;;  %v1394_v38 = vpop.f32.mrf.mxu1 }
 0x14d   :  { %v1073_v12 = vpop.f32.mrf.mxu0 }
 0x14e   :  { %10172 = vst [vmem:[#allocation17_spill] sm:$0xff] %v7175_v55  ;;  %v7179_v48 = vadd.f32 %v5968_v16, %v1081_v23  ;;  %v1074_v61 = vadd.f32 %v1073_v12, %v7082_v59  ;;  %v6023_v50 = vpop.f32.mrf.mxu1  ;;  %v7195_v59 = vld [vmem:[%s10030_s1 + $0x9] ss:$0 sm:$0xff] }
 0x14f   :  { %v5973_v49 = vpop.f32.mrf.mxu0 }
 0x150   :  { %10173 = vst [vmem:[#allocation18_spill] sm:$0xff] %v7179_v48  ;;  %v7182_v13 = vadd.f32 %v1394_v38, %v1074_v61  ;;  %v1483_v41 = vadd.f32 %v5973_v49, %v1163_v43  ;;  %v1734_v17 = vpop.f32.mrf.mxu1 }
 0x151   :  { %v1476_v57 = vpop.f32.mrf.mxu0 }
 0x152   :  { %10174 = vst [vmem:[#allocation19_spill] sm:$0xff] %v7182_v13  ;;  %v7189_v32 = vadd.f32 %v6023_v50, %v1483_v41  ;;  %v1477_v11 = vadd.f32 %v1476_v57, %v7089_v39  ;;  %v6026_v4 = vpop.f32.mrf.mxu1 }
 0x153   :  { %v5976_v19 = vpop.f32.mrf.mxu0 }
 0x154   :  { %v1929_v3 = vmul.f32 %v7187_v22, %v7189_v32  ;;  %v7199_v51 = vadd.f32 %v1734_v17, %v1477_v11  ;;  %v1495_v29 = vadd.f32 %v5976_v19, %v7092_v37  ;;  %v1746_v12 = vpop.f32.mrf.mxu1 }
 0x155   :  { %v1488_v47 = vpop.f32.mrf.mxu0 }
 0x156   :  { %v7203_v63 = vadd.f32 %v7195_v59, %v1929_v3  ;;  %v1928_v39 = vmul.f32 %v7187_v22, %v7199_v51  ;;  %v7207_v46 = vadd.f32 %v6026_v4, %v1495_v29  ;;  %v1489_v21 = vadd.f32 %v1488_v47, %v7095_v27 }
 0x158   :  { %v10082_v53 = vand.u32 2147483647, %v7203_v63  ;;  %v2103_v33 = vand.u32 2139095040, %v7203_v63  ;;  %v7212_v10 = vadd.f32 %v7195_v59, %v1928_v39  ;;  %v1931_v37 = vmul.f32 %v7187_v22, %v7207_v46 }
 0x159   :  { %v7226_v43 = vadd.f32 %v1746_v12, %v1489_v21  ;;  %vm2102_vm14 = vcmp.lt.s32.totalorder %v7203_v63, 0 }
 0x15a   :  { %v2104_v6 = vshrl.u32 %v2103_v33, 23  ;;  %v2107_v26 = vand.u32 8388607, %v10082_v53  ;;  %v10081_v54 = vand.u32 2147483647, %v7212_v10  ;;  %v1999_v9 = vand.u32 2139095040, %v7212_v10 }
 0x15b   :  { %v7222_v28 = vadd.f32 %v7195_v59, %v1931_v37  ;;  %v7231_v19 = vmul.f32 %v7187_v22, %v7226_v43  ;;  %v10089_v33 = vmov 683565275  }
 0x15c   :  { %v5446_v42 = vadd.s32 4294967169, %v2104_v6  ;;  %v2000_v16 = vshrl.u32 %v1999_v9, 23  ;;  %v2003_v23 = vand.u32 8388607, %v10081_v54  ;;  %v2108_v27 = vor.u32 8388608, %v2107_v26 }
 0x15d   :  { %v2311_v50 = vand.u32 2139095040, %v7222_v28  ;;  %v10083_v6 = vmov 2475754826   ;;  %v10085_v26 = vmov 2131351028  }
 0x15e   :  { %v2110_v38 = vadd.s32 1, %v5446_v42  ;;  %v5442_v61 = vadd.s32 4294967169, %v2000_v16  ;;  %v2004_v49 = vor.u32 8388608, %v2003_v23  ;;  %v7233_v3 = vshll.u32 %v2108_v27, 8 }
 0x15f   :  { %v2312_v39 = vshrl.u32 %v2311_v50, 23  ;;  %v10087_v42 = vmov 2102212464   ;;  %v10091_v23 = vmov 920167782  }
 0x160   :  { %vm2111_vm1 = vcmp.gt.s32.totalorder %v2110_v38, 0  ;;  %v2006_v57 = vadd.s32 1, %v5442_v61  ;;  %v7235_v29 = vshll.u32 %v2004_v49, 8 }
 0x161   :  { %v2112_v41 = vsel %vm2111_vm1, %v2110_v38, 0 }
 0x162   :  { %v2113_v17 = vshrl.u32 %v2112_v41, 5  ;;  %v2114_v11 = vand.u32 31, %v2112_v41  ;;  %vm2007_vm2 = vcmp.gt.s32.totalorder %v2006_v57, 0  ;;  %v10093_v41 = vmov 1326507024  }
 0x164   :  { %v2115_v47 = vsub.s32 32, %v2114_v11  ;;  %v2117_v37 = vshll.u32 %v10089_v33, %v2114_v11  ;;  %v2120_v21 = vshll.u32 %v10083_v6, %v2114_v11  ;;  %v2123_v9 = vshll.u32 %v10085_v26, %v2114_v11 }
 0x165   :  { %v2126_v16 = vshll.u32 %v10087_v42, %v2114_v11  ;;  %v2129_v12 = vshll.u32 %v10091_v23, %v2114_v11  ;;  %vm2132_vm3 = vcmp.lt.s32.totalorder %v2113_v17, 1  ;;  %vm2133_vm4 = vcmp.lt.s32.totalorder %v2113_v17, 2 }
 0x166   :  { %v2118_v38 = vshrl.u32 %v10083_v6, %v2115_v47  ;;  %v2121_v27 = vshrl.u32 %v10085_v26, %v2115_v47  ;;  %v2124_v61 = vshrl.u32 %v10087_v42, %v2115_v47  ;;  %v2116_v49 = vshrl.u32 %v10089_v33, %v2115_v47 }
 0x167   :  { %v2127_v50 = vshrl.u32 %v10091_v23, %v2115_v47  ;;  %v2130_v54 = vshrl.u32 %v10093_v41, %v2115_v47  ;;  %vm2134_vm5 = vcmp.lt.s32.totalorder %v2113_v17, 3  ;;  %v2008_v11 = vsel %vm2007_vm2, %v2006_v57, 0 }
 0x168   :  { %v2119_v53 = vor.u32 %v2118_v38, %v2117_v37  ;;  %v2122_v4 = vor.u32 %v2121_v27, %v2120_v21  ;;  %v2125_v13 = vor.u32 %v2124_v61, %v2123_v9  ;;  %vm2135_vm6 = vcmp.lt.s32.totalorder %v2113_v17, 4 }
 0x169   :  { %v2128_v48 = vor.u32 %v2127_v50, %v2126_v16  ;;  %v2131_v6 = vor.u32 %v2130_v54, %v2129_v12  ;;  %v2010_v26 = vand.u32 31, %v2008_v11  ;;  %v5454_v9 = vadd.s32 4294967169, %v2312_v39 }
 0x16a   :  { %v2136_v42 = vsel %vm2132_vm3, %v2116_v49, %v2119_v53  ;;  %v2137_v55 = vsel %vm2135_vm6, %v2125_v13, 2102212464  ;;  %v2140_v33 = vsel %vm2132_vm3, %v2119_v53, %v2122_v4  ;;  %v2144_v23 = vsel %vm2132_vm3, %v2122_v4, %v2125_v13 }
 0x16b   :  { %v2138_v1 = vsel %vm2134_vm5, %v2122_v4, %v2137_v55  ;;  %v2141_v47 = vsel %vm2135_vm6, %v2128_v48, 920167782  ;;  %v2145_v41 = vsel %vm2135_vm6, %v2131_v6, 1326507024  ;;  %v2011_v37 = vsub.s32 32, %v2010_v26 }
 0x16c   :  { %v2139_v21 = vsel %vm2133_vm4, %v2136_v42, %v2138_v1  ;;  %v2142_v57 = vsel %vm2134_vm5, %v2125_v13, %v2141_v47  ;;  %v2146_v54 = vsel %vm2134_vm5, %v2128_v48, %v2145_v41  ;;  %v2009_v38 = vshrl.u32 %v2008_v11, 5 }
 0x16d   :  { %v2143_v16 = vsel %vm2133_vm4, %v2140_v33, %v2142_v57  ;;  %v2147_v12 = vsel %vm2133_vm4, %v2144_v23, %v2146_v54  ;;  %v10175_v53 = vmov 683565275   ;;  %v2155_v1 = vmul.u32 %v7233_v3, %v2139_v21 }
 0x16e   :  { %v2013_v27 = vshll.u32 %v10175_v53, %v2010_v26  ;;  %v7261_v61 = vmul.u32.u64.low %v7233_v3, %v2147_v12  ;;  %v7262_v55 = vmul.u32.u64.high %v7233_v3, %v2147_v12, %v7261_v61  ;;  %v10176_v48 = vmov 2475754826  }
 0x16f   :  { %v7265_v4 = vmul.u32.u64.low %v7233_v3, %v2143_v16  ;;  %v7266_v6 = vmul.u32.u64.high %v7233_v3, %v2143_v16, %v7265_v4  ;;  %v2014_v13 = vshrl.u32 %v10176_v48, %v2011_v37  ;;  %v2016_v39 = vshll.u32 %v10176_v48, %v2010_v26 }
 0x170   :  { %v10177_v17 = vmov 2131351028   ;;  %v10178_v23 = vmov 2102212464   ;;  %v10179_v41 = vmov 920167782   ;;  %v2012_v12 = vshrl.u32 %v10175_v53, %v2011_v37 }
 0x171   :  { %v2017_v33 = vshrl.u32 %v10177_v17, %v2011_v37  ;;  %v2019_v42 = vshll.u32 %v10177_v17, %v2010_v26  ;;  %v2020_v49 = vshrl.u32 %v10178_v23, %v2011_v37  ;;  %v2022_v50 = vshll.u32 %v10178_v23, %v2010_v26 }
 0x172   :  { %v2023_v11 = vshrl.u32 %v10179_v41, %v2011_v37  ;;  %v2015_v47 = vor.u32 %v2014_v13, %v2013_v27  ;;  %v2025_v54 = vshll.u32 %v10179_v41, %v2010_v26  ;;  %v10180_v16 = vmov 1326507024  }
 0x173   :  { %v2018_v57 = vor.u32 %v2017_v33, %v2016_v39  ;;  %v2026_v3 = vshrl.u32 %v10180_v16, %v2011_v37  ;;  %vm2157_vm7 = vc.u32 %v7262_v55, %v7265_v4  ;;  %v2158_v21 = vadd.s32 1, %v7266_v6 }
 0x174   :  { %v2021_v61 = vor.u32 %v2020_v49, %v2019_v42  ;;  %v2024_v14 = vor.u32 %v2023_v11, %v2022_v50  ;;  %vm2028_vm8 = vcmp.lt.s32.totalorder %v2009_v38, 1  ;;  %vm2029_vm9 = vcmp.lt.s32.totalorder %v2009_v38, 2 }
 0x175   :  { %v2027_v56 = vor.u32 %v2026_v3, %v2025_v54  ;;  %v2159_v30 = vsel %vm2157_vm7, %v2158_v21, %v7266_v6  ;;  %vm2030_vm10 = vcmp.lt.s32.totalorder %v2009_v38, 3  ;;  %vm2031_vm11 = vcmp.lt.s32.totalorder %v2009_v38, 4 }
 0x176   :  { %v2036_v27 = vsel %vm2028_vm8, %v2015_v47, %v2018_v57  ;;  %v2160_v26 = vadd.s32 %v2159_v30, %v2155_v1  ;;  %v2033_v13 = vsel %vm2031_vm11, %v2021_v61, 2102212464  ;;  %v2037_v39 = vsel %vm2031_vm11, %v2024_v14, 920167782 }
 0x177   :  { %v2040_v33 = vsel %vm2028_vm8, %v2018_v57, %v2021_v61  ;;  %v2032_v45 = vsel %vm2028_vm8, %v2012_v12, %v2015_v47  ;;  %v2038_v7 = vsel %vm2030_vm10, %v2021_v61, %v2037_v39  ;;  %v2041_v34 = vsel %vm2031_vm11, %v2027_v56, 1326507024 }
 0x178   :  { %v2318_v24 = vadd.s32 1, %v5454_v9  ;;  %v2161_v20 = vadd.s32 536870912, %v2160_v26  ;;  %v2034_v37 = vsel %vm2030_vm10, %v2018_v57, %v2033_v13  ;;  %v2039_v42 = vsel %vm2029_vm9, %v2036_v27, %v2038_v7 }
 0x179   :  { %v2042_v49 = vsel %vm2030_vm10, %v2024_v14, %v2041_v34  ;;  %v7287_v6 = vmul.u32.u64.low %v7235_v29, %v2039_v42  ;;  %v7288_v11 = vmul.u32.u64.high %v7235_v29, %v2039_v42, %v7287_v6  ;;  %v7293_v30 = vadd.f32 %v7195_v59, %v7231_v19 }
 0x17a   :  { %v2043_v50 = vsel %vm2029_vm9, %v2040_v33, %v2042_v49  ;;  %v2162_v1 = vshrl.u32 %v2161_v20, 30  ;;  %vm2319_vm12 = vcmp.gt.s32.totalorder %v2318_v24, 0  ;;  %v2035_v7 = vsel %vm2029_vm9, %v2032_v45, %v2034_v37 }
 0x17b   :  { %v7296_v56 = vmul.u32.u64.low %v7235_v29, %v2043_v50  ;;  %v7297_v9 = vmul.u32.u64.high %v7235_v29, %v2043_v50, %v7296_v56  ;;  %v2320_v34 = vsel %vm2319_vm12, %v2318_v24, 0  ;;  %v2054_v57 = vadd.s32 1, %v7288_v11 }
 0x17c   :  { %v2163_v14 = vshll.u32 %v2162_v1, 30  ;;  %v2322_v47 = vand.u32 31, %v2320_v34  ;;  %v10181_v54 = vand.u32 2147483647, %v7222_v28  ;;  %v2207_v19 = vand.u32 2139095040, %v7293_v30 }
 0x17d   :  { %v2051_v20 = vmul.u32 %v7235_v29, %v2035_v7  ;;  %vm2053_vm13 = vc.u32 %v7297_v9, %v7287_v6  ;;  %v2156_v29 = vadd.s32 %v7265_v4, %v7262_v55  ;;  %v2321_v37 = vshrl.u32 %v2320_v34, 5 }
 0x17e   :  { %v7303_v3 = vand.u32 8388607, %v10181_v54  ;;  %v2164_v21 = vsub.s32 %v2160_v26, %v2163_v14  ;;  %v2055_v38 = vsel %vm2053_vm13, %v2054_v57, %v7288_v11  ;;  %v2323_v45 = vsub.s32 32, %v2322_v47 }
 0x17f   :  { %v2056_v12 = vadd.s32 %v2055_v38, %v2051_v20  ;;  %v2208_v27 = vshrl.u32 %v2207_v19, 23  ;;  %v2331_v49 = vshll.u32 %v10177_v17, %v2322_v47  ;;  %v2186_v11 = vsub.s32 4, %v2162_v1 }
 0x180   :  { %v2166_v24 = vsub.s32 0, %v2164_v21  ;;  %v2316_v61 = vor.u32 8388608, %v7303_v3  ;;  %v2326_v33 = vshrl.u32 %v10176_v48, %v2323_v45  ;;  %v2332_v26 = vshrl.u32 %v10178_v23, %v2323_v45 }
 0x181   :  { %v2057_v39 = vadd.s32 536870912, %v2056_v12  ;;  %v2329_v42 = vshrl.u32 %v10177_v17, %v2323_v45  ;;  %v2325_v56 = vshll.u32 %v10175_v53, %v2322_v47  ;;  %v2335_v7 = vshrl.u32 %v10179_v41, %v2323_v45 }
 0x182   :  { %v5447_v13 = vmin.u32 %v2166_v24, %v2164_v21  ;;  %v2328_v57 = vshll.u32 %v10176_v48, %v2322_v47  ;;  %v2333_v54 = vor.u32 %v2332_v26, %v2331_v49  ;;  %v5450_v3 = vadd.s32 4294967169, %v2208_v27 }
 0x183   :  { %v7320_v14 = vshrl.u32 %v2057_v39, 30  ;;  %v10182_v19 = vand.u32 2147483647, %v7203_v63  ;;  %v2327_v34 = vor.u32 %v2326_v33, %v2325_v56  ;;  %v2334_v20 = vshll.u32 %v10178_v23, %v2322_v47 }
 0x184   :  { %v2168_v50 = vclz %v5447_v13  ;;  %v2338_v38 = vshrl.u32 %v10180_v16, %v2323_v45  ;;  %v2330_v13 = vor.u32 %v2329_v42, %v2328_v57  ;;  %v2337_v39 = vshll.u32 %v10179_v41, %v2322_v47 }
 0x185   :  { %vm7325_vm15 = vcmp.le.f32.partialorder %v10182_v19, 0.7853982  ;;  %v2059_v24 = vshll.u32 %v7320_v14, 30  ;;  %vm2343_vm0 = vcmp.lt.s32.totalorder %v2321_v37, 4  ;;  %v2187_v27 = vsel %vm2102_vm14, %v2186_v11, %v2162_v1 }
 0x186   :  { %v5448_v4 = vadd.s32 4294967294, %v2168_v50  ;;  %v2336_v26 = vor.u32 %v2335_v7, %v2334_v20  ;;  %v2345_v49 = vsel %vm2343_vm0, %v2333_v54, 2102212464  ;;  %v2324_v33 = vshrl.u32 %v10175_v53, %v2323_v45 }
 0x187   :  { %v7336_v50 = vsub.s32 %v2056_v12, %v2059_v24  ;;  %v2339_v56 = vor.u32 %v2338_v38, %v2337_v39  ;;  %vm2340_vm2 = vcmp.lt.s32.totalorder %v2321_v37, 1  ;;  %vm2342_vm3 = vcmp.lt.s32.totalorder %v2321_v37, 3 }
 0x188   :  { %vm5449_vm1 = vcmp.lt.s32.totalorder %v5448_v4, 0  ;;  %v2344_v57 = vsel %vm2340_vm2, %v2324_v33, %v2327_v34  ;;  %v2346_v36 = vsel %vm2342_vm3, %v2330_v13, %v2345_v49  ;;  %vm1998_vm4 = vcmp.lt.s32.totalorder %v7212_v10, 0 }
 0x189   :  { %v2171_v19 = vsel %vm5449_vm1, 0, %v5448_v4  ;;  %v2062_v47 = vsub.s32 0, %v7336_v50  ;;  %v2348_v7 = vsel %vm2340_vm2, %v2327_v34, %v2330_v13  ;;  %v2349_v12 = vsel %vm2343_vm0, %v2336_v26, 920167782 }
 0x18a   :  { %v2172_v52 = vsub.s32 32, %v2171_v19  ;;  %v2176_v44 = vsub.s32 4294967266, %v2171_v19  ;;  %v2173_v42 = vshll.u32 %v2164_v21, %v2171_v19  ;;  %v2350_v4 = vsel %vm2342_vm3, %v2333_v54, %v2349_v12 }
 0x18b   :  { %v5443_v45 = vmin.u32 %v2062_v47, %v7336_v50  ;;  %v2352_v20 = vsel %vm2340_vm2, %v2330_v13, %v2333_v54  ;;  %v2353_v38 = vsel %vm2343_vm0, %v2339_v56, 1326507024  ;;  %vm2341_vm5 = vcmp.lt.s32.totalorder %v2321_v37, 2 }
 0x18c   :  { %v2174_v1 = vshrl.u32 %v2156_v29, %v2172_v52  ;;  %v2177_v11 = vadd.s32 127, %v2176_v44  ;;  %v2354_v39 = vsel %vm2342_vm3, %v2336_v26, %v2353_v38  ;;  %v2189_v44 = vsel %vm7325_vm15, 0, %v2187_v27 }
 0x18d   :  { %v2064_v52 = vclz %v5443_v45  ;;  %v2351_v29 = vsel %vm2341_vm5, %v2348_v7, %v2350_v4  ;;  %v2356_v34 = vshll.u32 %v2316_v61, 8  ;;  %v2082_v19 = vsub.s32 4, %v7320_v14 }
 0x18e   :  { %v2175_v21 = vor.u32 %v2174_v1, %v2173_v42  ;;  %v2178_v24 = vshll.u32 %v2177_v11, 23  ;;  %v2347_v33 = vsel %vm2341_vm5, %v2344_v57, %v2346_v36  ;;  %v2355_v47 = vsel %vm2341_vm5, %v2352_v20, %v2354_v39  ;;  %v7375_v39 = vld [vmem:[%s10030_s1 + $0xa] ss:$0 sm:$0xff] }
 0x18f   :  { %v5444_v54 = vadd.s32 4294967294, %v2064_v52  ;;  %v7350_v13 = vmul.u32.u64.low %v2356_v34, %v2355_v47  ;;  %v7351_v56 = vmul.u32.u64.high %v2356_v34, %v2355_v47, %v7350_v13  ;;  %v2214_v26 = vadd.s32 1, %v5450_v3 }
 0x190   :  { %v2179_v49 = vor.u32 4788187, %v2178_v24  ;;  %v2182_v12 = vcvt.s32.f32 %v2175_v21  ;;  %v7353_v1 = vmul.u32.u64.low %v2356_v34, %v2351_v29  ;;  %v7354_v37 = vmul.u32.u64.high %v2356_v34, %v2351_v29, %v7353_v1  ;;  %v5979_v21 = vpop.f32.mrf.mxu0 }
 0x191   :  { %v10185_v27 = vand.u32 2147483647, %v7212_v10  ;;  %v2052_v36 = vadd.s32 %v7287_v6, %v7297_v9  ;;  %vm5445_vm7 = vcmp.lt.s32.totalorder %v5444_v54, 0  ;;  %v2204_v57 = vand.u32 2147483647, %v7293_v30 }
 0x192   :  { %v2180_v42 = vand.u32 2147483647, %v2179_v49  ;;  %v2193_v7 = vadd.s32 3, %v2189_v44  ;;  %v2067_v45 = vsel %vm5445_vm7, 0, %v5444_v54  ;;  %vm2215_vm8 = vcmp.gt.s32.totalorder %v2214_v26, 0 }
 0x193   :  { %vm7359_vm6 = vcmp.le.f32.partialorder %v10185_v27, 0.7853982  ;;  %v2068_v4 = vsub.s32 32, %v2067_v45  ;;  %v2072_v20 = vsub.s32 4294967266, %v2067_v45  ;;  %v2083_v3 = vsel %vm1998_vm4, %v2082_v19, %v7320_v14 }
 0x194   :  { %v2183_v11 = vmul.f32 %v2182_v12, %v2180_v42  ;;  %v2363_v38 = vmul.u32 %v2356_v34, %v2347_v33  ;;  %vm2365_vm9 = vc.u32 %v7351_v56, %v7353_v1  ;;  %v2366_v6 = vadd.s32 1, %v7354_v37 }
 0x195   :  { %v2216_v9 = vsel %vm2215_vm8, %v2214_v26, 0  ;;  %v2069_v44 = vshll.u32 %v7336_v50, %v2067_v45  ;;  %v2070_v52 = vshrl.u32 %v2052_v36, %v2068_v4  ;;  %v2073_v29 = vadd.s32 127, %v2072_v20  ;;  %v6029_v36 = vpop.f32.mrf.mxu1 }
 0x196   :  { %v2184_v24 = vxor.u32 2147483648, %v2183_v11  ;;  %v2218_v49 = vand.u32 31, %v2216_v9  ;;  %v2085_v34 = vsel %vm7359_vm6, 0, %v2083_v3  ;;  %v2367_v19 = vsel %vm2365_vm9, %v2366_v6, %v7354_v37 }
 0x197   :  { %v1507_v33 = vadd.f32 %v5979_v21, %v7098_v2  ;;  %v2071_v12 = vor.u32 %v2070_v52, %v2069_v44  ;;  %v2074_v54 = vshll.u32 %v2073_v29, 23  ;;  %v2368_v50 = vadd.s32 %v2367_v19, %v2363_v38 }
 0x198   :  { %v2185_v14 = vsel %vm2102_vm14, %v2184_v24, %v2183_v11  ;;  %v7389_v13 = vmul.f32 %v7375_v39, %v7189_v32  ;;  %v2211_v42 = vand.u32 8388607, %v2204_v57  ;;  %v2219_v26 = vsub.s32 32, %v2218_v49 }
 0x199   :  { %v2188_v47 = vsel %vm7325_vm15, %v7203_v63, %v2185_v14  ;;  %v7393_v37 = vand.u32 3, %v2193_v7  ;;  %v2075_v2 = vor.u32 4788187, %v2074_v54  ;;  %v2369_v27 = vadd.s32 536870912, %v2368_v50 }
 0x19a   :  { %6206 = vcosq.f32 %v2188_v47  ;;  %v2078_v55 = vcvt.s32.f32 %v2071_v12  ;;  %v2089_v11 = vadd.s32 3, %v2085_v34  ;;  %v2222_v45 = vshrl.u32 %v10176_v48, %v2219_v26 }
 0x19b   :  { %6208 = vsinq.f32 %v2188_v47  ;;  %v7396_v4 = vadd.f32 %v6029_v36, %v1507_v33  ;;  %v2076_v20 = vand.u32 2147483647, %v2075_v2  ;;  %v7398_v3 = vshrl.u32 %v2369_v27, 30 }
 0x19c   :  { %v2225_v32 = vshrl.u32 %v10177_v17, %v2219_v26  ;;  %v2228_v38 = vshrl.u32 %v10178_v23, %v2219_v26  ;;  %v7402_v21 = vshrl.u32 %v2216_v9, 5  ;;  %v2221_v7 = vshll.u32 %v10175_v53, %v2218_v49 }
 0x19d   :  { %v2230_v24 = vshll.u32 %v10178_v23, %v2218_v49  ;;  %v2231_v6 = vshrl.u32 %v10179_v41, %v2219_v26  ;;  %v2079_v44 = vmul.f32 %v2078_v55, %v2076_v20  ;;  %v2371_v52 = vshll.u32 %v7398_v3, 30 }
 0x19e   :  { %v2224_v29 = vshll.u32 %v10176_v48, %v2218_v49  ;;  %v2227_v14 = vshll.u32 %v10177_v17, %v2218_v49  ;;  %v2223_v34 = vor.u32 %v2222_v45, %v2221_v7  ;;  %v2233_v33 = vshll.u32 %v10179_v41, %v2218_v49 }
 0x19f   :  { %v2232_v19 = vor.u32 %v2231_v6, %v2230_v24  ;;  %v2234_v9 = vshrl.u32 %v10180_v16, %v2219_v26  ;;  %vm2199_vm10 = vcmp.eq.s32.totalorder %v7393_v37, 2  ;;  %v2080_v47 = vxor.u32 2147483648, %v2079_v44 }
 0x1a0   :  { %v7413_v12 = vsub.s32 %v2368_v50, %v2371_v52  ;;  %v2226_v54 = vor.u32 %v2225_v32, %v2224_v29  ;;  %v2229_v2 = vor.u32 %v2228_v38, %v2227_v14  ;;  %vm2196_vm11 = vcmp.eq.s32.totalorder %v7393_v37, 0 }
 0x1a1   :  { %v7416_v27 = vand.u32 3, %v2089_v11  ;;  %v2212_v36 = vor.u32 8388608, %v2211_v42  ;;  %v2235_v55 = vor.u32 %v2234_v9, %v2233_v33  ;;  %v1933_v45 = vmul.f32 %v7187_v22, %v7396_v4 }
 0x1a2   :  { %vm2195_vm12 = vcmp.lt.s32.totalorder %v7393_v37, 2  ;;  %v2081_v49 = vsel %vm1998_vm4, %v2080_v47, %v2079_v44  ;;  %v2374_v20 = vsub.s32 0, %v7413_v12  ;;  %v2220_v50 = vshrl.u32 %v10175_v53, %v2219_v26 }
 0x1a3   :  { %vm2239_vm13 = vcmp.lt.s32.totalorder %v7402_v21, 4  ;;  %vm2192_vm14 = vweird.f32 %v7203_v63  ;;  %v2084_v42 = vsel %vm7359_vm6, %v7212_v10, %v2081_v49  ;;  %vm2236_vm15 = vcmp.lt.s32.totalorder %v7402_v21, 1 }
 0x1a4   :  { %vm2238_vm0 = vcmp.lt.s32.totalorder %v7402_v21, 3  ;;  %v2245_v11 = vsel %vm2239_vm13, %v2232_v19, 920167782  ;;  %6210 = vcosq.f32 %v2084_v42  ;;  %vm2310_vm1 = vcmp.lt.s32.totalorder %v7222_v28, 0 }
 0x1a5   :  { %v5455_v32 = vmin.u32 %v2374_v20, %v7413_v12  ;;  %v2241_v38 = vsel %vm2239_vm13, %v2229_v2, 2102212464  ;;  %v2244_v26 = vsel %vm2236_vm15, %v2223_v34, %v2226_v54  ;;  %6212 = vsinq.f32 %v2084_v42 }
 0x1a6   :  { %v2246_v7 = vsel %vm2238_vm0, %v2229_v2, %v2245_v11  ;;  %v2248_v61 = vsel %vm2236_vm15, %v2226_v54, %v2229_v2  ;;  %v2249_v24 = vsel %vm2239_vm13, %v2235_v55, 1326507024  ;;  %v2394_v52 = vsub.s32 4, %v7398_v3 }
 0x1a7   :  { %v6207_v6 = vpop.eup %6206  ;;  %v2376_v44 = vclz %v5455_v32  ;;  %vm2237_vm2 = vcmp.lt.s32.totalorder %v7402_v21, 2  ;;  %v2252_v29 = vshll.u32 %v2212_v36, 8  ;;  %v2240_v9 = vsel %vm2236_vm15, %v2220_v50, %v2223_v34  ;;  %v1500_v36 = vpop.f32.mrf.mxu0 }
 0x1a8   :  { %v6209_v14 = vpop.eup %6208  ;;  %v2200_v33 = vxor.u32 2147483648, %v6207_v6  ;;  %v2247_v47 = vsel %vm2237_vm2, %v2244_v26, %v2246_v7  ;;  %v2250_v49 = vsel %vm2238_vm0, %v2232_v19, %v2249_v24  ;;  %v2242_v20 = vsel %vm2238_vm0, %v2226_v54, %v2241_v38 }
 0x1a9   :  { %v2197_v2 = vxor.u32 2147483648, %v6209_v14  ;;  %v5456_v55 = vadd.s32 4294967294, %v2376_v44  ;;  %v2251_v42 = vsel %vm2237_vm2, %v2248_v61, %v2250_v49  ;;  %v7458_v50 = vadd.f32 %v7195_v59, %v1933_v45  ;;  %v1758_v49 = vpop.f32.mrf.mxu1 }
 0x1aa   :  { %v2201_v11 = vsel %vm2199_vm10, %v2200_v33, %v6209_v14  ;;  %v7454_v32 = vmul.u32.u64.low %v2252_v29, %v2251_v42  ;;  %v7455_v34 = vmul.u32.u64.high %v2252_v29, %v2251_v42, %v7454_v32  ;;  %v2364_v38 = vadd.s32 %v7353_v1, %v7351_v56 }
 0x1ab   :  { %v2198_v19 = vsel %vm2196_vm11, %v6207_v6, %v2197_v2  ;;  %vm5457_vm3 = vcmp.lt.s32.totalorder %v5456_v55, 0  ;;  %v7462_v26 = vmul.u32.u64.low %v2252_v29, %v2247_v47  ;;  %v7463_v7 = vmul.u32.u64.high %v2252_v29, %v2247_v47, %v7462_v26 }
 0x1ac   :  { %v2202_v54 = vsel %vm2195_vm12, %v2198_v19, %v2201_v11  ;;  %v2379_v61 = vsel %vm5457_vm3, 0, %v5456_v55  ;;  %v1501_v24 = vadd.f32 %v1500_v36, %v7101_v8  ;;  %v2243_v6 = vsel %vm2237_vm2, %v2240_v9, %v2242_v20 }
 0x1ad   :  { %v2203_v45 = vsel %vm2192_vm14, nan, %v2202_v54  ;;  %v2380_v44 = vsub.s32 32, %v2379_v61  ;;  %v2384_v14 = vsub.s32 4294967266, %v2379_v61  ;;  %v2381_v47 = vshll.u32 %v7413_v12, %v2379_v61 }
 0x1ae   :  { %v5361_v33 = vadd.f32 %v7389_v13, %v2203_v45  ;;  %v2395_v37 = vsel %vm2310_vm1, %v2394_v52, %v7398_v3  ;;  %vm2261_vm4 = vc.u32 %v7455_v34, %v7462_v26  ;;  %v2262_v63 = vadd.s32 1, %v7463_v7 }
 0x1af   :  { %v2382_v8 = vshrl.u32 %v2364_v38, %v2380_v44  ;;  %v2385_v56 = vadd.s32 127, %v2384_v14  ;;  %v2519_v1 = vand.u32 2139095040, %v7458_v50  ;;  %v5328_v13 = vmul.f32 %v7375_v39, %v7199_v51 }
 0x1b0   :  { %5393 = vst [vmem:[#allocation2 + $0x8] sm:$0xff] %v5361_v33  ;;  %v10188_v21 = vand.u32 2147483647, %v7222_v28  ;;  %v2259_v3 = vmul.u32 %v2252_v29, %v2243_v6  ;;  %v7492_v52 = vadd.f32 %v1758_v49, %v1501_v24  ;;  %v2263_v55 = vsel %vm2261_vm4, %v2262_v63, %v7463_v7  ;;  %v5982_v63 = vpop.f32.mrf.mxu0 }
 0x1b1   :  { %v2383_v9 = vor.u32 %v2382_v8, %v2381_v47  ;;  %v2386_v2 = vshll.u32 %v2385_v56, 23  ;;  %v2520_v20 = vshrl.u32 %v2519_v1, 23  ;;  %v6211_v42 = vpop.eup %6210  ;;  %vm2088_vm6 = vweird.f32 %v7212_v10 }
 0x1b2   :  { %vm7488_vm5 = vcmp.le.f32.partialorder %v10188_v21, 0.7853982  ;;  %vm2092_vm7 = vcmp.eq.s32.totalorder %v7416_v27, 0  ;;  %v2264_v36 = vadd.s32 %v2263_v55, %v2259_v3  ;;  %v6213_v11 = vpop.eup %6212  ;;  %v2096_v32 = vxor.u32 2147483648, %v6211_v42 }
 0x1b3   :  { %v2397_v51 = vsel %vm7488_vm5, 0, %v2395_v37  ;;  %v2387_v19 = vor.u32 4788187, %v2386_v2  ;;  %v2516_v29 = vand.u32 2147483647, %v7458_v50  ;;  %v5462_v54 = vadd.s32 4294967169, %v2520_v20 }
 0x1b4   :  { %v2093_v38 = vxor.u32 2147483648, %v6213_v11  ;;  %vm2095_vm8 = vcmp.eq.s32.totalorder %v7416_v27, 2  ;;  %v2265_v7 = vadd.s32 536870912, %v2264_v36  ;;  %v1932_v61 = vmul.f32 %v7187_v22, %v7492_v52 }
 0x1b5   :  { %v2097_v24 = vsel %vm2095_vm8, %v2096_v32, %v6213_v11  ;;  %v2388_v45 = vand.u32 2147483647, %v2387_v19  ;;  %v2390_v44 = vcvt.s32.f32 %v2383_v9  ;;  %v2526_v14 = vadd.s32 1, %v5462_v54 }
 0x1b6   :  { %vm2091_vm9 = vcmp.lt.s32.totalorder %v7416_v27, 2  ;;  %v2094_v6 = vsel %vm2092_vm7, %v6211_v42, %v2093_v38  ;;  %v2401_v33 = vadd.s32 3, %v2397_v51  ;;  %v2266_v47 = vshrl.u32 %v2265_v7, 30 }
 0x1b7   :  { %v2098_v37 = vsel %vm2091_vm9, %v2094_v6, %v2097_v24  ;;  %v2391_v8 = vmul.f32 %v2390_v44, %v2388_v45  ;;  %v2523_v56 = vand.u32 8388607, %v2516_v29  ;;  %vm2527_vm10 = vcmp.gt.s32.totalorder %v2526_v14, 0 }
 0x1b8   :  { %v2099_v1 = vsel %vm2088_vm6, nan, %v2098_v37  ;;  %v2267_v49 = vshll.u32 %v2266_v47, 30  ;;  %v2528_v21 = vsel %vm2527_vm10, %v2526_v14, 0  ;;  %v7511_v3 = vadd.f32 %v7195_v59, %v1932_v61 }
 0x1b9   :  { %v5360_v9 = vadd.f32 %v5328_v13, %v2099_v1  ;;  %v2392_v27 = vxor.u32 2147483648, %v2391_v8  ;;  %v7515_v2 = vmul.f32 %v7375_v39, %v7207_v46  ;;  %v2530_v55 = vand.u32 31, %v2528_v21 }
 0x1ba   :  { %v7517_v20 = vand.u32 3, %v2401_v33  ;;  %vm2206_vm11 = vcmp.lt.s32.totalorder %v7293_v30, 0  ;;  %v7520_v42 = vsub.s32 %v2264_v36, %v2267_v49  ;;  %v7523_v10 = vadd.f32 %v5982_v63, %v7104_v25 }
 0x1bb   :  { %5392 = vst [vmem:[#allocation2] sm:$0xff] %v5360_v9  ;;  %v2393_v59 = vsel %vm2310_vm1, %v2392_v27, %v2391_v8  ;;  %v2290_v13 = vsub.s32 4, %v2266_v47  ;;  %v2524_v51 = vor.u32 8388608, %v2523_v56  ;;  %v2531_v11 = vsub.s32 32, %v2530_v55 }
 0x1bc   :  { %v2396_v46 = vsel %vm7488_vm5, %v7222_v28, %v2393_v59  ;;  %v2260_v32 = vadd.s32 %v7462_v26, %v7455_v34  ;;  %v2270_v36 = vsub.s32 0, %v7520_v42  ;;  %v2415_v19 = vand.u32 2139095040, %v7511_v3 }
 0x1bd   :  { %6214 = vcosq.f32 %v2396_v46  ;;  %v2529_v25 = vshrl.u32 %v2528_v21, 5  ;;  %v2534_v54 = vshrl.u32 %v10176_v48, %v2531_v11  ;;  %v2537_v38 = vshrl.u32 %v10177_v17, %v2531_v11 }
 0x1be   :  { %6216 = vsinq.f32 %v2396_v46  ;;  %v5451_v7 = vmin.u32 %v2270_v36, %v7520_v42  ;;  %v2533_v61 = vshll.u32 %v10175_v53, %v2530_v55  ;;  %v2536_v12 = vshll.u32 %v10176_v48, %v2530_v55 }
 0x1bf   :  { %v7541_v34 = vsel %vm2206_vm11, %v2290_v13, %v2266_v47  ;;  %v2539_v26 = vshll.u32 %v10177_v17, %v2530_v55  ;;  %v2540_v24 = vshrl.u32 %v10178_v23, %v2531_v11  ;;  %v7545_v45 = vshll.u32 %v2524_v51, 8 }
 0x1c0   :  { %v2272_v44 = vclz %v5451_v7  ;;  %v2535_v14 = vor.u32 %v2534_v54, %v2533_v61  ;;  %v2538_v6 = vor.u32 %v2537_v38, %v2536_v12  ;;  %v2542_v33 = vshll.u32 %v10178_v23, %v2530_v55 }
 0x1c1   :  { %v2541_v37 = vor.u32 %v2540_v24, %v2539_v26  ;;  %v2543_v8 = vshrl.u32 %v10179_v41, %v2531_v11  ;;  %v2545_v56 = vshll.u32 %v10179_v41, %v2530_v55  ;;  %v2546_v63 = vshrl.u32 %v10180_v16, %v2531_v11 }
 0x1c2   :  { %v5452_v47 = vadd.s32 4294967294, %v2272_v44  ;;  %v2532_v1 = vshrl.u32 %v10175_v53, %v2531_v11  ;;  %vm2548_vm12 = vcmp.lt.s32.totalorder %v2529_v25, 1  ;;  %v2416_v49 = vshrl.u32 %v2415_v19, 23 }
 0x1c3   :  { %vm7554_vm13 = vcmp.le.f32.partialorder %v2204_v57, 0.7853982  ;;  %v2544_v9 = vor.u32 %v2543_v8, %v2542_v33  ;;  %v2547_v27 = vor.u32 %v2546_v63, %v2545_v56  ;;  %vm2549_vm14 = vcmp.lt.s32.totalorder %v2529_v25, 2 }
 0x1c4   :  { %vm2551_vm15 = vcmp.lt.s32.totalorder %v2529_v25, 4  ;;  %vm5453_vm0 = vcmp.lt.s32.totalorder %v5452_v47, 0  ;;  %vm2550_vm1 = vcmp.lt.s32.totalorder %v2529_v25, 3  ;;  %v2556_v59 = vsel %vm2548_vm12, %v2535_v14, %v2538_v6 }
 0x1c5   :  { %v2553_v55 = vsel %vm2551_vm15, %v2541_v37, 2102212464  ;;  %vm2404_vm2 = vcmp.eq.s32.totalorder %v7517_v20, 0  ;;  %v2275_v13 = vsel %vm5453_vm0, 0, %v5452_v47  ;;  %v2557_v51 = vsel %vm2551_vm15, %v2544_v9, 920167782 }
 0x1c6   :  { %v2560_v11 = vsel %vm2548_vm12, %v2538_v6, %v2541_v37  ;;  %v2561_v46 = vsel %vm2551_vm15, %v2547_v27, 1326507024  ;;  %vm2403_vm3 = vcmp.lt.s32.totalorder %v7517_v20, 2  ;;  %v2276_v57 = vsub.s32 32, %v2275_v13 }
 0x1c7   :  { %v2280_v36 = vsub.s32 4294967266, %v2275_v13  ;;  %v2552_v19 = vsel %vm2548_vm12, %v2532_v1, %v2535_v14  ;;  %v2554_v54 = vsel %vm2550_vm1, %v2538_v6, %v2553_v55  ;;  %v2277_v38 = vshll.u32 %v7520_v42, %v2275_v13  ;;  %v6032_v1 = vpop.f32.mrf.mxu1 }
 0x1c8   :  { %v2558_v7 = vsel %vm2550_vm1, %v2541_v37, %v2557_v51  ;;  %v2562_v61 = vsel %vm2550_vm1, %v2544_v9, %v2561_v46  ;;  %v5458_v12 = vadd.s32 4294967169, %v2416_v49  ;;  %v2278_v26 = vshrl.u32 %v2260_v32, %v2276_v57 }
 0x1c9   :  { %v2281_v24 = vadd.s32 127, %v2280_v36  ;;  %v2559_v44 = vsel %vm2549_vm14, %v2556_v59, %v2558_v7  ;;  %v2563_v33 = vsel %vm2549_vm14, %v2560_v11, %v2562_v61  ;;  %v2555_v37 = vsel %vm2549_vm14, %v2552_v19, %v2554_v54 }
 0x1ca   :  { %v7567_v8 = vmul.u32.u64.low %v7545_v45, %v2563_v33  ;;  %v7568_v56 = vmul.u32.u64.high %v7545_v45, %v2563_v33, %v7567_v8  ;;  %v7571_v63 = vmul.u32.u64.low %v7545_v45, %v2559_v44  ;;  %v7572_v47 = vmul.u32.u64.high %v7545_v45, %v2559_v44, %v7571_v63  ;;  %v6215_v14 = vpop.eup %6214 }
 0x1cb   :  { %v2279_v42 = vor.u32 %v2278_v26, %v2277_v38  ;;  %v2282_v6 = vshll.u32 %v2281_v24, 23  ;;  %v2422_v32 = vadd.s32 1, %v5458_v12  ;;  %v6217_v49 = vpop.eup %6216  ;;  %vm2407_vm4 = vcmp.eq.s32.totalorder %v7517_v20, 2 }
 0x1cc   :  { %v2408_v9 = vxor.u32 2147483648, %v6215_v14  ;;  %v2412_v27 = vand.u32 2147483647, %v7511_v3  ;;  %v7579_v55 = vadd.f32 %v6032_v1, %v7523_v10  ;;  %v2405_v59 = vxor.u32 2147483648, %v6217_v49 }
 0x1cd   :  { %v2283_v13 = vor.u32 4788187, %v2282_v6  ;;  %v2293_v51 = vsel %vm7554_vm13, 0, %v7541_v34  ;;  %vm2423_vm5 = vcmp.gt.s32.totalorder %v2422_v32, 0  ;;  %v2571_v11 = vmul.u32 %v7545_v45, %v2555_v37 }
 0x1ce   :  { %v2409_v25 = vsel %vm2407_vm4, %v2408_v9, %v6217_v49  ;;  %vm2573_vm6 = vc.u32 %v7568_v56, %v7571_v63  ;;  %v2574_v46 = vadd.s32 1, %v7572_v47  ;;  %v2406_v57 = vsel %vm2404_vm2, %v6215_v14, %v2405_v59 }
 0x1cf   :  { %v2284_v10 = vand.u32 2147483647, %v2283_v13  ;;  %v2286_v36 = vcvt.s32.f32 %v2279_v42  ;;  %v2424_v19 = vsel %vm2423_vm5, %v2422_v32, 0  ;;  %vm2400_vm7 = vweird.f32 %v7222_v28 }
 0x1d0   :  { %v2410_v34 = vsel %vm2403_vm3, %v2406_v57, %v2409_v25  ;;  %v2575_v54 = vsel %vm2573_vm6, %v2574_v46, %v7572_v47  ;;  %v2426_v38 = vand.u32 31, %v2424_v19  ;;  %v7596_v61 = vmul.f32 %v7375_v39, %v7226_v43 }
 0x1d1   :  { %v2411_v45 = vsel %vm2400_vm7, nan, %v2410_v34  ;;  %v2287_v7 = vmul.f32 %v2286_v36, %v2284_v10  ;;  %v2576_v12 = vadd.s32 %v2575_v54, %v2571_v11  ;;  %v2297_v24 = vadd.s32 3, %v2293_v51 }
 0x1d2   :  { %v5363_v26 = vadd.f32 %v7515_v2, %v2411_v45  ;;  %v2419_v44 = vand.u32 8388607, %v2412_v27  ;;  %v2427_v28 = vsub.s32 32, %v2426_v38  ;;  %v7601_v8 = vshrl.u32 %v2424_v19, 5  ;;  %v7627_v19 = vld [vmem:[%s10030_s1 + $0x9] ss:$0 sm:$0xff] }
 0x1d3   :  { %v2288_v33 = vxor.u32 2147483648, %v2287_v7  ;;  %v2577_v20 = vadd.s32 536870912, %v2576_v12  ;;  %v1935_v47 = vmul.f32 %v7187_v22, %v7579_v55  ;;  %v2429_v14 = vshll.u32 %v10175_v53, %v2426_v38 }
 0x1d4   :  { %5395 = vst [vmem:[#allocation2 + $0x18] sm:$0xff] %v5363_v26  ;;  %v2430_v43 = vshrl.u32 %v10176_v48, %v2427_v28  ;;  %v2433_v42 = vshrl.u32 %v10177_v17, %v2427_v28  ;;  %v2436_v2 = vshrl.u32 %v10178_v23, %v2427_v28  ;;  %v2432_v32 = vshll.u32 %v10176_v48, %v2426_v38 }
 0x1d5   :  { %v2289_v6 = vsel %vm2206_vm11, %v2288_v33, %v2287_v7  ;;  %v2578_v37 = vshrl.u32 %v2577_v20, 30  ;;  %v2439_v1 = vshrl.u32 %v10179_v41, %v2427_v28  ;;  %v2435_v49 = vshll.u32 %v10177_v17, %v2426_v38 }
 0x1d6   :  { %v2292_v22 = vsel %vm7554_vm13, %v7293_v30, %v2289_v6  ;;  %v2438_v9 = vshll.u32 %v10178_v23, %v2426_v38  ;;  %v2441_v59 = vshll.u32 %v10179_v41, %v2426_v38  ;;  %v2431_v51 = vor.u32 %v2430_v43, %v2429_v14 }
 0x1d7   :  { %6218 = vcosq.f32 %v2292_v22  ;;  %v2579_v13 = vshll.u32 %v2578_v37, 30  ;;  %v2434_v25 = vor.u32 %v2433_v42, %v2432_v32  ;;  %v2437_v11 = vor.u32 %v2436_v2, %v2435_v49 }
 0x1d8   :  { %6220 = vsinq.f32 %v2292_v22  ;;  %v2440_v46 = vor.u32 %v2439_v1, %v2438_v9  ;;  %v2442_v57 = vshrl.u32 %v10180_v16, %v2427_v28  ;;  %v7620_v10 = vand.u32 3, %v2297_v24 }
 0x1d9   :  { %v7622_v36 = vsub.s32 %v2576_v12, %v2579_v13  ;;  %v2420_v21 = vor.u32 8388608, %v2419_v44  ;;  %v7630_v34 = vadd.f32 %v7627_v19, %v1935_v47  ;;  %v2602_v54 = vsub.s32 4, %v2578_v37 }
 0x1da   :  { %v2428_v38 = vshrl.u32 %v10175_v53, %v2427_v28  ;;  %v2443_v45 = vor.u32 %v2442_v57, %v2441_v59  ;;  %vm2444_vm8 = vcmp.lt.s32.totalorder %v7601_v8, 1  ;;  %vm2446_vm9 = vcmp.lt.s32.totalorder %v7601_v8, 3 }
 0x1db   :  { %v2582_v7 = vsub.s32 0, %v7622_v36  ;;  %vm2447_vm10 = vcmp.lt.s32.totalorder %v7601_v8, 4  ;;  %v2452_v12 = vsel %vm2444_vm8, %v2431_v51, %v2434_v25  ;;  %v2456_v44 = vsel %vm2444_vm8, %v2434_v25, %v2437_v11 }
 0x1dc   :  { %v2449_v26 = vsel %vm2447_vm10, %v2437_v11, 2102212464  ;;  %v2453_v24 = vsel %vm2447_vm10, %v2440_v46, 920167782  ;;  %v2457_v33 = vsel %vm2447_vm10, %v2443_v45, 1326507024  ;;  %v2448_v32 = vsel %vm2444_vm8, %v2428_v38, %v2431_v51 }
 0x1dd   :  { %v5463_v28 = vmin.u32 %v2582_v7, %v7622_v36  ;;  %vm2445_vm11 = vcmp.lt.s32.totalorder %v7601_v8, 2  ;;  %v2454_v20 = vsel %vm2446_vm9, %v2437_v11, %v2453_v24  ;;  %v2458_v47 = vsel %vm2446_vm9, %v2440_v46, %v2457_v33 }
 0x1de   :  { %vm2518_vm12 = vcmp.lt.s32.totalorder %v7458_v50, 0  ;;  %v2455_v14 = vsel %vm2445_vm11, %v2452_v12, %v2454_v20  ;;  %v2459_v43 = vsel %vm2445_vm11, %v2456_v44, %v2458_v47  ;;  %v2460_v42 = vshll.u32 %v2420_v21, 8 }
 0x1df   :  { %v2584_v2 = vclz %v5463_v28  ;;  %v2603_v6 = vsel %vm2518_vm12, %v2602_v54, %v2578_v37  ;;  %v2450_v1 = vsel %vm2446_vm9, %v2434_v25, %v2449_v26  ;;  %vm2296_vm13 = vweird.f32 %v7293_v30  ;;  %v1512_v25 = vpop.f32.mrf.mxu0 }
 0x1e0   :  { %v7658_v22 = vmul.u32.u64.low %v2460_v42, %v2459_v43  ;;  %v7659_v49 = vmul.u32.u64.high %v2460_v42, %v2459_v43, %v7658_v22  ;;  %v7661_v9 = vmul.u32.u64.low %v2460_v42, %v2455_v14  ;;  %v7662_v59 = vmul.u32.u64.high %v2460_v42, %v2455_v14, %v7661_v9 }
 0x1e1   :  { %vm2299_vm14 = vcmp.lt.s32.totalorder %v7620_v10, 2  ;;  %vm7669_vm15 = vcmp.le.f32.partialorder %v2516_v29, 0.7853982  ;;  %v5464_v13 = vadd.s32 4294967294, %v2584_v2  ;;  %v2727_v51 = vand.u32 2139095040, %v7630_v34  ;;  %v1770_v2 = vpop.f32.mrf.mxu1 }
 0x1e2   :  { %vm2300_vm0 = vcmp.eq.s32.totalorder %v7620_v10, 0  ;;  %vm2303_vm1 = vcmp.eq.s32.totalorder %v7620_v10, 2  ;;  %v2572_v11 = vadd.s32 %v7571_v63, %v7568_v56  ;;  %v2451_v46 = vsel %vm2445_vm11, %v2448_v32, %v2450_v1 }
 0x1e3   :  { %vm5465_vm2 = vcmp.lt.s32.totalorder %v5464_v13, 0  ;;  %v2605_v29 = vsel %vm7669_vm15, 0, %v2603_v6  ;;  %v2724_v57 = vand.u32 2147483647, %v7630_v34  ;;  %v2728_v21 = vshrl.u32 %v2727_v51, 23 }
 0x1e4   :  { %v6219_v54 = vpop.eup %6218  ;;  %v2587_v38 = vsel %vm5465_vm2, 0, %v5464_v13  ;;  %vm2469_vm3 = vc.u32 %v7659_v49, %v7661_v9  ;;  %v2470_v45 = vadd.s32 1, %v7662_v59  ;;  %v1513_v7 = vadd.f32 %v1512_v25, %v7107_v18 }
 0x1e5   :  { %v6221_v56 = vpop.eup %6220  ;;  %v2304_v63 = vxor.u32 2147483648, %v6219_v54  ;;  %v2588_v8 = vsub.s32 32, %v2587_v38  ;;  %v2592_v12 = vsub.s32 4294967266, %v2587_v38  ;;  %v2467_v26 = vmul.u32 %v2460_v42, %v2451_v46 }
 0x1e6   :  { %v2301_v24 = vxor.u32 2147483648, %v6221_v56  ;;  %v2589_v44 = vshll.u32 %v7622_v36, %v2587_v38  ;;  %v2471_v33 = vsel %vm2469_vm3, %v2470_v45, %v7662_v59  ;;  %v5470_v28 = vadd.s32 4294967169, %v2728_v21 }
 0x1e7   :  { %v2305_v20 = vsel %vm2303_vm1, %v2304_v63, %v6221_v56  ;;  %v2590_v47 = vshrl.u32 %v2572_v11, %v2588_v8  ;;  %v2593_v14 = vadd.s32 127, %v2592_v12  ;;  %v2472_v43 = vadd.s32 %v2471_v33, %v2467_v26 }
 0x1e8   :  { %v2302_v18 = vsel %vm2300_vm0, %v6219_v54, %v2301_v24  ;;  %v2731_v6 = vand.u32 8388607, %v2724_v57  ;;  %v2734_v42 = vadd.s32 1, %v5470_v28  ;;  %v7695_v32 = vadd.f32 %v1770_v2, %v1513_v7  ;;  %v7707_v54 = vld [vmem:[%s10030_s1 + $0x8] ss:$0 sm:$0xff] }
 0x1e9   :  { %v2306_v36 = vsel %vm2299_vm14, %v2302_v18, %v2305_v20  ;;  %v2591_v1 = vor.u32 %v2590_v47, %v2589_v44  ;;  %v2594_v22 = vshll.u32 %v2593_v14, 23  ;;  %v2473_v59 = vadd.s32 536870912, %v2472_v43 }
 0x1ea   :  { %v2307_v13 = vsel %vm2296_vm13, nan, %v2306_v36  ;;  %vm2735_vm4 = vcmp.gt.s32.totalorder %v2734_v42, 0  ;;  %v2609_v11 = vadd.s32 3, %v2605_v29  ;;  %v1934_v10 = vmul.f32 %v7707_v54, %v7695_v32 }
 0x1eb   :  { %v5362_v51 = vadd.f32 %v7596_v61, %v2307_v13  ;;  %v2595_v25 = vor.u32 4788187, %v2594_v22  ;;  %v7702_v46 = vshrl.u32 %v2473_v59, 30  ;;  %v2736_v21 = vsel %vm2735_vm4, %v2734_v42, 0  ;;  %v5985_v61 = vpop.f32.mrf.mxu0 }
 0x1ec   :  { %v2598_v30 = vcvt.s32.f32 %v2591_v1  ;;  %v2732_v7 = vor.u32 8388608, %v2731_v6  ;;  %v2738_v56 = vand.u32 31, %v2736_v21  ;;  %v7712_v63 = vand.u32 3, %v2609_v11 }
 0x1ed   :  { %5394 = vst [vmem:[#allocation2 + $0x10] sm:$0xff] %v5362_v51  ;;  %v2596_v38 = vand.u32 2147483647, %v2595_v25  ;;  %v2475_v45 = vshll.u32 %v7702_v46, 30  ;;  %v7716_v8 = vmul.f32 %v7375_v39, %v7396_v4  ;;  %v2737_v26 = vshrl.u32 %v2736_v21, 5 }
 0x1ee   :  { %v2739_v24 = vsub.s32 32, %v2738_v56  ;;  %v7719_v44 = vadd.f32 %v7627_v19, %v1934_v10  ;;  %v7722_v33 = vadd.f32 %v5985_v61, %v7110_v62  ;;  %v2468_v20 = vadd.s32 %v7661_v9, %v7659_v49 }
 0x1ef   :  { %v2599_v29 = vmul.f32 %v2598_v30, %v2596_v38  ;;  %v2476_v12 = vsub.s32 %v2472_v43, %v2475_v45  ;;  %v7726_v14 = vshll.u32 %v2732_v7, 8  ;;  %v2498_v2 = vsub.s32 4, %v7702_v46 }
 0x1f0   :  { %v2742_v4 = vshrl.u32 %v10176_v48, %v2739_v24  ;;  %v2745_v43 = vshrl.u32 %v10177_v17, %v2739_v24  ;;  %v2748_v18 = vshrl.u32 %v10178_v23, %v2739_v24  ;;  %v2741_v42 = vshll.u32 %v10175_v53, %v2738_v56 }
 0x1f1   :  { %v2600_v28 = vxor.u32 2147483648, %v2599_v29  ;;  %v2478_v47 = vsub.s32 0, %v2476_v12  ;;  %v2747_v36 = vshll.u32 %v10177_v17, %v2738_v56  ;;  %v2744_v9 = vshll.u32 %v10176_v48, %v2738_v56 }
 0x1f2   :  { %vm2756_vm5 = vcmp.lt.s32.totalorder %v2737_v26, 1  ;;  %v2623_v1 = vand.u32 2139095040, %v7719_v44  ;;  %v2743_v59 = vor.u32 %v2742_v4, %v2741_v42  ;;  %v2750_v25 = vshll.u32 %v10178_v23, %v2738_v56 }
 0x1f3   :  { %v2601_v6 = vsel %vm2518_vm12, %v2600_v28, %v2599_v29  ;;  %v5459_v62 = vmin.u32 %v2478_v47, %v2476_v12  ;;  %v2749_v13 = vor.u32 %v2748_v18, %v2747_v36  ;;  %v2746_v51 = vor.u32 %v2745_v43, %v2744_v9 }
 0x1f4   :  { %v2604_v49 = vsel %vm7669_vm15, %v7458_v50, %v2601_v6  ;;  %v2751_v11 = vshrl.u32 %v10179_v41, %v2739_v24  ;;  %v2740_v10 = vshrl.u32 %v10175_v53, %v2739_v24  ;;  %v2753_v37 = vshll.u32 %v10179_v41, %v2738_v56 }
 0x1f5   :  { %6222 = vcosq.f32 %v2604_v49  ;;  %v2480_v22 = vclz %v5459_v62  ;;  %v2754_v38 = vshrl.u32 %v10180_v16, %v2739_v24  ;;  %vm2757_vm6 = vcmp.lt.s32.totalorder %v2737_v26, 2 }
 0x1f6   :  { %6224 = vsinq.f32 %v2604_v49  ;;  %v2752_v30 = vor.u32 %v2751_v11, %v2750_v25  ;;  %vm2758_vm7 = vcmp.lt.s32.totalorder %v2737_v26, 3  ;;  %vm2759_vm8 = vcmp.lt.s32.totalorder %v2737_v26, 4 }
 0x1f7   :  { %v5460_v21 = vadd.s32 4294967294, %v2480_v22  ;;  %v2755_v45 = vor.u32 %v2754_v38, %v2753_v37  ;;  %v2760_v7 = vsel %vm2756_vm5, %v2740_v10, %v2743_v59  ;;  %v2761_v61 = vsel %vm2759_vm8, %v2749_v13, 2102212464  ;;  %v6035_v38 = vpop.f32.mrf.mxu1 }
 0x1f8   :  { %v2762_v28 = vsel %vm2758_vm7, %v2746_v51, %v2761_v61  ;;  %v2764_v47 = vsel %vm2756_vm5, %v2743_v59, %v2746_v51  ;;  %v2765_v4 = vsel %vm2759_vm8, %v2752_v30, 920167782  ;;  %v2768_v24 = vsel %vm2756_vm5, %v2746_v51, %v2749_v13 }
 0x1f9   :  { %vm5461_vm9 = vcmp.lt.s32.totalorder %v5460_v21, 0  ;;  %v2763_v6 = vsel %vm2757_vm6, %v2760_v7, %v2762_v28  ;;  %v2766_v62 = vsel %vm2758_vm7, %v2749_v13, %v2765_v4  ;;  %v2769_v42 = vsel %vm2759_vm8, %v2755_v45, 1326507024 }
 0x1fa   :  { %v2483_v29 = vsel %vm5461_vm9, 0, %v5460_v21  ;;  %v2624_v36 = vshrl.u32 %v2623_v1, 23  ;;  %v2767_v22 = vsel %vm2757_vm6, %v2764_v47, %v2766_v62  ;;  %v2770_v25 = vsel %vm2758_vm7, %v2752_v30, %v2769_v42 }
 0x1fb   :  { %v2484_v43 = vsub.s32 32, %v2483_v29  ;;  %v2485_v18 = vshll.u32 %v2476_v12, %v2483_v29  ;;  %v2488_v56 = vsub.s32 4294967266, %v2483_v29  ;;  %v2771_v59 = vsel %vm2757_vm6, %v2768_v24, %v2770_v25 }
 0x1fc   :  { %v7756_v11 = vmul.u32.u64.low %v7726_v14, %v2767_v22  ;;  %v7757_v12 = vmul.u32.u64.high %v7726_v14, %v2767_v22, %v7756_v11  ;;  %v5466_v51 = vadd.s32 4294967169, %v2624_v36  ;;  %vm2608_vm10 = vweird.f32 %v7458_v50 }
 0x1fd   :  { %v2486_v49 = vshrl.u32 %v2468_v20, %v2484_v43  ;;  %v2489_v9 = vadd.s32 127, %v2488_v56  ;;  %v7762_v1 = vmul.u32.u64.low %v7726_v14, %v2771_v59  ;;  %v7763_v20 = vmul.u32.u64.high %v7726_v14, %v2771_v59, %v7762_v1 }
 0x1fe   :  { %vm7767_vm11 = vcmp.le.f32.partialorder %v2412_v27, 0.7853982  ;;  %vm2414_vm12 = vcmp.lt.s32.totalorder %v7511_v3, 0  ;;  %v7774_v26 = vmul.f32 %v7375_v39, %v7492_v52  ;;  %v2630_v37 = vadd.s32 1, %v5466_v51  ;;  %v1524_v1 = vpop.f32.mrf.mxu0 }
 0x1ff   :  { %v2487_v21 = vor.u32 %v2486_v49, %v2485_v18  ;;  %v2490_v13 = vshll.u32 %v2489_v9, 23  ;;  %vm2615_vm13 = vcmp.eq.s32.totalorder %v7712_v63, 2  ;;  %v2499_v27 = vsel %vm2414_vm12, %v2498_v2, %v7702_v46 }
 0x200   :  { %v7783_v45 = vadd.f32 %v6035_v38, %v7722_v33  ;;  %v2779_v61 = vmul.u32 %v7726_v14, %v2763_v6  ;;  %v2782_v39 = vadd.s32 1, %v7757_v12  ;;  %v2620_v52 = vand.u32 2147483647, %v7719_v44 }
 0x201   :  { %v2491_v30 = vor.u32 4788187, %v2490_v13  ;;  %vm2631_vm14 = vcmp.gt.s32.totalorder %v2630_v37, 0  ;;  %v2494_v4 = vcvt.s32.f32 %v2487_v21  ;;  %vm2781_vm15 = vc.u32 %v7763_v20, %v7756_v11 }
 0x202   :  { %v6223_v7 = vpop.eup %6222  ;;  %v2501_v46 = vsel %vm7767_vm11, 0, %v2499_v27  ;;  %v2783_v33 = vsel %vm2781_vm15, %v2782_v39, %v7757_v12  ;;  %v2632_v2 = vsel %vm2631_vm14, %v2630_v37, 0  ;;  %vm2612_vm0 = vcmp.eq.s32.totalorder %v7712_v63, 0 }
 0x203   :  { %v6225_v29 = vpop.eup %6224  ;;  %v2616_v28 = vxor.u32 2147483648, %v6223_v7  ;;  %v2492_v47 = vand.u32 2147483647, %v2491_v30  ;;  %v2784_v56 = vadd.s32 %v2783_v33, %v2779_v61  ;;  %vm2611_vm1 = vcmp.lt.s32.totalorder %v7712_v63, 2 }
 0x204   :  { %v2613_v43 = vxor.u32 2147483648, %v6225_v29  ;;  %v2634_v6 = vand.u32 31, %v2632_v2  ;;  %v1937_v62 = vmul.f32 %v7707_v54, %v7783_v45  ;;  %v2505_v49 = vadd.s32 3, %v2501_v46 }
 0x205   :  { %v2617_v14 = vsel %vm2615_vm13, %v2616_v28, %v6225_v29  ;;  %v2495_v18 = vmul.f32 %v2494_v4, %v2492_v47  ;;  %v2785_v9 = vadd.s32 536870912, %v2784_v56  ;;  %v2627_v25 = vand.u32 8388607, %v2620_v52 }
 0x206   :  { %v2614_v24 = vsel %vm2612_vm0, %v6223_v7, %v2613_v43  ;;  %v7803_v59 = vshrl.u32 %v2632_v2, 5  ;;  %v2635_v12 = vsub.s32 32, %v2634_v6  ;;  %v2637_v13 = vshll.u32 %v10175_v53, %v2634_v6 }
 0x207   :  { %v2618_v42 = vsel %vm2611_vm1, %v2614_v24, %v2617_v14  ;;  %v2496_v36 = vxor.u32 2147483648, %v2495_v18  ;;  %v2786_v21 = vshrl.u32 %v2785_v9, 30  ;;  %v2640_v38 = vshll.u32 %v10176_v48, %v2634_v6 }
 0x208   :  { %v2619_v22 = vsel %vm2608_vm10, nan, %v2618_v42  ;;  %v2638_v37 = vshrl.u32 %v10176_v48, %v2635_v12  ;;  %v2641_v30 = vshrl.u32 %v10177_v17, %v2635_v12  ;;  %v2643_v27 = vshll.u32 %v10177_v17, %v2634_v6 }
 0x209   :  { %v5365_v63 = vadd.f32 %v7716_v8, %v2619_v22  ;;  %v2497_v51 = vsel %vm2414_vm12, %v2496_v36, %v2495_v18  ;;  %v2787_v8 = vshll.u32 %v2786_v21, 30  ;;  %v2644_v7 = vshrl.u32 %v10178_v23, %v2635_v12 }
 0x20a   :  { %v2500_v50 = vsel %vm7767_vm11, %v7511_v3, %v2497_v51  ;;  %v2639_v61 = vor.u32 %v2638_v37, %v2637_v13  ;;  %v2642_v39 = vor.u32 %v2641_v30, %v2640_v38  ;;  %v1525_v29 = vadd.f32 %v1524_v1, %v7113_v15 }
 0x20b   :  { %5397 = vst [vmem:[#allocation2 + $0x28] sm:$0xff] %v5365_v63  ;;  %6226 = vcosq.f32 %v2500_v50  ;;  %vm2726_vm2 = vcmp.lt.s32.totalorder %v7630_v34, 0  ;;  %v7819_v10 = vsub.s32 %v2784_v56, %v2787_v8  ;;  %v2645_v28 = vor.u32 %v2644_v7, %v2643_v27 }
 0x20c   :  { %6228 = vsinq.f32 %v2500_v50  ;;  %v2646_v47 = vshll.u32 %v10178_v23, %v2634_v6  ;;  %v2647_v4 = vshrl.u32 %v10179_v41, %v2635_v12  ;;  %v7823_v43 = vand.u32 3, %v2505_v49 }
 0x20d   :  { %v2649_v46 = vshll.u32 %v10179_v41, %v2634_v6  ;;  %v2650_v33 = vshrl.u32 %v10180_v16, %v2635_v12  ;;  %v7828_v2 = vadd.f32 %v7627_v19, %v1937_v62  ;;  %v2790_v15 = vsub.s32 0, %v7819_v10 }
 0x20e   :  { %v2628_v14 = vor.u32 8388608, %v2627_v25  ;;  %v2648_v18 = vor.u32 %v2647_v4, %v2646_v47  ;;  %vm2652_vm3 = vcmp.lt.s32.totalorder %v7803_v59, 1  ;;  %vm7834_vm4 = vcmp.le.f32.partialorder %v2724_v57, 0.7853982  ;;  %v1782_v47 = vpop.f32.mrf.mxu1 }
 0x20f   :  { %v2636_v24 = vshrl.u32 %v10175_v53, %v2635_v12  ;;  %v2651_v6 = vor.u32 %v2650_v33, %v2649_v46  ;;  %vm2654_vm5 = vcmp.lt.s32.totalorder %v7803_v59, 3  ;;  %vm2655_vm6 = vcmp.lt.s32.totalorder %v7803_v59, 4 }
 0x210   :  { %v5471_v62 = vmin.u32 %v2790_v15, %v7819_v10  ;;  %v2657_v42 = vsel %vm2655_vm6, %v2645_v28, 2102212464  ;;  %v2660_v36 = vsel %vm2652_vm3, %v2639_v61, %v2642_v39  ;;  %v2661_v49 = vsel %vm2655_vm6, %v2648_v18, 920167782 }
 0x211   :  { %v2810_v9 = vsub.s32 4, %v2786_v21  ;;  %v2662_v57 = vsel %vm2654_vm5, %v2645_v28, %v2661_v49  ;;  %v2664_v22 = vsel %vm2652_vm3, %v2642_v39, %v2645_v28  ;;  %v2665_v25 = vsel %vm2655_vm6, %v2651_v6, 1326507024 }
 0x212   :  { %vm2508_vm7 = vcmp.eq.s32.totalorder %v7823_v43, 0  ;;  %v2792_v12 = vclz %v5471_v62  ;;  %vm2653_vm8 = vcmp.lt.s32.totalorder %v7803_v59, 2  ;;  %v2656_v63 = vsel %vm2652_vm3, %v2636_v24, %v2639_v61 }
 0x213   :  { %v2668_v51 = vshll.u32 %v2628_v14, 8  ;;  %vm2507_vm9 = vcmp.lt.s32.totalorder %v7823_v43, 2  ;;  %v2658_v13 = vsel %vm2654_vm5, %v2642_v39, %v2657_v42  ;;  %v2663_v1 = vsel %vm2653_vm8, %v2660_v36, %v2662_v57 }
 0x214   :  { %v2666_v50 = vsel %vm2654_vm5, %v2648_v18, %v2665_v25  ;;  %v2935_v37 = vand.u32 2139095040, %v7828_v2  ;;  %vm2504_vm10 = vweird.f32 %v7511_v3  ;;  %v5472_v38 = vadd.s32 4294967294, %v2792_v12 }
 0x215   :  { %v2667_v30 = vsel %vm2653_vm8, %v2664_v22, %v2666_v50  ;;  %v7863_v8 = vmul.u32.u64.low %v2668_v51, %v2663_v1  ;;  %v7864_v27 = vmul.u32.u64.high %v2668_v51, %v2663_v1, %v7863_v8  ;;  %v2811_v7 = vsel %vm2726_vm2, %v2810_v9, %v2786_v21 }
 0x216   :  { %v7868_v61 = vmul.u32.u64.low %v2668_v51, %v2667_v30  ;;  %v7869_v39 = vmul.u32.u64.high %v2668_v51, %v2667_v30, %v7868_v61  ;;  %v2936_v28 = vshrl.u32 %v2935_v37, 23  ;;  %vm2511_vm11 = vcmp.eq.s32.totalorder %v7823_v43, 2 }
 0x217   :  { %vm5473_vm12 = vcmp.lt.s32.totalorder %v5472_v38, 0  ;;  %v2659_v4 = vsel %vm2653_vm8, %v2656_v63, %v2658_v13  ;;  %v7874_v46 = vadd.f32 %v1782_v47, %v1525_v29  ;;  %v2780_v15 = vadd.s32 %v7756_v11, %v7763_v20 }
 0x218   :  { %v6227_v33 = vpop.eup %6226  ;;  %v2795_v14 = vsel %vm5473_vm12, 0, %v5472_v38  ;;  %v2932_v21 = vand.u32 2147483647, %v7828_v2  ;;  %v5478_v18 = vadd.s32 4294967169, %v2936_v28  ;;  %v2813_v36 = vsel %vm7834_vm4, 0, %v2811_v7 }
 0x219   :  { %v6229_v24 = vpop.eup %6228  ;;  %v2512_v6 = vxor.u32 2147483648, %v6227_v33  ;;  %v2796_v62 = vsub.s32 32, %v2795_v14  ;;  %v2800_v42 = vsub.s32 4294967266, %v2795_v14  ;;  %v2675_v59 = vmul.u32 %v2668_v51, %v2659_v4  ;;  %v5988_v51 = vpop.f32.mrf.mxu0 }
 0x21a   :  { %v2509_v49 = vxor.u32 2147483648, %v6229_v24  ;;  %vm2677_vm13 = vc.u32 %v7869_v39, %v7863_v8  ;;  %v2678_v29 = vadd.s32 1, %v7864_v27  ;;  %v2797_v20 = vshll.u32 %v7819_v10, %v2795_v14 }
 0x21b   :  { %v2513_v11 = vsel %vm2511_vm11, %v2512_v6, %v6229_v24  ;;  %v2798_v9 = vshrl.u32 %v2780_v15, %v2796_v62  ;;  %v2801_v57 = vadd.s32 127, %v2800_v42  ;;  %v2942_v12 = vadd.s32 1, %v5478_v18  ;;  %v6038_v6 = vpop.f32.mrf.mxu1 }
 0x21c   :  { %v2510_v22 = vsel %vm2508_vm7, %v6227_v33, %v2509_v49  ;;  %v2679_v25 = vsel %vm2677_vm13, %v2678_v29, %v7864_v27  ;;  %v1936_v63 = vmul.f32 %v7707_v54, %v7874_v46  ;;  %v1543_v27 = vadd.f32 %v5988_v51, %v7116_v5 }
 0x21d   :  { %v2514_v13 = vsel %vm2507_vm9, %v2510_v22, %v2513_v11  ;;  %v2799_v1 = vor.u32 %v2798_v9, %v2797_v20  ;;  %v2802_v50 = vshll.u32 %v2801_v57, 23  ;;  %v2680_v37 = vadd.s32 %v2679_v25, %v2675_v59 }
 0x21e   :  { %v2515_v10 = vsel %vm2504_vm10, nan, %v2514_v13  ;;  %vm2943_vm14 = vcmp.gt.s32.totalorder %v2942_v12, 0  ;;  %v2817_v61 = vadd.s32 3, %v2813_v36  ;;  %v2939_v28 = vand.u32 8388607, %v2932_v21 }
 0x21f   :  { %v5364_v38 = vadd.f32 %v7774_v26, %v2515_v10  ;;  %v2803_v30 = vor.u32 4788187, %v2802_v50  ;;  %v2681_v7 = vadd.s32 536870912, %v2680_v37  ;;  %v2944_v47 = vsel %vm2943_vm14, %v2942_v12, 0  ;;  %v7907_v26 = vld [vmem:[%s10030_s1 + $0xa] ss:$0 sm:$0xff] }
 0x220   :  { %v7900_v43 = vadd.f32 %v7627_v19, %v1936_v63  ;;  %v2806_v33 = vcvt.s32.f32 %v2799_v1  ;;  %v2946_v15 = vand.u32 31, %v2944_v47  ;;  %v7911_v5 = vmul.f32 %v7907_v26, %v7579_v55 }
 0x221   :  { %5396 = vst [vmem:[#allocation2 + $0x20] sm:$0xff] %v5364_v38  ;;  %v2804_v4 = vand.u32 2147483647, %v2803_v30  ;;  %v7902_v3 = vshrl.u32 %v2681_v7, 30  ;;  %v7914_v62 = vand.u32 3, %v2817_v61  ;;  %v2676_v42 = vadd.s32 %v7863_v8, %v7869_v39 }
 0x222   :  { %v2947_v24 = vsub.s32 32, %v2946_v15  ;;  %v2940_v36 = vor.u32 8388608, %v2939_v28  ;;  %v7917_v49 = vadd.f32 %v6038_v6, %v1543_v27  ;;  %v2949_v11 = vshll.u32 %v10175_v53, %v2946_v15 }
 0x223   :  { %v2807_v14 = vmul.f32 %v2806_v33, %v2804_v4  ;;  %v2683_v18 = vshll.u32 %v7902_v3, 30  ;;  %v2831_v20 = vand.u32 2139095040, %v7900_v43  ;;  %v2952_v9 = vshll.u32 %v10176_v48, %v2946_v15 }
 0x224   :  { %v2950_v55 = vshrl.u32 %v10176_v48, %v2947_v24  ;;  %v2953_v57 = vshrl.u32 %v10177_v17, %v2947_v24  ;;  %v2956_v22 = vshrl.u32 %v10178_v23, %v2947_v24  ;;  %v2955_v25 = vshll.u32 %v10177_v17, %v2946_v15 }
 0x225   :  { %v2808_v59 = vxor.u32 2147483648, %v2807_v14  ;;  %v7919_v29 = vsub.s32 %v2680_v37, %v2683_v18  ;;  %v2959_v12 = vshrl.u32 %v10179_v41, %v2947_v24  ;;  %v2945_v51 = vshrl.u32 %v2944_v47, 5 }
 0x226   :  { %v2951_v13 = vor.u32 %v2950_v55, %v2949_v11  ;;  %v2958_v1 = vshll.u32 %v10178_v23, %v2946_v15  ;;  %v2954_v37 = vor.u32 %v2953_v57, %v2952_v9  ;;  %v2957_v10 = vor.u32 %v2956_v22, %v2955_v25 }
 0x227   :  { %v2809_v8 = vsel %vm2726_vm2, %v2808_v59, %v2807_v14  ;;  %v2686_v39 = vsub.s32 0, %v7919_v29  ;;  %v2961_v30 = vshll.u32 %v10179_v41, %v2946_v15  ;;  %v2962_v7 = vshrl.u32 %v10180_v16, %v2947_v24 }
 0x228   :  { %v2812_v63 = vsel %vm7834_vm4, %v7630_v34, %v2809_v8  ;;  %v2960_v38 = vor.u32 %v2959_v12, %v2958_v1  ;;  %v7939_v61 = vshll.u32 %v2940_v36, 8  ;;  %v2828_v56 = vand.u32 2147483647, %v7900_v43 }
 0x229   :  { %6230 = vcosq.f32 %v2812_v63  ;;  %v5467_v50 = vmin.u32 %v2686_v39, %v7919_v29  ;;  %v2832_v28 = vshrl.u32 %v2831_v20, 23  ;;  %v2706_v47 = vsub.s32 4, %v7902_v3 }
 0x22a   :  { %6232 = vsinq.f32 %v2812_v63  ;;  %v2948_v4 = vshrl.u32 %v10175_v53, %v2947_v24  ;;  %v2963_v33 = vor.u32 %v2962_v7, %v2961_v30  ;;  %vm2964_vm15 = vcmp.lt.s32.totalorder %v2945_v51, 1 }
 0x22b   :  { %v2688_v27 = vclz %v5467_v50  ;;  %vm2966_vm0 = vcmp.lt.s32.totalorder %v2945_v51, 3  ;;  %vm2967_vm1 = vcmp.lt.s32.totalorder %v2945_v51, 4  ;;  %v2972_v18 = vsel %vm2964_vm15, %v2951_v13, %v2954_v37 }
 0x22c   :  { %vm2622_vm2 = vcmp.lt.s32.totalorder %v7719_v44, 0  ;;  %v2969_v15 = vsel %vm2967_vm1, %v2957_v10, 2102212464  ;;  %v2973_v6 = vsel %vm2967_vm1, %v2960_v38, 920167782  ;;  %v2976_v59 = vsel %vm2964_vm15, %v2954_v37, %v2957_v10 }
 0x22d   :  { %v5468_v14 = vadd.s32 4294967294, %v2688_v27  ;;  %v2977_v36 = vsel %vm2967_vm1, %v2963_v33, 1326507024  ;;  %vm2965_vm4 = vcmp.lt.s32.totalorder %v2945_v51, 2  ;;  %v2974_v11 = vsel %vm2966_vm0, %v2957_v10, %v2973_v6 }
 0x22e   :  { %v2978_v20 = vsel %vm2966_vm0, %v2960_v38, %v2977_v36  ;;  %v2968_v24 = vsel %vm2964_vm15, %v2948_v4, %v2951_v13  ;;  %v2975_v9 = vsel %vm2965_vm4, %v2972_v18, %v2974_v11  ;;  %vm7951_vm5 = vcmp.le.f32.partialorder %v2620_v52, 0.7853982 }
 0x22f   :  { %vm5469_vm3 = vcmp.lt.s32.totalorder %v5468_v14, 0  ;;  %v2979_v57 = vsel %vm2965_vm4, %v2976_v59, %v2978_v20  ;;  %v2970_v25 = vsel %vm2966_vm0, %v2954_v37, %v2969_v15  ;;  %v5474_v12 = vadd.s32 4294967169, %v2832_v28 }
 0x230   :  { %v2691_v55 = vsel %vm5469_vm3, 0, %v5468_v14  ;;  %v7957_v63 = vmul.u32.u64.low %v7939_v61, %v2979_v57  ;;  %v7958_v1 = vmul.u32.u64.high %v7939_v61, %v2979_v57, %v7957_v63  ;;  %vm2816_vm6 = vweird.f32 %v7630_v34 }
 0x231   :  { %v2692_v8 = vsub.s32 32, %v2691_v55  ;;  %v2696_v39 = vsub.s32 4294967266, %v2691_v55  ;;  %v7961_v13 = vmul.u32.u64.low %v7939_v61, %v2975_v9  ;;  %v7962_v50 = vmul.u32.u64.high %v7939_v61, %v2975_v9, %v7961_v13 }
 0x232   :  { %v2693_v52 = vshll.u32 %v7919_v29, %v2691_v55  ;;  %v2838_v30 = vadd.s32 1, %v5474_v12  ;;  %vm2819_vm7 = vcmp.lt.s32.totalorder %v7914_v62, 2  ;;  %vm2820_vm8 = vcmp.eq.s32.totalorder %v7914_v62, 0 }
 0x233   :  { %v2694_v10 = vshrl.u32 %v2676_v42, %v2692_v8  ;;  %v2697_v38 = vadd.s32 127, %v2696_v39  ;;  %v2971_v37 = vsel %vm2965_vm4, %v2968_v24, %v2970_v25  ;;  %v1939_v7 = vmul.f32 %v7707_v54, %v7917_v49 }
 0x234   :  { %vm2823_vm9 = vcmp.eq.s32.totalorder %v7914_v62, 2  ;;  %vm2839_vm10 = vcmp.gt.s32.totalorder %v2838_v30, 0  ;;  %vm2989_vm11 = vc.u32 %v7958_v1, %v7961_v13  ;;  %v2990_v42 = vadd.s32 1, %v7962_v50 }
 0x235   :  { %v2695_v27 = vor.u32 %v2694_v10, %v2693_v52  ;;  %v2698_v28 = vshll.u32 %v2697_v38, 23  ;;  %v2835_v29 = vand.u32 8388607, %v2828_v56  ;;  %v2840_v33 = vsel %vm2839_vm10, %v2838_v30, 0 }
 0x236   :  { %v6231_v4 = vpop.eup %6230  ;;  %v2707_v15 = vsel %vm2622_vm2, %v2706_v47, %v7902_v3  ;;  %v2987_v6 = vmul.u32 %v7939_v61, %v2971_v37  ;;  %v2991_v36 = vsel %vm2989_vm11, %v2990_v42, %v7962_v50  ;;  %v2842_v11 = vand.u32 31, %v2840_v33 }
 0x237   :  { %v6233_v51 = vpop.eup %6232  ;;  %v2824_v14 = vxor.u32 2147483648, %v6231_v4  ;;  %v2699_v18 = vor.u32 4788187, %v2698_v28  ;;  %v7984_v20 = vadd.f32 %v7627_v19, %v1939_v7  ;;  %v2702_v9 = vcvt.s32.f32 %v2695_v27 }
 0x238   :  { %v2821_v59 = vxor.u32 2147483648, %v6233_v51  ;;  %v2992_v57 = vadd.s32 %v2991_v36, %v2987_v6  ;;  %v2709_v3 = vsel %vm7951_vm5, 0, %v2707_v15  ;;  %v2836_v61 = vor.u32 8388608, %v2835_v29 }
 0x239   :  { %v2825_v55 = vsel %vm2823_vm9, %v2824_v14, %v6233_v51  ;;  %v2700_v24 = vand.u32 2147483647, %v2699_v18  ;;  %v2843_v47 = vsub.s32 32, %v2842_v11  ;;  %v2845_v12 = vshll.u32 %v10175_v53, %v2842_v11 }
 0x23a   :  { %v2822_v8 = vsel %vm2820_vm8, %v6231_v4, %v2821_v59  ;;  %v2993_v19 = vadd.s32 536870912, %v2992_v57  ;;  %v2848_v52 = vshll.u32 %v10176_v48, %v2842_v11  ;;  %v2841_v7 = vshrl.u32 %v2840_v33, 5 }
 0x23b   :  { %v2826_v39 = vsel %vm2819_vm7, %v2822_v8, %v2825_v55  ;;  %v2703_v25 = vmul.f32 %v2702_v9, %v2700_v24  ;;  %v2846_v50 = vshrl.u32 %v10176_v48, %v2843_v47  ;;  %v2849_v10 = vshrl.u32 %v10177_v17, %v2843_v47 }
 0x23c   :  { %v2827_v63 = vsel %vm2816_vm6, nan, %v2826_v39  ;;  %v8001_v37 = vshrl.u32 %v2993_v19, 30  ;;  %v2852_v62 = vshrl.u32 %v10178_v23, %v2843_v47  ;;  %v2851_v27 = vshll.u32 %v10177_v17, %v2842_v11 }
 0x23d   :  { %v5367_v38 = vadd.f32 %v7911_v5, %v2827_v63  ;;  %v2704_v30 = vxor.u32 2147483648, %v2703_v25  ;;  %v2854_v28 = vshll.u32 %v10178_v23, %v2842_v11  ;;  %v2855_v34 = vshrl.u32 %v10179_v41, %v2843_v47 }
 0x23e   :  { %v2995_v42 = vshll.u32 %v8001_v37, 30  ;;  %v2847_v29 = vor.u32 %v2846_v50, %v2845_v12  ;;  %v2850_v5 = vor.u32 %v2849_v10, %v2848_v52  ;;  %v2857_v33 = vshll.u32 %v10179_v41, %v2842_v11 }
 0x23f   :  { %5399 = vst [vmem:[#allocation2 + $0x38] sm:$0xff] %v5367_v38  ;;  %v2705_v4 = vsel %vm2622_vm2, %v2704_v30, %v2703_v25  ;;  %v2856_v14 = vor.u32 %v2855_v34, %v2854_v28  ;;  %v2858_v18 = vshrl.u32 %v10180_v16, %v2843_v47  ;;  %v8017_v15 = vmul.f32 %v7907_v26, %v7695_v32 }
 0x240   :  { %v2708_v51 = vsel %vm7951_vm5, %v7719_v44, %v2705_v4  ;;  %v8019_v6 = vsub.s32 %v2992_v57, %v2995_v42  ;;  %v2853_v59 = vor.u32 %v2852_v62, %v2851_v27  ;;  %v2713_v36 = vadd.s32 3, %v2709_v3 }
 0x241   :  { %6234 = vcosq.f32 %v2708_v51  ;;  %v2859_v55 = vor.u32 %v2858_v18, %v2857_v33  ;;  %v3143_v24 = vand.u32 2139095040, %v7984_v20  ;;  %vm2860_vm12 = vcmp.lt.s32.totalorder %v2841_v7, 1 }
 0x242   :  { %6236 = vsinq.f32 %v2708_v51  ;;  %v2998_v22 = vsub.s32 0, %v8019_v6  ;;  %vm2863_vm13 = vcmp.lt.s32.totalorder %v2841_v7, 4  ;;  %v2876_v11 = vshll.u32 %v2836_v61, 8 }
 0x243   :  { %v2844_v9 = vshrl.u32 %v10175_v53, %v2843_v47  ;;  %vm2862_vm14 = vcmp.lt.s32.totalorder %v2841_v7, 3  ;;  %v2868_v8 = vsel %vm2860_vm12, %v2847_v29, %v2850_v5  ;;  %v2869_v32 = vsel %vm2863_vm13, %v2856_v14, 920167782 }
 0x244   :  { %v5479_v57 = vmin.u32 %v2998_v22, %v8019_v6  ;;  %vm2861_vm15 = vcmp.lt.s32.totalorder %v2841_v7, 2  ;;  %v2865_v39 = vsel %vm2863_vm13, %v2853_v59, 2102212464  ;;  %v2870_v3 = vsel %vm2862_vm14, %v2853_v59, %v2869_v32 }
 0x245   :  { %v2871_v25 = vsel %vm2861_vm15, %v2868_v8, %v2870_v3  ;;  %v2872_v19 = vsel %vm2860_vm12, %v2850_v5, %v2853_v59  ;;  %v2873_v12 = vsel %vm2863_vm13, %v2859_v55, 1326507024  ;;  %v3144_v63 = vshrl.u32 %v3143_v24, 23  ;;  %v1536_v24 = vpop.f32.mrf.mxu0 }
 0x246   :  { %v2714_v50 = vand.u32 3, %v2713_v36  ;;  %v3000_v61 = vclz %v5479_v57  ;;  %v8031_v47 = vmul.f32 %v7907_v26, %v7783_v45  ;;  %v2864_v52 = vsel %vm2860_vm12, %v2844_v9, %v2847_v29 }
 0x247   :  { %v2866_v10 = vsel %vm2862_vm14, %v2850_v5, %v2865_v39  ;;  %v2874_v38 = vsel %vm2862_vm14, %v2856_v14, %v2873_v12  ;;  %v8036_v30 = vmul.u32.u64.low %v2876_v11, %v2871_v25  ;;  %v8037_v62 = vmul.u32.u64.high %v2876_v11, %v2871_v25, %v8036_v30 }
 0x248   :  { %v5480_v27 = vadd.s32 4294967294, %v3000_v61  ;;  %v3018_v28 = vsub.s32 4, %v8001_v37  ;;  %v2875_v34 = vsel %vm2861_vm15, %v2872_v19, %v2874_v38  ;;  %v5486_v4 = vadd.s32 4294967169, %v3144_v63 }
 0x249   :  { %vm8044_vm0 = vcmp.le.f32.partialorder %v2932_v21, 0.7853982  ;;  %vm2934_vm1 = vcmp.lt.s32.totalorder %v7828_v2, 0  ;;  %v8049_v42 = vmul.u32.u64.low %v2876_v11, %v2875_v34  ;;  %v8050_v29 = vmul.u32.u64.high %v2876_v11, %v2875_v34, %v8049_v42 }
 0x24a   :  { %vm2712_vm2 = vweird.f32 %v7719_v44  ;;  %vm2719_vm3 = vcmp.eq.s32.totalorder %v2714_v50, 2  ;;  %vm5481_vm4 = vcmp.lt.s32.totalorder %v5480_v27, 0  ;;  %v2867_v5 = vsel %vm2861_vm15, %v2864_v52, %v2866_v10 }
 0x24b   :  { %v3150_v51 = vadd.s32 1, %v5486_v4  ;;  %v2988_v14 = vadd.s32 %v7961_v13, %v7958_v1  ;;  %v3003_v33 = vsel %vm5481_vm4, 0, %v5480_v27  ;;  %v2886_v21 = vadd.s32 1, %v8037_v62 }
 0x24c   :  { %v3140_v18 = vand.u32 2147483647, %v7984_v20  ;;  %v3004_v59 = vsub.s32 32, %v3003_v33  ;;  %v3008_v36 = vsub.s32 4294967266, %v3003_v33  ;;  %v3019_v55 = vsel %vm2934_vm1, %v3018_v28, %v8001_v37  ;;  %v1794_v28 = vpop.f32.mrf.mxu1 }
 0x24d   :  { %vm3151_vm5 = vcmp.gt.s32.totalorder %v3150_v51, 0  ;;  %v3005_v7 = vshll.u32 %v8019_v6, %v3003_v33  ;;  %v2883_v9 = vmul.u32 %v2876_v11, %v2867_v5  ;;  %vm2885_vm6 = vc.u32 %v8050_v29, %v8036_v30 }
 0x24e   :  { %v6235_v22 = vpop.eup %6234  ;;  %v3152_v1 = vsel %vm3151_vm5, %v3150_v51, 0  ;;  %v3006_v32 = vshrl.u32 %v2988_v14, %v3004_v59  ;;  %v3009_v57 = vadd.s32 127, %v3008_v36  ;;  %v2887_v39 = vsel %vm2885_vm6, %v2886_v21, %v8037_v62 }
 0x24f   :  { %v6237_v13 = vpop.eup %6236  ;;  %v2720_v8 = vxor.u32 2147483648, %v6235_v22  ;;  %v2888_v25 = vadd.s32 %v2887_v39, %v2883_v9  ;;  %v3154_v19 = vand.u32 31, %v3152_v1  ;;  %v1537_v37 = vadd.f32 %v1536_v24, %v7119_v0 }
 0x250   :  { %v2717_v3 = vxor.u32 2147483648, %v6237_v13  ;;  %vm2716_vm7 = vcmp.eq.s32.totalorder %v2714_v50, 0  ;;  %v3007_v6 = vor.u32 %v3006_v32, %v3005_v7  ;;  %v3010_v11 = vshll.u32 %v3009_v57, 23 }
 0x251   :  { %v2721_v12 = vsel %vm2719_vm3, %v2720_v8, %v6237_v13  ;;  %vm2715_vm8 = vcmp.lt.s32.totalorder %v2714_v50, 2  ;;  %v2889_v61 = vadd.s32 536870912, %v2888_v25  ;;  %v3155_v52 = vsub.s32 32, %v3154_v19 }
 0x252   :  { %v2718_v63 = vsel %vm2716_vm7, %v6235_v22, %v2717_v3  ;;  %v3011_v38 = vor.u32 4788187, %v3010_v11  ;;  %v3021_v27 = vsel %vm8044_vm0, 0, %v3019_v55  ;;  %v3147_v62 = vand.u32 8388607, %v3140_v18 }
 0x253   :  { %v2722_v10 = vsel %vm2715_vm8, %v2718_v63, %v2721_v12  ;;  %v8073_v34 = vshrl.u32 %v2889_v61, 30  ;;  %v3158_v4 = vshrl.u32 %v10176_v48, %v3155_v52  ;;  %v8076_v50 = vadd.f32 %v1794_v28, %v1537_v37 }
 0x254   :  { %v2723_v0 = vsel %vm2712_vm2, nan, %v2722_v10  ;;  %v3012_v5 = vand.u32 2147483647, %v3011_v38  ;;  %v3014_v51 = vcvt.s32.f32 %v3007_v6  ;;  %v3161_v14 = vshrl.u32 %v10177_v17, %v3155_v52 }
 0x255   :  { %v5366_v42 = vadd.f32 %v8017_v15, %v2723_v0  ;;  %v2891_v33 = vshll.u32 %v8073_v34, 30  ;;  %v8081_v21 = vshrl.u32 %v3152_v1, 5  ;;  %v3157_v59 = vshll.u32 %v10175_v53, %v3154_v19  ;;  %v5991_v1 = vpop.f32.mrf.mxu0 }
 0x256   :  { %v3164_v44 = vshrl.u32 %v10178_v23, %v3155_v52  ;;  %v3015_v36 = vmul.f32 %v3014_v51, %v3012_v5  ;;  %v3160_v55 = vshll.u32 %v10176_v48, %v3154_v19  ;;  %v3166_v24 = vshll.u32 %v10178_v23, %v3154_v19 }
 0x257   :  { %5398 = vst [vmem:[#allocation2 + $0x30] sm:$0xff] %v5366_v42  ;;  %v3167_v15 = vshrl.u32 %v10179_v41, %v3155_v52  ;;  %v3025_v22 = vadd.s32 3, %v3021_v27  ;;  %v8088_v7 = vsub.s32 %v2888_v25, %v2891_v33  ;;  %v3159_v9 = vor.u32 %v3158_v4, %v3157_v59 }
 0x258   :  { %v3163_v13 = vshll.u32 %v10177_v17, %v3154_v19  ;;  %v3016_v8 = vxor.u32 2147483648, %v3015_v36  ;;  %v3162_v32 = vor.u32 %v3161_v14, %v3160_v55  ;;  %v3170_v39 = vshrl.u32 %v10180_v16, %v3155_v52  ;;  %v8132_v55 = vld [vmem:[%s10030_s1 + $0x9] ss:$0 sm:$0xff] }
 0x259   :  { %v3168_v57 = vor.u32 %v3167_v15, %v3166_v24  ;;  %v2894_v3 = vsub.s32 0, %v8088_v7  ;;  %v3148_v37 = vor.u32 8388608, %v3147_v62  ;;  %v3169_v6 = vshll.u32 %v10179_v41, %v3154_v19  ;;  %v6041_v15 = vpop.f32.mrf.mxu1 }
 0x25a   :  { %v3165_v12 = vor.u32 %v3164_v44, %v3163_v13  ;;  %v3017_v11 = vsel %vm2934_vm1, %v3016_v8, %v3015_v36  ;;  %vm3172_vm9 = vcmp.lt.s32.totalorder %v8081_v21, 1  ;;  %v1938_v25 = vmul.f32 %v7707_v54, %v8076_v50 }
 0x25b   :  { %v1555_v63 = vadd.f32 %v5991_v1, %v7122_v35  ;;  %v3020_v61 = vsel %vm8044_vm0, %v7828_v2, %v3017_v11  ;;  %v5475_v10 = vmin.u32 %v2894_v3, %v8088_v7  ;;  %v3171_v38 = vor.u32 %v3170_v39, %v3169_v6 }
 0x25c   :  { %vm3175_vm10 = vcmp.lt.s32.totalorder %v8081_v21, 4  ;;  %6238 = vcosq.f32 %v3020_v61  ;;  %v3156_v19 = vshrl.u32 %v10175_v53, %v3155_v52  ;;  %v3180_v27 = vsel %vm3172_vm9, %v3159_v9, %v3162_v32 }
 0x25d   :  { %v3181_v54 = vsel %vm3175_vm10, %v3168_v57, 920167782  ;;  %6240 = vsinq.f32 %v3020_v61  ;;  %v2896_v35 = vclz %v5475_v10  ;;  %vm3174_vm11 = vcmp.lt.s32.totalorder %v8081_v21, 3 }
 0x25e   :  { %v3177_v45 = vsel %vm3175_vm10, %v3165_v12, 2102212464  ;;  %vm3173_vm12 = vcmp.lt.s32.totalorder %v8081_v21, 2  ;;  %v3182_v62 = vsel %vm3174_vm11, %v3165_v12, %v3181_v54  ;;  %v3184_v28 = vsel %vm3172_vm9, %v3162_v32, %v3165_v12 }
 0x25f   :  { %v3188_v52 = vshll.u32 %v3148_v37, 8  ;;  %v5476_v0 = vadd.s32 4294967294, %v2896_v35  ;;  %v3176_v4 = vsel %vm3172_vm9, %v3156_v19, %v3159_v9  ;;  %v3183_v42 = vsel %vm3173_vm12, %v3180_v27, %v3182_v62 }
 0x260   :  { %v3185_v5 = vsel %vm3175_vm10, %v3171_v38, 1326507024  ;;  %v3178_v51 = vsel %vm3174_vm11, %v3162_v32, %v3177_v45  ;;  %v2914_v44 = vsub.s32 4, %v8073_v34  ;;  %v8135_v24 = vadd.f32 %v8132_v55, %v1938_v25 }
 0x261   :  { %v3186_v14 = vsel %vm3174_vm11, %v3168_v57, %v3185_v5  ;;  %v8122_v33 = vmul.u32.u64.low %v3188_v52, %v3183_v42  ;;  %v8123_v59 = vmul.u32.u64.high %v3188_v52, %v3183_v42, %v8122_v33  ;;  %vm5477_vm13 = vcmp.lt.s32.totalorder %v5476_v0, 0 }
 0x262   :  { %v3187_v36 = vsel %vm3173_vm12, %v3184_v28, %v3186_v14  ;;  %v2899_v9 = vsel %vm5477_vm13, 0, %v5476_v0  ;;  %v8140_v8 = vadd.f32 %v6041_v15, %v1555_v63  ;;  %v2884_v32 = vadd.s32 %v8036_v30, %v8050_v29 }
 0x263   :  { %v8137_v13 = vmul.u32.u64.low %v3188_v52, %v3187_v36  ;;  %v8138_v1 = vmul.u32.u64.high %v3188_v52, %v3187_v36, %v8137_v13  ;;  %v2900_v57 = vsub.s32 32, %v2899_v9  ;;  %v2904_v39 = vsub.s32 4294967266, %v2899_v9 }
 0x264   :  { %v3179_v3 = vsel %vm3173_vm12, %v3176_v4, %v3178_v51  ;;  %v3026_v37 = vand.u32 3, %v3025_v22  ;;  %vm2830_vm14 = vcmp.lt.s32.totalorder %v7900_v43, 0  ;;  %v3198_v12 = vadd.s32 1, %v8123_v59  ;;  %v8158_v22 = vld [vmem:[%s10030_s1 + $0x8] ss:$0 sm:$0xff] }
 0x265   :  { %v3039_v6 = vand.u32 2139095040, %v8135_v24  ;;  %v2901_v11 = vshll.u32 %v8088_v7, %v2899_v9  ;;  %v2902_v25 = vshrl.u32 %v2884_v32, %v2900_v57  ;;  %v2905_v63 = vadd.s32 127, %v2904_v39  ;;  %v1548_v57 = vpop.f32.mrf.mxu0 }
 0x266   :  { %v2915_v30 = vsel %vm2830_vm14, %v2914_v44, %v8073_v34  ;;  %v3195_v29 = vmul.u32 %v3188_v52, %v3179_v3  ;;  %vm3197_vm15 = vc.u32 %v8138_v1, %v8122_v33  ;;  %v1941_v61 = vmul.f32 %v8158_v22, %v8140_v8 }
 0x267   :  { %v3040_v21 = vshrl.u32 %v3039_v6, 23  ;;  %vm8164_vm0 = vcmp.le.f32.partialorder %v2828_v56, 0.7853982  ;;  %v2903_v34 = vor.u32 %v2902_v25, %v2901_v11  ;;  %v2906_v10 = vshll.u32 %v2905_v63, 23 }
 0x268   :  { %v3199_v38 = vsel %vm3197_vm15, %v3198_v12, %v8123_v59  ;;  %v2917_v19 = vsel %vm8164_vm0, 0, %v2915_v30  ;;  %v3036_v54 = vand.u32 2147483647, %v8135_v24  ;;  %vm3027_vm1 = vcmp.lt.s32.totalorder %v3026_v37, 2 }
 0x269   :  { %v3200_v27 = vadd.s32 %v3199_v38, %v3195_v29  ;;  %v5482_v35 = vadd.s32 4294967169, %v3040_v21  ;;  %v6239_v45 = vpop.eup %6238  ;;  %vm3028_vm2 = vcmp.eq.s32.totalorder %v3026_v37, 0  ;;  %v2907_v62 = vor.u32 4788187, %v2906_v10 }
 0x26a   :  { %v8173_v56 = vadd.f32 %v8132_v55, %v1941_v61  ;;  %v6241_v28 = vpop.eup %6240  ;;  %vm3031_vm3 = vcmp.eq.s32.totalorder %v3026_v37, 2  ;;  %v3032_v52 = vxor.u32 2147483648, %v6239_v45  ;;  %v2910_v51 = vcvt.s32.f32 %v2903_v34 }
 0x26b   :  { %v3201_v0 = vadd.s32 536870912, %v3200_v27  ;;  %v3046_v4 = vadd.s32 1, %v5482_v35  ;;  %v3029_v42 = vxor.u32 2147483648, %v6241_v28  ;;  %v2908_v5 = vand.u32 2147483647, %v2907_v62 }
 0x26c   :  { %v2921_v14 = vadd.s32 3, %v2917_v19  ;;  %v3033_v59 = vsel %vm3031_vm3, %v3032_v52, %v6241_v28  ;;  %v3043_v36 = vand.u32 8388607, %v3036_v54  ;;  %v3351_v32 = vand.u32 2139095040, %v8173_v56 }
 0x26d   :  { %v3202_v44 = vshrl.u32 %v3201_v0, 30  ;;  %vm3047_vm4 = vcmp.gt.s32.totalorder %v3046_v4, 0  ;;  %v3030_v15 = vsel %vm3028_vm2, %v6239_v45, %v3029_v42  ;;  %v2911_v9 = vmul.f32 %v2910_v51, %v2908_v5 }
 0x26e   :  { %v3048_v13 = vsel %vm3047_vm4, %v3046_v4, 0  ;;  %vm3024_vm5 = vweird.f32 %v7828_v2  ;;  %v3034_v39 = vsel %vm3027_vm1, %v3030_v15, %v3033_v59  ;;  %v8183_v3 = vmul.f32 %v7907_v26, %v7874_v46 }
 0x26f   :  { %v3203_v12 = vshll.u32 %v3202_v44, 30  ;;  %v3035_v6 = vsel %vm3024_vm5, nan, %v3034_v39  ;;  %v2912_v11 = vxor.u32 2147483648, %v2911_v9  ;;  %vm3142_vm6 = vcmp.lt.s32.totalorder %v7984_v20, 0 }
 0x270   :  { %v3050_v25 = vand.u32 31, %v3048_v13  ;;  %v5369_v63 = vadd.f32 %v8031_v47, %v3035_v6  ;;  %v8187_v30 = vand.u32 3, %v2921_v14  ;;  %v8192_v2 = vadd.f32 %v1548_v57, %v7125_v40 }
 0x271   :  { %v8189_v29 = vsub.s32 %v3200_v27, %v3203_v12  ;;  %v2913_v37 = vsel %vm2830_vm14, %v2912_v11, %v2911_v9  ;;  %v3044_v46 = vor.u32 8388608, %v3043_v36  ;;  %v3352_v61 = vshrl.u32 %v3351_v32, 23 }
 0x272   :  { %v3051_v21 = vsub.s32 32, %v3050_v25  ;;  %5401 = vst [vmem:[#allocation2 + $0x48] sm:$0xff] %v5369_v63  ;;  %v2916_v34 = vsel %vm8164_vm0, %v7900_v43, %v2913_v37  ;;  %v3196_v47 = vadd.s32 %v8122_v33, %v8138_v1  ;;  %v3226_v38 = vsub.s32 4, %v3202_v44 }
 0x273   :  { %v3206_v10 = vsub.s32 0, %v8189_v29  ;;  %6242 = vcosq.f32 %v2916_v34  ;;  %v3049_v40 = vshrl.u32 %v3048_v13, 5  ;;  %v3053_v45 = vshll.u32 %v10175_v53, %v3050_v25 }
 0x274   :  { %v3054_v19 = vshrl.u32 %v10176_v48, %v3051_v21  ;;  %v3057_v27 = vshrl.u32 %v10177_v17, %v3051_v21  ;;  %6244 = vsinq.f32 %v2916_v34  ;;  %v3056_v7 = vshll.u32 %v10176_v48, %v3050_v25 }
 0x275   :  { %v5487_v35 = vmin.u32 %v3206_v10, %v8189_v29  ;;  %v3059_v62 = vshll.u32 %v10177_v17, %v3050_v25  ;;  %v3060_v33 = vshrl.u32 %v10178_v23, %v3051_v21  ;;  %v8209_v1 = vshll.u32 %v3044_v46, 8 }
 0x276   :  { %v5494_v28 = vadd.s32 4294967169, %v3352_v61  ;;  %v3055_v0 = vor.u32 %v3054_v19, %v3053_v45  ;;  %v3058_v4 = vor.u32 %v3057_v27, %v3056_v7  ;;  %v3062_v42 = vshll.u32 %v10178_v23, %v3050_v25 }
 0x277   :  { %v3208_v52 = vclz %v5487_v35  ;;  %v3061_v5 = vor.u32 %v3060_v33, %v3059_v62  ;;  %v3063_v51 = vshrl.u32 %v10179_v41, %v3051_v21  ;;  %v3065_v14 = vshll.u32 %v10179_v41, %v3050_v25 }
 0x278   :  { %v3066_v59 = vshrl.u32 %v10180_v16, %v3051_v21  ;;  %v3227_v15 = vsel %vm3142_vm6, %v3226_v38, %v3202_v44  ;;  %v3052_v9 = vshrl.u32 %v10175_v53, %v3051_v21  ;;  %vm3068_vm7 = vcmp.lt.s32.totalorder %v3049_v40, 1 }
 0x279   :  { %v5488_v36 = vadd.s32 4294967294, %v3208_v52  ;;  %vm8220_vm8 = vcmp.le.f32.partialorder %v3140_v18, 0.7853982  ;;  %v3064_v32 = vor.u32 %v3063_v51, %v3062_v42  ;;  %vm3069_vm9 = vcmp.lt.s32.totalorder %v3049_v40, 2 }
 0x27a   :  { %v3067_v57 = vor.u32 %v3066_v59, %v3065_v14  ;;  %vm3071_vm10 = vcmp.lt.s32.totalorder %v3049_v40, 4  ;;  %vm3070_vm12 = vcmp.lt.s32.totalorder %v3049_v40, 3  ;;  %v3076_v12 = vsel %vm3068_vm7, %v3055_v0, %v3058_v4 }
 0x27b   :  { %vm5489_vm11 = vcmp.lt.s32.totalorder %v5488_v36, 0  ;;  %v3073_v39 = vsel %vm3071_vm10, %v3061_v5, 2102212464  ;;  %v3077_v44 = vsel %vm3071_vm10, %v3064_v32, 920167782  ;;  %v3080_v11 = vsel %vm3068_vm7, %v3058_v4, %v3061_v5 }
 0x27c   :  { %v3211_v6 = vsel %vm5489_vm11, 0, %v5488_v36  ;;  %v3081_v25 = vsel %vm3071_vm10, %v3067_v57, 1326507024  ;;  %vm2923_vm13 = vcmp.lt.s32.totalorder %v8187_v30, 2  ;;  %v3072_v37 = vsel %vm3068_vm7, %v3052_v9, %v3055_v0 }
 0x27d   :  { %v3212_v18 = vsub.s32 32, %v3211_v6  ;;  %v3216_v63 = vsub.s32 4294967266, %v3211_v6  ;;  %v3078_v46 = vsel %vm3070_vm12, %v3061_v5, %v3077_v44  ;;  %vm2920_vm14 = vweird.f32 %v7900_v43 }
 0x27e   :  { %v3213_v21 = vshll.u32 %v8189_v29, %v3211_v6  ;;  %v3074_v61 = vsel %vm3070_vm12, %v3058_v4, %v3073_v39  ;;  %v3079_v34 = vsel %vm3069_vm9, %v3076_v12, %v3078_v46  ;;  %v3082_v10 = vsel %vm3070_vm12, %v3064_v32, %v3081_v25  ;;  %v1806_v6 = vpop.f32.mrf.mxu1 }
 0x27f   :  { %v3214_v38 = vshrl.u32 %v3196_v47, %v3212_v18  ;;  %v3217_v19 = vadd.s32 127, %v3216_v63  ;;  %v3083_v27 = vsel %vm3069_vm9, %v3080_v11, %v3082_v10  ;;  %v3358_v35 = vadd.s32 1, %v5494_v28 }
 0x280   :  { %v8236_v45 = vmul.u32.u64.low %v8209_v1, %v3083_v27  ;;  %v8237_v7 = vmul.u32.u64.high %v8209_v1, %v3083_v27, %v8236_v45  ;;  %v8240_v62 = vmul.u32.u64.low %v8209_v1, %v3079_v34  ;;  %v8241_v33 = vmul.u32.u64.high %v8209_v1, %v3079_v34, %v8240_v62  ;;  %v6243_v29 = vpop.eup %6242 }
 0x281   :  { %v3215_v52 = vor.u32 %v3214_v38, %v3213_v21  ;;  %v3218_v0 = vshll.u32 %v3217_v19, 23  ;;  %v3075_v4 = vsel %vm3069_vm9, %v3072_v37, %v3074_v61  ;;  %vm3359_vm15 = vcmp.gt.s32.totalorder %v3358_v35, 0  ;;  %v6245_v47 = vpop.eup %6244 }
 0x282   :  { %vm2924_vm0 = vcmp.eq.s32.totalorder %v8187_v30, 0  ;;  %vm2927_vm1 = vcmp.eq.s32.totalorder %v8187_v30, 2  ;;  %v2928_v28 = vxor.u32 2147483648, %v6243_v29  ;;  %v3360_v42 = vsel %vm3359_vm15, %v3358_v35, 0 }
 0x283   :  { %v2925_v5 = vxor.u32 2147483648, %v6245_v47  ;;  %v3219_v51 = vor.u32 4788187, %v3218_v0  ;;  %v3229_v14 = vsel %vm8220_vm8, 0, %v3227_v15  ;;  %v3348_v59 = vand.u32 2147483647, %v8173_v56 }
 0x284   :  { %v2929_v36 = vsel %vm2927_vm1, %v2928_v28, %v6245_v47  ;;  %v3091_v9 = vmul.u32 %v8209_v1, %v3075_v4  ;;  %vm3093_vm2 = vc.u32 %v8237_v7, %v8240_v62  ;;  %v3094_v40 = vadd.s32 1, %v8241_v33 }
 0x285   :  { %v2926_v32 = vsel %vm2924_vm0, %v6243_v29, %v2925_v5  ;;  %v3220_v57 = vand.u32 2147483647, %v3219_v51  ;;  %v3222_v39 = vcvt.s32.f32 %v3215_v52  ;;  %v3362_v12 = vand.u32 31, %v3360_v42 }
 0x286   :  { %v2930_v44 = vsel %vm2923_vm13, %v2926_v32, %v2929_v36  ;;  %v3233_v11 = vadd.s32 3, %v3229_v14  ;;  %v3095_v15 = vsel %vm3093_vm2, %v3094_v40, %v8241_v33  ;;  %v8258_v25 = vadd.f32 %v1806_v6, %v8192_v2 }
 0x287   :  { %v2931_v1 = vsel %vm2920_vm14, nan, %v2930_v44  ;;  %v3223_v18 = vmul.f32 %v3222_v39, %v3220_v57  ;;  %v3096_v63 = vadd.s32 %v3095_v15, %v3091_v9  ;;  %v3363_v37 = vsub.s32 32, %v3362_v12 }
 0x288   :  { %v5368_v46 = vadd.f32 %v8183_v3, %v2931_v1  ;;  %v3355_v21 = vand.u32 8388607, %v3348_v59  ;;  %v8265_v61 = vshrl.u32 %v3360_v42, 5  ;;  %v3365_v30 = vshll.u32 %v10175_v53, %v3362_v12 }
 0x289   :  { %v3224_v34 = vxor.u32 2147483648, %v3223_v18  ;;  %v3097_v10 = vadd.s32 536870912, %v3096_v63  ;;  %v3366_v2 = vshrl.u32 %v10176_v48, %v3363_v37  ;;  %v3368_v38 = vshll.u32 %v10176_v48, %v3362_v12 }
 0x28a   :  { %5400 = vst [vmem:[#allocation2 + $0x40] sm:$0xff] %v5368_v46  ;;  %v3369_v43 = vshrl.u32 %v10177_v17, %v3363_v37  ;;  %v3372_v19 = vshrl.u32 %v10178_v23, %v3363_v37  ;;  %v3374_v3 = vshll.u32 %v10178_v23, %v3362_v12  ;;  %v3375_v27 = vshrl.u32 %v10179_v41, %v3363_v37 }
 0x28b   :  { %v3225_v35 = vsel %vm3142_vm6, %v3224_v34, %v3223_v18  ;;  %v3098_v45 = vshrl.u32 %v3097_v10, 30  ;;  %v3367_v33 = vor.u32 %v3366_v2, %v3365_v30  ;;  %v3371_v29 = vshll.u32 %v10177_v17, %v3362_v12 }
 0x28c   :  { %v3228_v52 = vsel %vm8220_vm8, %v7984_v20, %v3225_v35  ;;  %v3370_v0 = vor.u32 %v3369_v43, %v3368_v38  ;;  %v3376_v4 = vor.u32 %v3375_v27, %v3374_v3  ;;  %v3377_v47 = vshll.u32 %v10179_v41, %v3362_v12  ;;  %v5994_v38 = vpop.f32.mrf.mxu0 }
 0x28d   :  { %6246 = vcosq.f32 %v3228_v52  ;;  %v3099_v28 = vshll.u32 %v3098_v45, 30  ;;  %v3373_v42 = vor.u32 %v3372_v19, %v3371_v29  ;;  %v3378_v5 = vshrl.u32 %v10180_v16, %v3363_v37 }
 0x28e   :  { %6248 = vsinq.f32 %v3228_v52  ;;  %v3356_v51 = vor.u32 8388608, %v3355_v21  ;;  %vm3380_vm3 = vcmp.lt.s32.totalorder %v8265_v61, 1  ;;  %v1940_v14 = vmul.f32 %v8158_v22, %v8258_v25 }
 0x28f   :  { %v8285_v36 = vsub.s32 %v3096_v63, %v3099_v28  ;;  %v3379_v13 = vor.u32 %v3378_v5, %v3377_v47  ;;  %vm3383_vm4 = vcmp.lt.s32.totalorder %v8265_v61, 4  ;;  %v3388_v9 = vsel %vm3380_vm3, %v3367_v33, %v3370_v0  ;;  %v6044_v47 = vpop.f32.mrf.mxu1 }
 0x290   :  { %v8290_v40 = vand.u32 3, %v3233_v11  ;;  %vm3381_vm5 = vcmp.lt.s32.totalorder %v8265_v61, 2  ;;  %vm3382_vm6 = vcmp.lt.s32.totalorder %v8265_v61, 3  ;;  %v3389_v32 = vsel %vm3383_vm4, %v3376_v4, 920167782 }
 0x291   :  { %v3102_v57 = vsub.s32 0, %v8285_v36  ;;  %v3122_v39 = vsub.s32 4, %v3098_v45  ;;  %v3390_v12 = vsel %vm3382_vm6, %v3373_v42, %v3389_v32  ;;  %v3392_v6 = vsel %vm3380_vm3, %v3370_v0, %v3373_v42 }
 0x292   :  { %v3385_v44 = vsel %vm3383_vm4, %v3373_v42, 2102212464  ;;  %v3391_v15 = vsel %vm3381_vm5, %v3388_v9, %v3390_v12  ;;  %v3393_v11 = vsel %vm3383_vm4, %v3379_v13, 1326507024  ;;  %v3396_v1 = vshll.u32 %v3356_v51, 8 }
 0x293   :  { %v5483_v18 = vmin.u32 %v3102_v57, %v8285_v36  ;;  %v3364_v63 = vshrl.u32 %v10175_v53, %v3363_v37  ;;  %v3394_v46 = vsel %vm3382_vm6, %v3376_v4, %v3393_v11  ;;  %v8306_v21 = vadd.f32 %v8132_v55, %v1940_v14 }
 0x294   :  { %v5339_v30 = vmul.f32 %v7907_v26, %v7917_v49  ;;  %v3395_v34 = vsel %vm3381_vm5, %v3392_v6, %v3394_v46  ;;  %v8312_v10 = vmul.u32.u64.low %v3396_v1, %v3391_v15  ;;  %v8313_v2 = vmul.u32.u64.high %v3396_v1, %v3391_v15, %v8312_v10 }
 0x295   :  { %vm3038_vm7 = vcmp.lt.s32.totalorder %v8135_v24, 0  ;;  %v3104_v37 = vclz %v5483_v18  ;;  %v3384_v43 = vsel %vm3380_vm3, %v3364_v63, %v3367_v33  ;;  %v3386_v19 = vsel %vm3382_vm6, %v3370_v0, %v3385_v44 }
 0x296   :  { %vm8323_vm8 = vcmp.le.f32.partialorder %v3036_v54, 0.7853982  ;;  %v3123_v49 = vsel %vm3038_vm7, %v3122_v39, %v3098_v45  ;;  %v8329_v3 = vmul.u32.u64.low %v3396_v1, %v3395_v34  ;;  %v8330_v27 = vmul.u32.u64.high %v3396_v1, %v3395_v34, %v8329_v3 }
 0x297   :  { %vm3232_vm9 = vweird.f32 %v7984_v20  ;;  %vm3235_vm10 = vcmp.lt.s32.totalorder %v8290_v40, 2  ;;  %v5484_v35 = vadd.s32 4294967294, %v3104_v37  ;;  %v3247_v33 = vand.u32 2139095040, %v8306_v21  ;;  %v8370_v3 = vld [vmem:[%s10030_s1 + $0xa] ss:$0 sm:$0xff] }
 0x298   :  { %v1567_v29 = vadd.f32 %v5994_v38, %v7128_v58  ;;  %vm3236_vm11 = vcmp.eq.s32.totalorder %v8290_v40, 0  ;;  %vm3239_vm12 = vcmp.eq.s32.totalorder %v8290_v40, 2  ;;  %v3387_v54 = vsel %vm3381_vm5, %v3384_v43, %v3386_v19 }
 0x299   :  { %v3406_v45 = vadd.s32 1, %v8313_v2  ;;  %v3092_v52 = vadd.s32 %v8240_v62, %v8237_v7  ;;  %vm5485_vm13 = vcmp.lt.s32.totalorder %v5484_v35, 0  ;;  %v3125_v0 = vsel %vm8323_vm8, 0, %v3123_v49 }
 0x29a   :  { %v3248_v4 = vshrl.u32 %v3247_v33, 23  ;;  %v6247_v28 = vpop.eup %6246  ;;  %v3107_v58 = vsel %vm5485_vm13, 0, %v5484_v35  ;;  %vm3405_vm14 = vc.u32 %v8330_v27, %v8312_v10  ;;  %v3244_v42 = vand.u32 2147483647, %v8306_v21  ;;  %v1560_v33 = vpop.f32.mrf.mxu0 }
 0x29b   :  { %v8348_v61 = vadd.f32 %v6044_v47, %v1567_v29  ;;  %v6249_v5 = vpop.eup %6248  ;;  %v3240_v51 = vxor.u32 2147483648, %v6247_v28  ;;  %v3108_v14 = vsub.s32 32, %v3107_v58  ;;  %v3112_v13 = vsub.s32 4294967266, %v3107_v58 }
 0x29c   :  { %v3403_v7 = vmul.u32 %v3396_v1, %v3387_v54  ;;  %v3237_v62 = vxor.u32 2147483648, %v6249_v5  ;;  %v3109_v9 = vshll.u32 %v8285_v36, %v3107_v58  ;;  %v3407_v32 = vsel %vm3405_vm14, %v3406_v45, %v8313_v2 }
 0x29d   :  { %v5490_v57 = vadd.s32 4294967169, %v3248_v4  ;;  %v3241_v39 = vsel %vm3239_vm12, %v3240_v51, %v6249_v5  ;;  %v3110_v12 = vshrl.u32 %v3092_v52, %v3108_v14  ;;  %v3113_v6 = vadd.s32 127, %v3112_v13 }
 0x29e   :  { %v3408_v44 = vadd.s32 %v3407_v32, %v3403_v7  ;;  %v3238_v15 = vsel %vm3236_vm11, %v6247_v28, %v3237_v62  ;;  %v3251_v11 = vand.u32 8388607, %v3244_v42  ;;  %v1943_v1 = vmul.f32 %v8158_v22, %v8348_v61 }
 0x29f   :  { %v3254_v18 = vadd.s32 1, %v5490_v57  ;;  %v3242_v36 = vsel %vm3235_vm10, %v3238_v15, %v3241_v39  ;;  %v3111_v63 = vor.u32 %v3110_v12, %v3109_v9  ;;  %v3114_v46 = vshll.u32 %v3113_v6, 23 }
 0x2a0   :  { %v3409_v34 = vadd.s32 536870912, %v3408_v44  ;;  %v3243_v2 = vsel %vm3232_vm9, nan, %v3242_v36  ;;  %v3129_v38 = vadd.s32 3, %v3125_v0  ;;  %v8365_v37 = vadd.f32 %v8132_v55, %v1943_v1 }
 0x2a1   :  { %vm3255_vm15 = vcmp.gt.s32.totalorder %v3254_v18, 0  ;;  %v5371_v43 = vadd.f32 %v5339_v30, %v3243_v2  ;;  %v3115_v19 = vor.u32 4788187, %v3114_v46  ;;  %v8374_v40 = vmul.f32 %v8370_v3, %v8076_v50 }
 0x2a2   :  { %v3410_v49 = vshrl.u32 %v3409_v34, 30  ;;  %v3252_v35 = vor.u32 8388608, %v3251_v11  ;;  %v3256_v20 = vsel %vm3255_vm15, %v3254_v18, 0  ;;  %v3118_v54 = vcvt.s32.f32 %v3111_v63 }
 0x2a3   :  { %5403 = vst [vmem:[#allocation2 + $0x58] sm:$0xff] %v5371_v43  ;;  %v3116_v29 = vand.u32 2147483647, %v3115_v19  ;;  %v3559_v30 = vand.u32 2139095040, %v8365_v37  ;;  %v8377_v52 = vand.u32 3, %v3129_v38  ;;  %vm3350_vm1 = vcmp.lt.s32.totalorder %v8173_v56, 0 }
 0x2a4   :  { %v3411_v45 = vshll.u32 %v3410_v49, 30  ;;  %vm8381_vm0 = vcmp.le.f32.partialorder %v3348_v59, 0.7853982  ;;  %v3258_v50 = vand.u32 31, %v3256_v20  ;;  %v3404_v47 = vadd.s32 %v8312_v10, %v8330_v27 }
 0x2a5   :  { %v3119_v4 = vmul.f32 %v3118_v54, %v3116_v29  ;;  %v8391_v58 = vadd.f32 %v1560_v33, %v7131_v60  ;;  %v3434_v5 = vsub.s32 4, %v3410_v49  ;;  %v3257_v51 = vshrl.u32 %v3256_v20, 5 }
 0x2a6   :  { %v8388_v28 = vsub.s32 %v3408_v44, %v3411_v45  ;;  %v3259_v14 = vsub.s32 32, %v3258_v50  ;;  %v8393_v13 = vshll.u32 %v3252_v35, 8  ;;  %v3556_v62 = vand.u32 2147483647, %v8365_v37 }
 0x2a7   :  { %v3120_v59 = vxor.u32 2147483648, %v3119_v4  ;;  %v3560_v9 = vshrl.u32 %v3559_v30, 23  ;;  %v3261_v32 = vshll.u32 %v10175_v53, %v3258_v50  ;;  %v3264_v12 = vshll.u32 %v10176_v48, %v3258_v50 }
 0x2a8   :  { %v3414_v7 = vsub.s32 0, %v8388_v28  ;;  %v3262_v10 = vshrl.u32 %v10176_v48, %v3259_v14  ;;  %v3265_v27 = vshrl.u32 %v10177_v17, %v3259_v14  ;;  %v3268_v60 = vshrl.u32 %v10178_v23, %v3259_v14 }
 0x2a9   :  { %v3121_v57 = vsel %vm3038_vm7, %v3120_v59, %v3119_v4  ;;  %v3267_v6 = vshll.u32 %v10177_v17, %v3258_v50  ;;  %v3435_v15 = vsel %vm3350_vm1, %v3434_v5, %v3410_v49  ;;  %vm3276_vm2 = vcmp.lt.s32.totalorder %v3257_v51, 1 }
 0x2aa   :  { %v5495_v39 = vmin.u32 %v3414_v7, %v8388_v28  ;;  %v3124_v44 = vsel %vm8323_vm8, %v8135_v24, %v3121_v57  ;;  %v3263_v11 = vor.u32 %v3262_v10, %v3261_v32  ;;  %v3266_v1 = vor.u32 %v3265_v27, %v3264_v12 }
 0x2ab   :  { %6250 = vcosq.f32 %v3124_v44  ;;  %v3269_v36 = vor.u32 %v3268_v60, %v3267_v6  ;;  %v3260_v63 = vshrl.u32 %v10175_v53, %v3259_v14  ;;  %v3270_v46 = vshll.u32 %v10178_v23, %v3258_v50 }
 0x2ac   :  { %v3416_v18 = vclz %v5495_v39  ;;  %6252 = vsinq.f32 %v3124_v44  ;;  %v3271_v34 = vshrl.u32 %v10179_v41, %v3259_v14  ;;  %v3437_v26 = vsel %vm8381_vm0, 0, %v3435_v15 }
 0x2ad   :  { %v3273_v38 = vshll.u32 %v10179_v41, %v3258_v50  ;;  %v3274_v43 = vshrl.u32 %v10180_v16, %v3259_v14  ;;  %vm3278_vm3 = vcmp.lt.s32.totalorder %v3257_v51, 3  ;;  %vm3279_vm4 = vcmp.lt.s32.totalorder %v3257_v51, 4 }
 0x2ae   :  { %v5496_v2 = vadd.s32 4294967294, %v3416_v18  ;;  %v3272_v19 = vor.u32 %v3271_v34, %v3270_v46  ;;  %v3280_v49 = vsel %vm3276_vm2, %v3260_v63, %v3263_v11  ;;  %v3281_v20 = vsel %vm3279_vm4, %v3269_v36, 2102212464 }
 0x2af   :  { %v3275_v35 = vor.u32 %v3274_v43, %v3273_v38  ;;  %v3284_v33 = vsel %vm3276_vm2, %v3263_v11, %v3266_v1  ;;  %v3282_v54 = vsel %vm3278_vm3, %v3266_v1, %v3281_v20  ;;  %v5502_v30 = vadd.s32 4294967169, %v3560_v9 }
 0x2b0   :  { %vm5497_vm5 = vcmp.lt.s32.totalorder %v5496_v2, 0  ;;  %v3285_v45 = vsel %vm3279_vm4, %v3272_v19, 920167782  ;;  %vm3277_vm6 = vcmp.lt.s32.totalorder %v3257_v51, 2  ;;  %v3288_v5 = vsel %vm3276_vm2, %v3266_v1, %v3269_v36  ;;  %v1818_v51 = vpop.f32.mrf.mxu1 }
 0x2b1   :  { %v3419_v29 = vsel %vm5497_vm5, 0, %v5496_v2  ;;  %v3283_v59 = vsel %vm3277_vm6, %v3280_v49, %v3282_v54  ;;  %v3286_v7 = vsel %vm3278_vm3, %v3269_v36, %v3285_v45  ;;  %v3289_v32 = vsel %vm3279_vm4, %v3275_v35, 1326507024 }
 0x2b2   :  { %v3420_v50 = vsub.s32 32, %v3419_v29  ;;  %v3424_v4 = vsub.s32 4294967266, %v3419_v29  ;;  %v3421_v14 = vshll.u32 %v8388_v28, %v3419_v29  ;;  %v3287_v60 = vsel %vm3277_vm6, %v3284_v33, %v3286_v7 }
 0x2b3   :  { %v3290_v57 = vsel %vm3278_vm3, %v3272_v19, %v3289_v32  ;;  %v8429_v9 = vmul.u32.u64.low %v8393_v13, %v3287_v60  ;;  %v8430_v12 = vmul.u32.u64.high %v8393_v13, %v3287_v60, %v8429_v9  ;;  %v3566_v6 = vadd.s32 1, %v5502_v30 }
 0x2b4   :  { %v3422_v10 = vshrl.u32 %v3404_v47, %v3420_v50  ;;  %v3425_v27 = vadd.s32 127, %v3424_v4  ;;  %v3291_v39 = vsel %vm3277_vm6, %v3288_v5, %v3290_v57  ;;  %vm3128_vm7 = vweird.f32 %v8135_v24 }
 0x2b5   :  { %v8435_v15 = vmul.u32.u64.low %v8393_v13, %v3291_v39  ;;  %v8436_v11 = vmul.u32.u64.high %v8393_v13, %v3291_v39, %v8435_v15  ;;  %vm3131_vm8 = vcmp.lt.s32.totalorder %v8377_v52, 2  ;;  %vm3132_vm9 = vcmp.eq.s32.totalorder %v8377_v52, 0 }
 0x2b6   :  { %v3423_v28 = vor.u32 %v3422_v10, %v3421_v14  ;;  %v3426_v44 = vshll.u32 %v3425_v27, 23  ;;  %v3563_v47 = vand.u32 8388607, %v3556_v62  ;;  %vm3567_vm10 = vcmp.gt.s32.totalorder %v3566_v6, 0 }
 0x2b7   :  { %vm3135_vm11 = vcmp.eq.s32.totalorder %v8377_v52, 2  ;;  %v3568_v1 = vsel %vm3567_vm10, %v3566_v6, 0  ;;  %v8444_v36 = vadd.f32 %v1818_v51, %v8391_v58  ;;  %v3441_v46 = vadd.s32 3, %v3437_v26 }
 0x2b8   :  { %v3427_v18 = vor.u32 4788187, %v3426_v44  ;;  %v6251_v63 = vpop.eup %6250  ;;  %v3299_v34 = vmul.u32 %v8393_v13, %v3283_v59  ;;  %v3302_v2 = vadd.s32 1, %v8430_v12  ;;  %v3570_v38 = vand.u32 31, %v3568_v1 }
 0x2b9   :  { %v6253_v43 = vpop.eup %6252  ;;  %v3136_v19 = vxor.u32 2147483648, %v6251_v63  ;;  %v3430_v35 = vcvt.s32.f32 %v3423_v28  ;;  %vm3301_vm12 = vc.u32 %v8436_v11, %v8429_v9  ;;  %v3564_v29 = vor.u32 8388608, %v3563_v47 }
 0x2ba   :  { %v3428_v49 = vand.u32 2147483647, %v3427_v18  ;;  %v3133_v20 = vxor.u32 2147483648, %v6253_v43  ;;  %v3303_v33 = vsel %vm3301_vm12, %v3302_v2, %v8430_v12  ;;  %v3571_v58 = vsub.s32 32, %v3570_v38 }
 0x2bb   :  { %v3137_v26 = vsel %vm3135_vm11, %v3136_v19, %v6253_v43  ;;  %v3304_v13 = vadd.s32 %v3303_v33, %v3299_v34  ;;  %v8453_v45 = vshrl.u32 %v3568_v1, 5  ;;  %v3573_v50 = vshll.u32 %v10175_v53, %v3570_v38 }
 0x2bc   :  { %v3431_v54 = vmul.f32 %v3430_v35, %v3428_v49  ;;  %v3134_v30 = vsel %vm3132_vm9, %v6251_v63, %v3133_v20  ;;  %v3574_v4 = vshrl.u32 %v10176_v48, %v3571_v58  ;;  %v3577_v5 = vshrl.u32 %v10177_v17, %v3571_v58 }
 0x2bd   :  { %v3138_v14 = vsel %vm3131_vm8, %v3134_v30, %v3137_v26  ;;  %v3305_v7 = vadd.s32 536870912, %v3304_v13  ;;  %v3576_v32 = vshll.u32 %v10176_v48, %v3570_v38  ;;  %v3579_v60 = vshll.u32 %v10177_v17, %v3570_v38 }
 0x2be   :  { %v3432_v59 = vxor.u32 2147483648, %v3431_v54  ;;  %v3139_v10 = vsel %vm3128_vm7, nan, %v3138_v14  ;;  %v3575_v27 = vor.u32 %v3574_v4, %v3573_v50  ;;  %v3580_v57 = vshrl.u32 %v10178_v23, %v3571_v58  ;;  %v5997_v14 = vpop.f32.mrf.mxu0 }
 0x2bf   :  { %v5370_v39 = vadd.f32 %v8374_v40, %v3139_v10  ;;  %v3306_v6 = vshrl.u32 %v3305_v7, 30  ;;  %v3578_v52 = vor.u32 %v3577_v5, %v3576_v32  ;;  %v3582_v24 = vshll.u32 %v10178_v23, %v3570_v38 }
 0x2c0   :  { %v3433_v12 = vsel %vm3350_vm1, %v3432_v59, %v3431_v54  ;;  %v3581_v44 = vor.u32 %v3580_v57, %v3579_v60  ;;  %v3583_v15 = vshrl.u32 %v10179_v41, %v3571_v58  ;;  %v3585_v51 = vshll.u32 %v10179_v41, %v3570_v38 }
 0x2c1   :  { %v3436_v28 = vsel %vm8381_vm0, %v8173_v56, %v3433_v12  ;;  %5402 = vst [vmem:[#allocation2 + $0x50] sm:$0xff] %v5370_v39  ;;  %v3307_v47 = vshll.u32 %v3306_v6, 30  ;;  %v3586_v40 = vshrl.u32 %v10180_v16, %v3571_v58  ;;  %v1942_v1 = vmul.f32 %v8158_v22, %v8444_v36 }
 0x2c2   :  { %6254 = vcosq.f32 %v3436_v28  ;;  %v3584_v18 = vor.u32 %v3583_v15, %v3582_v24  ;;  %v8479_v63 = vand.u32 3, %v3441_v46  ;;  %vm3588_vm13 = vcmp.lt.s32.totalorder %v8453_v45, 1 }
 0x2c3   :  { %6256 = vsinq.f32 %v3436_v28  ;;  %v8481_v0 = vsub.s32 %v3304_v13, %v3307_v47  ;;  %v3587_v34 = vor.u32 %v3586_v40, %v3585_v51  ;;  %v3572_v2 = vshrl.u32 %v10175_v53, %v3571_v58 }
 0x2c4   :  { %vm3591_vm14 = vcmp.lt.s32.totalorder %v8453_v45, 4  ;;  %v3596_v38 = vsel %vm3588_vm13, %v3575_v27, %v3578_v52  ;;  %v3604_v43 = vshll.u32 %v3564_v29, 8  ;;  %vm3590_vm15 = vcmp.lt.s32.totalorder %v8453_v45, 3 }
 0x2c5   :  { %v3310_v19 = vsub.s32 0, %v8481_v0  ;;  %v3593_v49 = vsel %vm3591_vm14, %v3581_v44, 2102212464  ;;  %v3597_v46 = vsel %vm3591_vm14, %v3584_v18, 920167782  ;;  %vm3589_vm0 = vcmp.lt.s32.totalorder %v8453_v45, 2 }
 0x2c6   :  { %v3598_v35 = vsel %vm3590_vm15, %v3581_v44, %v3597_v46  ;;  %v3601_v20 = vsel %vm3591_vm14, %v3587_v34, 1326507024  ;;  %v8492_v33 = vadd.f32 %v8132_v55, %v1942_v1  ;;  %v3592_v26 = vsel %vm3588_vm13, %v3572_v2, %v3575_v27 }
 0x2c7   :  { %v5491_v58 = vmin.u32 %v3310_v19, %v8481_v0  ;;  %v3599_v29 = vsel %vm3589_vm0, %v3596_v38, %v3598_v35  ;;  %v3600_v54 = vsel %vm3588_vm13, %v3578_v52, %v3581_v44  ;;  %v3594_v13 = vsel %vm3590_vm15, %v3578_v52, %v3593_v49 }
 0x2c8   :  { %v3602_v30 = vsel %vm3590_vm15, %v3584_v18, %v3601_v20  ;;  %v8501_v50 = vmul.u32.u64.low %v3604_v43, %v3599_v29  ;;  %v8502_v4 = vmul.u32.u64.high %v3604_v43, %v3599_v29, %v8501_v50  ;;  %v5341_v55 = vmul.f32 %v8370_v3, %v8140_v8 }
 0x2c9   :  { %vm3246_vm1 = vcmp.lt.s32.totalorder %v8306_v21, 0  ;;  %v3312_v5 = vclz %v5491_v58  ;;  %vm8510_vm2 = vcmp.le.f32.partialorder %v3244_v42, 0.7853982  ;;  %v3330_v7 = vsub.s32 4, %v3306_v6 }
 0x2ca   :  { %v3603_v32 = vsel %vm3589_vm0, %v3600_v54, %v3602_v30  ;;  %v3455_v10 = vand.u32 2139095040, %v8492_v33  ;;  %vm3440_vm3 = vweird.f32 %v8173_v56  ;;  %v3595_v8 = vsel %vm3589_vm0, %v3592_v26, %v3594_v13 }
 0x2cb   :  { %v5492_v27 = vadd.s32 4294967294, %v3312_v5  ;;  %v8520_v60 = vmul.u32.u64.low %v3604_v43, %v3603_v32  ;;  %v8521_v57 = vmul.u32.u64.high %v3604_v43, %v3603_v32, %v8520_v60  ;;  %vm3443_vm4 = vcmp.lt.s32.totalorder %v8479_v63, 2 }
 0x2cc   :  { %vm3444_vm5 = vcmp.eq.s32.totalorder %v8479_v63, 0  ;;  %v3456_v42 = vshrl.u32 %v3455_v10, 23  ;;  %v1579_v39 = vadd.f32 %v5997_v14, %v7134_v31  ;;  %vm3447_vm6 = vcmp.eq.s32.totalorder %v8479_v63, 2  ;;  %v6047_v14 = vpop.f32.mrf.mxu1 }
 0x2cd   :  { %v3300_v12 = vadd.s32 %v8429_v9, %v8436_v11  ;;  %vm5493_vm7 = vcmp.lt.s32.totalorder %v5492_v27, 0  ;;  %v3614_v52 = vadd.s32 1, %v8502_v4  ;;  %v3331_v44 = vsel %vm3246_vm1, %v3330_v7, %v3306_v6 }
 0x2ce   :  { %v3315_v28 = vsel %vm5493_vm7, 0, %v5492_v27  ;;  %v3611_v24 = vmul.u32 %v3604_v43, %v3595_v8  ;;  %v5498_v15 = vadd.s32 4294967169, %v3456_v42  ;;  %v3452_v31 = vand.u32 2147483647, %v8492_v33 }
 0x2cf   :  { %v6255_v45 = vpop.eup %6254  ;;  %v3316_v40 = vsub.s32 32, %v3315_v28  ;;  %v3320_v18 = vsub.s32 4294967266, %v3315_v28  ;;  %v3317_v34 = vshll.u32 %v8481_v0, %v3315_v28  ;;  %vm3613_vm8 = vc.u32 %v8521_v57, %v8501_v50 }
 0x2d0   :  { %v6257_v47 = vpop.eup %6256  ;;  %v3448_v51 = vxor.u32 2147483648, %v6255_v45  ;;  %v3462_v9 = vadd.s32 1, %v5498_v15  ;;  %v3615_v38 = vsel %vm3613_vm8, %v3614_v52, %v8502_v4  ;;  %v3333_v19 = vsel %vm8510_vm2, 0, %v3331_v44 }
 0x2d1   :  { %v3445_v1 = vxor.u32 2147483648, %v6257_v47  ;;  %v3318_v2 = vshrl.u32 %v3300_v12, %v3316_v40  ;;  %v3321_v6 = vadd.s32 127, %v3320_v18  ;;  %v3616_v49 = vadd.s32 %v3615_v38, %v3611_v24 }
 0x2d2   :  { %v3449_v11 = vsel %vm3447_vm6, %v3448_v51, %v6257_v47  ;;  %vm3463_vm9 = vcmp.gt.s32.totalorder %v3462_v9, 0  ;;  %v3459_v29 = vand.u32 8388607, %v3452_v31  ;;  %v8551_v32 = vadd.s32 3, %v3333_v19 }
 0x2d3   :  { %v3446_v43 = vsel %vm3444_vm5, %v6255_v45, %v3445_v1  ;;  %v3319_v46 = vor.u32 %v3318_v2, %v3317_v34  ;;  %v3322_v35 = vshll.u32 %v3321_v6, 23  ;;  %v3464_v20 = vsel %vm3463_vm9, %v3462_v9, 0 }
 0x2d4   :  { %v3450_v0 = vsel %vm3443_vm4, %v3446_v43, %v3449_v11  ;;  %v3617_v26 = vadd.s32 536870912, %v3616_v49  ;;  %v3466_v54 = vand.u32 31, %v3464_v20  ;;  %v8553_v10 = vadd.f32 %v6047_v14, %v1579_v39 }
 0x2d5   :  { %v3451_v58 = vsel %vm3440_vm3, nan, %v3450_v0  ;;  %v3323_v30 = vor.u32 4788187, %v3322_v35  ;;  %v3326_v7 = vcvt.s32.f32 %v3319_v46  ;;  %v3460_v27 = vor.u32 8388608, %v3459_v29 }
 0x2d6   :  { %v5373_v13 = vadd.f32 %v5341_v55, %v3451_v58  ;;  %v8549_v4 = vshrl.u32 %v3617_v26, 30  ;;  %v3467_v5 = vsub.s32 32, %v3466_v54  ;;  %v3469_v8 = vshll.u32 %v10175_v53, %v3466_v54 }
 0x2d7   :  { %v3324_v63 = vand.u32 2147483647, %v3323_v30  ;;  %v3472_v28 = vshll.u32 %v10176_v48, %v3466_v54  ;;  %v3475_v39 = vshll.u32 %v10177_v17, %v3466_v54  ;;  %v3465_v15 = vshrl.u32 %v3464_v20, 5 }
 0x2d8   :  { %5405 = vst [vmem:[#allocation2 + $0x68] sm:$0xff] %v5373_v13  ;;  %v3619_v56 = vshll.u32 %v8549_v4, 30  ;;  %v3470_v60 = vshrl.u32 %v10176_v48, %v3467_v5  ;;  %v3473_v42 = vshrl.u32 %v10177_v17, %v3467_v5  ;;  %v3476_v12 = vshrl.u32 %v10178_v23, %v3467_v5 }
 0x2d9   :  { %v3327_v55 = vmul.f32 %v3326_v7, %v3324_v63  ;;  %v3479_v52 = vshrl.u32 %v10179_v41, %v3467_v5  ;;  %v3482_v44 = vshrl.u32 %v10180_v16, %v3467_v5  ;;  %v3478_v47 = vshll.u32 %v10178_v23, %v3466_v54 }
 0x2da   :  { %v8561_v45 = vsub.s32 %v3616_v49, %v3619_v56  ;;  %v3481_v51 = vshll.u32 %v10179_v41, %v3466_v54  ;;  %v3471_v18 = vor.u32 %v3470_v60, %v3469_v8  ;;  %v3474_v1 = vor.u32 %v3473_v42, %v3472_v28 }
 0x2db   :  { %v3328_v24 = vxor.u32 2147483648, %v3327_v55  ;;  %v3477_v34 = vor.u32 %v3476_v12, %v3475_v39  ;;  %v3480_v11 = vor.u32 %v3479_v52, %v3478_v47  ;;  %v3500_v2 = vshll.u32 %v3460_v27, 8 }
 0x2dc   :  { %v3622_v40 = vsub.s32 0, %v8561_v45  ;;  %v1945_v6 = vmul.f32 %v8158_v22, %v8553_v10  ;;  %v3642_v19 = vsub.s32 4, %v8549_v4  ;;  %v3483_v49 = vor.u32 %v3482_v44, %v3481_v51 }
 0x2dd   :  { %v3329_v9 = vsel %vm3246_vm1, %v3328_v24, %v3327_v55  ;;  %v3468_v0 = vshrl.u32 %v10175_v53, %v3467_v5  ;;  %vm3484_vm10 = vcmp.lt.s32.totalorder %v3465_v15, 1  ;;  %vm3487_vm11 = vcmp.lt.s32.totalorder %v3465_v15, 4  ;;  %v8583_v5 = vld [vmem:[%s10030_s1 + $0x9] ss:$0 sm:$0xff] }
 0x2de   :  { %v3332_v38 = vsel %vm8510_vm2, %v8306_v21, %v3329_v9  ;;  %v5503_v43 = vmin.u32 %v3622_v40, %v8561_v45  ;;  %v3489_v35 = vsel %vm3487_vm11, %v3477_v34, 2102212464  ;;  %v3492_v20 = vsel %vm3484_vm10, %v3471_v18, %v3474_v1 }
 0x2df   :  { %6258 = vcosq.f32 %v3332_v38  ;;  %vm3485_vm12 = vcmp.lt.s32.totalorder %v3465_v15, 2  ;;  %vm3486_vm13 = vcmp.lt.s32.totalorder %v3465_v15, 3  ;;  %v3493_v22 = vsel %vm3487_vm11, %v3480_v11, 920167782 }
 0x2e0   :  { %6260 = vsinq.f32 %v3332_v38  ;;  %v3624_v46 = vclz %v5503_v43  ;;  %v3496_v58 = vsel %vm3484_vm10, %v3474_v1, %v3477_v34  ;;  %v3488_v26 = vsel %vm3484_vm10, %v3468_v0, %v3471_v18  ;;  %v10215_v43 = vld [vmem:[#allocation5_spill] sm:$0xff] }
 0x2e1   :  { %v3494_v29 = vsel %vm3486_vm13, %v3477_v34, %v3493_v22  ;;  %v3497_v54 = vsel %vm3487_vm11, %v3483_v49, 1326507024  ;;  %v3490_v13 = vsel %vm3486_vm13, %v3474_v1, %v3489_v35  ;;  %v8586_v63 = vadd.f32 %v8583_v5, %v1945_v6 }
 0x2e2   :  { %v5504_v59 = vadd.s32 4294967294, %v3624_v46  ;;  %v3495_v30 = vsel %vm3485_vm12, %v3492_v20, %v3494_v29  ;;  %v3498_v14 = vsel %vm3486_vm13, %v3480_v11, %v3497_v54  ;;  %vm3558_vm15 = vcmp.lt.s32.totalorder %v8365_v37, 0  ;;  %v1830_v54 = vpop.f32.mrf.mxu1 }
 0x2e3   :  { %v3499_v7 = vsel %vm3485_vm12, %v3496_v58, %v3498_v14  ;;  %v8589_v56 = vmul.u32.u64.low %v3500_v2, %v3495_v30  ;;  %v8590_v27 = vmul.u32.u64.high %v3500_v2, %v3495_v30, %v8589_v56  ;;  %v3612_v42 = vadd.s32 %v8501_v50, %v8521_v57 }
 0x2e4   :  { %vm5505_vm14 = vcmp.lt.s32.totalorder %v5504_v59, 0  ;;  %v8594_v60 = vmul.u32.u64.low %v3500_v2, %v3499_v7  ;;  %v8595_v55 = vmul.u32.u64.high %v3500_v2, %v3499_v7, %v8594_v60  ;;  %v3491_v28 = vsel %vm3485_vm12, %v3488_v26, %v3490_v13 }
 0x2e5   :  { %v3627_v8 = vsel %vm5505_vm14, 0, %v5504_v59  ;;  %v3338_v39 = vand.u32 3, %v8551_v32  ;;  %v5340_v44 = vmul.f32 %v8370_v3, %v8258_v25  ;;  %v3643_v24 = vsel %vm3558_vm15, %v3642_v19, %v8549_v4  ;;  %v1572_v25 = vpop.f32.mrf.mxu0 }
 0x2e6   :  { %v3628_v12 = vsub.s32 32, %v3627_v8  ;;  %v3632_v52 = vsub.s32 4294967266, %v3627_v8  ;;  %v3767_v47 = vand.u32 2139095040, %v8586_v63  ;;  %v3629_v51 = vshll.u32 %v8561_v45, %v3627_v8  ;;  %v6050_v45 = vpop.f32.mrf.mxu1 }
 0x2e7   :  { %v3510_v50 = vadd.s32 1, %v8590_v27  ;;  %v3507_v57 = vmul.u32 %v3500_v2, %v3491_v28  ;;  %vm3509_vm0 = vc.u32 %v8595_v55, %v8589_v56  ;;  %v3764_v32 = vand.u32 2147483647, %v8586_v63 }
 0x2e8   :  { %v3630_v40 = vshrl.u32 %v3612_v42, %v3628_v12  ;;  %v3633_v18 = vadd.s32 127, %v3632_v52  ;;  %v3768_v15 = vshrl.u32 %v3767_v47, 23  ;;  %vm3336_vm1 = vweird.f32 %v8306_v21  ;;  %v8648_v21 = vld [vmem:[%s10030_s1 + $0x8] ss:$0 sm:$0xff] }
 0x2e9   :  { %v3511_v34 = vsel %vm3509_vm0, %v3510_v50, %v8590_v27  ;;  %vm3339_vm2 = vcmp.lt.s32.totalorder %v3338_v39, 2  ;;  %vm8616_vm3 = vcmp.le.f32.partialorder %v3556_v62, 0.7853982  ;;  %vm3340_vm4 = vcmp.eq.s32.totalorder %v3338_v39, 0  ;;  %v6000_v27 = vpop.f32.mrf.mxu0 }
 0x2ea   :  { %v3631_v1 = vor.u32 %v3630_v40, %v3629_v51  ;;  %v3634_v4 = vshll.u32 %v3633_v18, 23  ;;  %v3512_v9 = vadd.s32 %v3511_v34, %v3507_v57  ;;  %v5510_v11 = vadd.s32 4294967169, %v3768_v15 }
 0x2eb   :  { %v3645_v38 = vsel %vm8616_vm3, 0, %v3643_v24  ;;  %v1573_v19 = vadd.f32 %v1572_v25, %v10215_v43  ;;  %v3771_v35 = vand.u32 8388607, %v3764_v32  ;;  %vm3343_vm5 = vcmp.eq.s32.totalorder %v3338_v39, 2  ;;  %v10216_v39 = vld [vmem:[#allocation6_spill] sm:$0xff] }
 0x2ec   :  { %v6259_v2 = vpop.eup %6258  ;;  %v3635_v6 = vor.u32 4788187, %v3634_v4  ;;  %v3513_v46 = vadd.s32 536870912, %v3512_v9  ;;  %v3774_v62 = vadd.s32 1, %v5510_v11  ;;  %v3638_v58 = vcvt.s32.f32 %v3631_v1 }
 0x2ed   :  { %v6261_v49 = vpop.eup %6260  ;;  %v3344_v0 = vxor.u32 2147483648, %v6259_v2  ;;  %v3649_v26 = vadd.s32 3, %v3645_v38  ;;  %v8626_v7 = vadd.f32 %v1830_v54, %v1573_v19  ;;  %v8631_v60 = vmul.f32 %v8370_v3, %v8348_v61 }
 0x2ee   :  { %v3341_v20 = vxor.u32 2147483648, %v6261_v49  ;;  %v3636_v22 = vand.u32 2147483647, %v3635_v6  ;;  %v3514_v29 = vshrl.u32 %v3513_v46, 30  ;;  %vm3775_vm6 = vcmp.gt.s32.totalorder %v3774_v62, 0 }
 0x2ef   :  { %v3345_v59 = vsel %vm3343_vm5, %v3344_v0, %v6261_v49  ;;  %v3776_v14 = vsel %vm3775_vm6, %v3774_v62, 0  ;;  %v3772_v12 = vor.u32 8388608, %v3771_v35  ;;  %vm3454_vm7 = vcmp.lt.s32.totalorder %v8492_v33, 0 }
 0x2f0   :  { %v3342_v13 = vsel %vm3340_vm4, %v6259_v2, %v3341_v20  ;;  %v3639_v30 = vmul.f32 %v3638_v58, %v3636_v22  ;;  %v3515_v42 = vshll.u32 %v3514_v29, 30  ;;  %v3778_v24 = vand.u32 31, %v3776_v14 }
 0x2f1   :  { %v3346_v8 = vsel %vm3339_vm2, %v3342_v13, %v3345_v59  ;;  %v8636_v51 = vand.u32 3, %v3649_v26  ;;  %v1591_v18 = vadd.f32 %v6000_v27, %v10216_v39  ;;  %v3508_v50 = vadd.s32 %v8589_v56, %v8595_v55 }
 0x2f2   :  { %v3347_v52 = vsel %vm3336_vm1, nan, %v3346_v8  ;;  %v3640_v28 = vxor.u32 2147483648, %v3639_v30  ;;  %v8638_v40 = vsub.s32 %v3512_v9, %v3515_v42  ;;  %v3779_v57 = vsub.s32 32, %v3778_v24 }
 0x2f3   :  { %v5372_v47 = vadd.f32 %v5340_v44, %v3347_v52  ;;  %v1944_v44 = vmul.f32 %v8648_v21, %v8626_v7  ;;  %v3538_v1 = vsub.s32 4, %v3514_v29  ;;  %v8656_v4 = vshll.u32 %v3772_v12, 8 }
 0x2f4   :  { %v3641_v61 = vsel %vm3558_vm15, %v3640_v28, %v3639_v30  ;;  %v3518_v25 = vsub.s32 0, %v8638_v40  ;;  %v3777_v56 = vshrl.u32 %v3776_v14, 5  ;;  %v3782_v55 = vshrl.u32 %v10176_v48, %v3779_v57 }
 0x2f5   :  { %5404 = vst [vmem:[#allocation2 + $0x60] sm:$0xff] %v5372_v47  ;;  %v3644_v15 = vsel %vm8616_vm3, %v8365_v37, %v3641_v61  ;;  %v3785_v34 = vshrl.u32 %v10177_v17, %v3779_v57  ;;  %v3781_v11 = vshll.u32 %v10175_v53, %v3778_v24  ;;  %v3784_v2 = vshll.u32 %v10176_v48, %v3778_v24 }
 0x2f6   :  { %6262 = vcosq.f32 %v3644_v15  ;;  %v5499_v9 = vmin.u32 %v3518_v25, %v8638_v40  ;;  %v3787_v6 = vshll.u32 %v10177_v17, %v3778_v24  ;;  %v3788_v38 = vshrl.u32 %v10178_v23, %v3779_v57 }
 0x2f7   :  { %6264 = vsinq.f32 %v3644_v15  ;;  %v8666_v43 = vadd.f32 %v8583_v5, %v1944_v44  ;;  %v8668_v19 = vadd.f32 %v6050_v45, %v1591_v18  ;;  %v3783_v0 = vor.u32 %v3782_v55, %v3781_v11 }
 0x2f8   :  { %v3520_v49 = vclz %v5499_v9  ;;  %v3786_v46 = vor.u32 %v3785_v34, %v3784_v2  ;;  %v3790_v35 = vshll.u32 %v10178_v23, %v3778_v24  ;;  %v3789_v62 = vor.u32 %v3788_v38, %v3787_v6 }
 0x2f9   :  { %v3791_v20 = vshrl.u32 %v10179_v41, %v3779_v57  ;;  %v3793_v22 = vshll.u32 %v10179_v41, %v3778_v24  ;;  %v3794_v58 = vshrl.u32 %v10180_v16, %v3779_v57  ;;  %v3539_v26 = vsel %vm3454_vm7, %v3538_v1, %v3514_v29 }
 0x2fa   :  { %v5500_v59 = vadd.s32 4294967294, %v3520_v49  ;;  %v3780_v54 = vshrl.u32 %v10175_v53, %v3779_v57  ;;  %vm3796_vm8 = vcmp.lt.s32.totalorder %v3777_v56, 1  ;;  %vm8679_vm9 = vcmp.le.f32.partialorder %v3452_v31, 0.7853982 }
 0x2fb   :  { %v3792_v30 = vor.u32 %v3791_v20, %v3790_v35  ;;  %v3795_v14 = vor.u32 %v3794_v58, %v3793_v22  ;;  %vm3797_vm10 = vcmp.lt.s32.totalorder %v3777_v56, 2  ;;  %vm3799_vm11 = vcmp.lt.s32.totalorder %v3777_v56, 4 }
 0x2fc   :  { %vm5501_vm12 = vcmp.lt.s32.totalorder %v5500_v59, 0  ;;  %vm3798_vm13 = vcmp.lt.s32.totalorder %v3777_v56, 3  ;;  %v3801_v27 = vsel %vm3799_vm11, %v3789_v62, 2102212464  ;;  %v3804_v8 = vsel %vm3796_vm8, %v3783_v0, %v3786_v46 }
 0x2fd   :  { %vm3652_vm14 = vcmp.eq.s32.totalorder %v8636_v51, 0  ;;  %v3523_v29 = vsel %vm5501_vm12, 0, %v5500_v59  ;;  %v3805_v42 = vsel %vm3799_vm11, %v3792_v30, 920167782  ;;  %v3808_v12 = vsel %vm3796_vm8, %v3786_v46, %v3789_v62 }
 0x2fe   :  { %v3809_v52 = vsel %vm3799_vm11, %v3795_v14, 1326507024  ;;  %vm3651_vm15 = vcmp.lt.s32.totalorder %v8636_v51, 2  ;;  %v3524_v31 = vsub.s32 32, %v3523_v29  ;;  %v3528_v28 = vsub.s32 4294967266, %v3523_v29 }
 0x2ff   :  { %v3800_v24 = vsel %vm3796_vm8, %v3780_v54, %v3783_v0  ;;  %v3806_v47 = vsel %vm3798_vm13, %v3789_v62, %v3805_v42  ;;  %v3525_v39 = vshll.u32 %v8638_v40, %v3523_v29  ;;  %v3802_v18 = vsel %vm3798_vm13, %v3786_v46, %v3801_v27 }
 0x300   :  { %v3807_v61 = vsel %vm3797_vm10, %v3804_v8, %v3806_v47  ;;  %v3810_v57 = vsel %vm3798_vm13, %v3792_v30, %v3809_v52  ;;  %v3526_v44 = vshrl.u32 %v3508_v50, %v3524_v31  ;;  %v3529_v15 = vadd.s32 127, %v3528_v28 }
 0x301   :  { %v3811_v25 = vsel %vm3797_vm10, %v3808_v12, %v3810_v57  ;;  %v3663_v1 = vand.u32 2139095040, %v8666_v43  ;;  %v8700_v9 = vmul.u32.u64.low %v8656_v4, %v3807_v61  ;;  %v8701_v11 = vmul.u32.u64.high %v8656_v4, %v3807_v61, %v8700_v9 }
 0x302   :  { %v8696_v55 = vmul.u32.u64.low %v8656_v4, %v3811_v25  ;;  %v8697_v34 = vmul.u32.u64.high %v8656_v4, %v3811_v25, %v8696_v55  ;;  %v3527_v2 = vor.u32 %v3526_v44, %v3525_v39  ;;  %v3530_v45 = vshll.u32 %v3529_v15, 23 }
 0x303   :  { %v6263_v40 = vpop.eup %6262  ;;  %v3803_v6 = vsel %vm3797_vm10, %v3800_v24, %v3802_v18  ;;  %v3664_v50 = vshrl.u32 %v3663_v1, 23  ;;  %vm3655_vm0 = vcmp.eq.s32.totalorder %v8636_v51, 2  ;;  %v3660_v0 = vand.u32 2147483647, %v8666_v43 }
 0x304   :  { %v6265_v38 = vpop.eup %6264  ;;  %v3656_v49 = vxor.u32 2147483648, %v6263_v40  ;;  %v1947_v46 = vmul.f32 %v8648_v21, %v8668_v19  ;;  %v3531_v62 = vor.u32 4788187, %v3530_v45  ;;  %v3541_v20 = vsel %vm8679_vm9, 0, %v3539_v26 }
 0x305   :  { %v3653_v35 = vxor.u32 2147483648, %v6265_v38  ;;  %v5506_v22 = vadd.s32 4294967169, %v3664_v50  ;;  %v3819_v56 = vmul.u32 %v8656_v4, %v3803_v6  ;;  %vm3821_vm1 = vc.u32 %v8697_v34, %v8700_v9 }
 0x306   :  { %v3657_v58 = vsel %vm3655_vm0, %v3656_v49, %v6265_v38  ;;  %v3822_v59 = vadd.s32 1, %v8701_v11  ;;  %v3532_v30 = vand.u32 2147483647, %v3531_v62  ;;  %v3534_v14 = vcvt.s32.f32 %v3527_v2  ;;  %v1584_v49 = vpop.f32.mrf.mxu0 }
 0x307   :  { %v3654_v54 = vsel %vm3652_vm14, %v6263_v40, %v3653_v35  ;;  %v3670_v27 = vadd.s32 1, %v5506_v22  ;;  %vm3648_vm2 = vweird.f32 %v8365_v37  ;;  %v3545_v8 = vadd.s32 3, %v3541_v20 }
 0x308   :  { %v3658_v26 = vsel %vm3651_vm15, %v3654_v54, %v3657_v58  ;;  %v3823_v29 = vsel %vm3821_vm1, %v3822_v59, %v8701_v11  ;;  %v3535_v42 = vmul.f32 %v3534_v14, %v3532_v30  ;;  %v3667_v31 = vand.u32 8388607, %v3660_v0  ;;  %v10219_v14 = vld [vmem:[#allocation7_spill] sm:$0xff] }
 0x309   :  { %v3659_v4 = vsel %vm3648_vm2, nan, %v3658_v26  ;;  %v3824_v12 = vadd.s32 %v3823_v29, %v3819_v56  ;;  %vm3671_vm3 = vcmp.gt.s32.totalorder %v3670_v27, 0  ;;  %v8725_v24 = vadd.f32 %v8583_v5, %v1947_v46 }
 0x30a   :  { %v5375_v52 = vadd.f32 %v8631_v60, %v3659_v4  ;;  %v3672_v28 = vsel %vm3671_vm3, %v3670_v27, 0  ;;  %v3536_v37 = vxor.u32 2147483648, %v3535_v42  ;;  %v8729_v18 = vand.u32 3, %v3545_v8 }
 0x30b   :  { %v3825_v47 = vadd.s32 536870912, %v3824_v12  ;;  %v3674_v51 = vand.u32 31, %v3672_v28  ;;  %v3668_v44 = vor.u32 8388608, %v3667_v31  ;;  %v8736_v15 = vshrl.u32 %v3672_v28, 5 }
 0x30c   :  { %5407 = vst [vmem:[#allocation2 + $0x78] sm:$0xff] %v5375_v52  ;;  %v3537_v39 = vsel %vm3454_vm7, %v3536_v37, %v3535_v42  ;;  %v3975_v25 = vand.u32 2139095040, %v8725_v24  ;;  %v8755_v54 = vmul.f32 %v8370_v3, %v8444_v36  ;;  %v1585_v27 = vadd.f32 %v1584_v49, %v10219_v14 }
 0x30d   :  { %v8731_v61 = vshrl.u32 %v3825_v47, 30  ;;  %v3675_v57 = vsub.s32 32, %v3674_v51  ;;  %v3540_v60 = vsel %vm8679_vm9, %v8492_v33, %v3537_v39  ;;  %v3677_v55 = vshll.u32 %v10175_v53, %v3674_v51 }
 0x30e   :  { %6266 = vcosq.f32 %v3540_v60  ;;  %v3680_v11 = vshll.u32 %v10176_v48, %v3674_v51  ;;  %v3683_v6 = vshll.u32 %v10177_v17, %v3674_v51  ;;  %v3686_v50 = vshll.u32 %v10178_v23, %v3674_v51 }
 0x30f   :  { %v3827_v1 = vshll.u32 %v8731_v61, 30  ;;  %6268 = vsinq.f32 %v3540_v60  ;;  %v3678_v40 = vshrl.u32 %v10176_v48, %v3675_v57  ;;  %v3681_v2 = vshrl.u32 %v10177_v17, %v3675_v57 }
 0x310   :  { %v3684_v13 = vshrl.u32 %v10178_v23, %v3675_v57  ;;  %v3687_v38 = vshrl.u32 %v10179_v41, %v3675_v57  ;;  %v3689_v62 = vshll.u32 %v10179_v41, %v3674_v51  ;;  %v3976_v20 = vshrl.u32 %v3975_v25, 23 }
 0x311   :  { %v8745_v45 = vsub.s32 %v3824_v12, %v3827_v1  ;;  %v3679_v46 = vor.u32 %v3678_v40, %v3677_v55  ;;  %v3682_v35 = vor.u32 %v3681_v2, %v3680_v11  ;;  %v3690_v59 = vshrl.u32 %v10180_v16, %v3675_v57  ;;  %v1842_v2 = vpop.f32.mrf.mxu1 }
 0x312   :  { %v3685_v58 = vor.u32 %v3684_v13, %v3683_v6  ;;  %v3688_v56 = vor.u32 %v3687_v38, %v3686_v50  ;;  %v8757_v30 = vshll.u32 %v3668_v44, 8  ;;  %vm3766_vm4 = vcmp.lt.s32.totalorder %v8586_v63, 0 }
 0x313   :  { %v3830_v22 = vsub.s32 0, %v8745_v45  ;;  %v3691_v8 = vor.u32 %v3690_v59, %v3689_v62  ;;  %vm3692_vm5 = vcmp.lt.s32.totalorder %v8736_v15, 1  ;;  %vm3695_vm6 = vcmp.lt.s32.totalorder %v8736_v15, 4 }
 0x314   :  { %vm3551_vm7 = vcmp.eq.s32.totalorder %v8729_v18, 2  ;;  %v3676_v29 = vshrl.u32 %v10175_v53, %v3675_v57  ;;  %v3700_v3 = vsel %vm3692_vm5, %v3679_v46, %v3682_v35  ;;  %v3701_v36 = vsel %vm3695_vm6, %v3688_v56, 920167782 }
 0x315   :  { %v5511_v26 = vmin.u32 %v3830_v22, %v8745_v45  ;;  %v5518_v4 = vadd.s32 4294967169, %v3976_v20  ;;  %vm3548_vm8 = vcmp.eq.s32.totalorder %v8729_v18, 0  ;;  %vm3694_vm9 = vcmp.lt.s32.totalorder %v8736_v15, 3 }
 0x316   :  { %v3697_v12 = vsel %vm3695_vm6, %v3685_v58, 2102212464  ;;  %v3704_v52 = vsel %vm3692_vm5, %v3682_v35, %v3685_v58  ;;  %vm3547_vm10 = vcmp.lt.s32.totalorder %v8729_v18, 2  ;;  %v3850_v31 = vsub.s32 4, %v8731_v61 }
 0x317   :  { %v3832_v42 = vclz %v5511_v26  ;;  %vm3693_vm11 = vcmp.lt.s32.totalorder %v8736_v15, 2  ;;  %v3702_v28 = vsel %vm3694_vm9, %v3685_v58, %v3701_v36  ;;  %v3705_v37 = vsel %vm3695_vm6, %v3691_v8, 1326507024 }
 0x318   :  { %vm3544_vm12 = vweird.f32 %v8492_v33  ;;  %v3696_v51 = vsel %vm3692_vm5, %v3676_v29, %v3679_v46  ;;  %v3703_v39 = vsel %vm3693_vm11, %v3700_v3, %v3702_v28  ;;  %v3706_v57 = vsel %vm3694_vm9, %v3688_v56, %v3705_v37 }
 0x319   :  { %v5512_v47 = vadd.s32 4294967294, %v3832_v42  ;;  %v3698_v60 = vsel %vm3694_vm9, %v3682_v35, %v3697_v12  ;;  %v3707_v44 = vsel %vm3693_vm11, %v3704_v52, %v3706_v57  ;;  %v3982_v40 = vadd.s32 1, %v5518_v4 }
 0x31a   :  { %v8783_v25 = vmul.u32.u64.low %v8757_v30, %v3703_v39  ;;  %v8784_v1 = vmul.u32.u64.high %v8757_v30, %v3703_v39, %v8783_v25  ;;  %v8788_v55 = vmul.u32.u64.low %v8757_v30, %v3707_v44  ;;  %v8789_v11 = vmul.u32.u64.high %v8757_v30, %v3707_v44, %v8788_v55 }
 0x31b   :  { %vm5513_vm13 = vcmp.lt.s32.totalorder %v5512_v47, 0  ;;  %v6267_v13 = vpop.eup %6266  ;;  %v3820_v6 = vadd.s32 %v8700_v9, %v8697_v34  ;;  %v3972_v38 = vand.u32 2147483647, %v8725_v24  ;;  %v8794_v49 = vadd.f32 %v1842_v2, %v1585_v27 }
 0x31c   :  { %v3835_v50 = vsel %vm5513_vm13, 0, %v5512_v47  ;;  %v6269_v46 = vpop.eup %6268  ;;  %v3552_v35 = vxor.u32 2147483648, %v6267_v13  ;;  %v3699_v22 = vsel %vm3693_vm11, %v3696_v51, %v3698_v60  ;;  %v3851_v56 = vsel %vm3766_vm4, %v3850_v31, %v8731_v61 }
 0x31d   :  { %v3836_v62 = vsub.s32 32, %v3835_v50  ;;  %v3840_v20 = vsub.s32 4294967266, %v3835_v50  ;;  %v3549_v58 = vxor.u32 2147483648, %v6269_v46  ;;  %v3718_v59 = vadd.s32 1, %v8784_v1 }
 0x31e   :  { %vm3983_vm14 = vcmp.gt.s32.totalorder %v3982_v40, 0  ;;  %v3553_v34 = vsel %vm3551_vm7, %v3552_v35, %v6269_v46  ;;  %v3837_v9 = vshll.u32 %v8745_v45, %v3835_v50  ;;  %v3715_v15 = vmul.u32 %v8757_v30, %v3699_v22  ;;  %v8840_v35 = vld [vmem:[%s10030_s1 + $0xa] ss:$0 sm:$0xff] }
 0x31f   :  { %v3838_v14 = vshrl.u32 %v3820_v6, %v3836_v62  ;;  %v3841_v27 = vadd.s32 127, %v3840_v20  ;;  %v3550_v26 = vsel %vm3548_vm8, %v6267_v13, %v3549_v58  ;;  %vm3717_vm15 = vc.u32 %v8789_v11, %v8783_v25 }
 0x320   :  { %v3984_v8 = vsel %vm3983_vm14, %v3982_v40, 0  ;;  %v3554_v61 = vsel %vm3547_vm10, %v3550_v26, %v3553_v34  ;;  %v3719_v36 = vsel %vm3717_vm15, %v3718_v59, %v8784_v1  ;;  %vm8818_vm0 = vcmp.le.f32.partialorder %v3764_v32, 0.7853982 }
 0x321   :  { %v3839_v29 = vor.u32 %v3838_v14, %v3837_v9  ;;  %v3842_v3 = vshll.u32 %v3841_v27, 23  ;;  %v3555_v45 = vsel %vm3544_vm12, nan, %v3554_v61  ;;  %v3720_v4 = vadd.s32 %v3719_v36, %v3715_v15 }
 0x322   :  { %v3986_v42 = vand.u32 31, %v3984_v8  ;;  %v5374_v12 = vadd.f32 %v8755_v54, %v3555_v45  ;;  %v3853_v18 = vsel %vm8818_vm0, 0, %v3851_v56  ;;  %v3979_v28 = vand.u32 8388607, %v3972_v38 }
 0x323   :  { %v3843_v52 = vor.u32 4788187, %v3842_v3  ;;  %v3721_v31 = vadd.s32 536870912, %v3720_v4  ;;  %v3846_v47 = vcvt.s32.f32 %v3839_v29  ;;  %v3985_v51 = vshrl.u32 %v3984_v8, 5 }
 0x324   :  { %v3987_v33 = vsub.s32 32, %v3986_v42  ;;  %5406 = vst [vmem:[#allocation2 + $0x70] sm:$0xff] %v5374_v12  ;;  %v1946_v54 = vmul.f32 %v8648_v21, %v8794_v49  ;;  %v3998_v60 = vshll.u32 %v10178_v23, %v3986_v42  ;;  %v3989_v13 = vshll.u32 %v10175_v53, %v3986_v42 }
 0x325   :  { %v3844_v37 = vand.u32 2147483647, %v3843_v52  ;;  %v3722_v32 = vshrl.u32 %v3721_v31, 30  ;;  %v3992_v6 = vshll.u32 %v10176_v48, %v3986_v42  ;;  %v3995_v50 = vshll.u32 %v10177_v17, %v3986_v42 }
 0x326   :  { %v3990_v39 = vshrl.u32 %v10176_v48, %v3987_v33  ;;  %v3993_v57 = vshrl.u32 %v10177_v17, %v3987_v33  ;;  %v3996_v1 = vshrl.u32 %v10178_v23, %v3987_v33  ;;  %v3999_v55 = vshrl.u32 %v10179_v41, %v3987_v33 }
 0x327   :  { %v3847_v44 = vmul.f32 %v3846_v47, %v3844_v37  ;;  %v4002_v40 = vshrl.u32 %v10180_v16, %v3987_v33  ;;  %v3723_v2 = vshll.u32 %v3722_v32, 30  ;;  %v8844_v62 = vmul.f32 %v8840_v35, %v8553_v10 }
 0x328   :  { %v4000_v20 = vor.u32 %v3999_v55, %v3998_v60  ;;  %v4001_v22 = vshll.u32 %v10179_v41, %v3986_v42  ;;  %v3991_v56 = vor.u32 %v3990_v39, %v3989_v13  ;;  %v3994_v59 = vor.u32 %v3993_v57, %v3992_v6 }
 0x329   :  { %v3848_v46 = vxor.u32 2147483648, %v3847_v44  ;;  %v8847_v58 = vsub.s32 %v3720_v4, %v3723_v2  ;;  %v3997_v34 = vor.u32 %v3996_v1, %v3995_v50  ;;  %v3857_v14 = vadd.s32 3, %v3853_v18 }
 0x32a   :  { %v3980_v27 = vor.u32 8388608, %v3979_v28  ;;  %v4003_v26 = vor.u32 %v4002_v40, %v4001_v22  ;;  %vm4007_vm1 = vcmp.lt.s32.totalorder %v3985_v51, 4  ;;  %v8856_v8 = vadd.f32 %v8583_v5, %v1946_v54 }
 0x32b   :  { %v3849_v9 = vsel %vm3766_vm4, %v3848_v46, %v3847_v44  ;;  %v3726_v10 = vsub.s32 0, %v8847_v58  ;;  %vm4004_vm2 = vcmp.lt.s32.totalorder %v3985_v51, 1  ;;  %vm4006_vm3 = vcmp.lt.s32.totalorder %v3985_v51, 3 }
 0x32c   :  { %v3852_v15 = vsel %vm8818_vm0, %v8586_v63, %v3849_v9  ;;  %v4013_v61 = vsel %vm4007_vm1, %v4000_v20, 920167782  ;;  %v4009_v3 = vsel %vm4007_vm1, %v3997_v34, 2102212464  ;;  %v4012_v36 = vsel %vm4004_vm2, %v3991_v56, %v3994_v59 }
 0x32d   :  { %6270 = vcosq.f32 %v3852_v15  ;;  %v5507_v29 = vmin.u32 %v3726_v10, %v8847_v58  ;;  %v3988_v45 = vshrl.u32 %v10175_v53, %v3987_v33  ;;  %v4014_v4 = vsel %vm4006_vm3, %v3997_v34, %v4013_v61 }
 0x32e   :  { %6272 = vsinq.f32 %v3852_v15  ;;  %v4016_v42 = vsel %vm4004_vm2, %v3994_v59, %v3997_v34  ;;  %v4017_v12 = vsel %vm4007_vm1, %v4003_v26, 1326507024  ;;  %v3746_v52 = vsub.s32 4, %v3722_v32 }
 0x32f   :  { %v3728_v30 = vclz %v5507_v29  ;;  %vm4005_vm4 = vcmp.lt.s32.totalorder %v3985_v51, 2  ;;  %v4020_v18 = vshll.u32 %v3980_v27, 8  ;;  %v4008_v31 = vsel %vm4004_vm2, %v3988_v45, %v3991_v56  ;;  %v6003_v56 = vpop.f32.mrf.mxu0 }
 0x330   :  { %v4010_v28 = vsel %vm4006_vm3, %v3994_v59, %v4009_v3  ;;  %v4015_v37 = vsel %vm4005_vm4, %v4012_v36, %v4014_v4  ;;  %v4018_v47 = vsel %vm4006_vm3, %v4000_v20, %v4017_v12  ;;  %vm3662_vm5 = vcmp.lt.s32.totalorder %v8666_v43, 0 }
 0x331   :  { %v5508_v54 = vadd.s32 4294967294, %v3728_v30  ;;  %v4019_v39 = vsel %vm4005_vm4, %v4016_v42, %v4018_v47  ;;  %v8863_v57 = vmul.u32.u64.low %v4020_v18, %v4015_v37  ;;  %v8864_v60 = vmul.u32.u64.high %v4020_v18, %v4015_v37, %v8863_v57  ;;  %v1596_v3 = vpop.f32.mrf.mxu0  ;;  %v10224_v42 = vld [vmem:[#allocation8_spill] sm:$0xff] }
 0x332   :  { %v8867_v33 = vmul.u32.u64.low %v4020_v18, %v4019_v39  ;;  %v8868_v44 = vmul.u32.u64.high %v4020_v18, %v4019_v39, %v8867_v33  ;;  %v3871_v1 = vand.u32 2139095040, %v8856_v8  ;;  %vm8873_vm6 = vcmp.le.f32.partialorder %v3660_v0, 0.7853982 }
 0x333   :  { %vm5509_vm7 = vcmp.lt.s32.totalorder %v5508_v54, 0  ;;  %v3747_v51 = vsel %vm3662_vm5, %v3746_v52, %v3722_v32  ;;  %v4011_v40 = vsel %vm4005_vm4, %v4008_v31, %v4010_v28  ;;  %v3858_v2 = vand.u32 3, %v3857_v14  ;;  %v6053_v31 = vpop.f32.mrf.mxu1 }
 0x334   :  { %v3716_v13 = vadd.s32 %v8783_v25, %v8789_v11  ;;  %v3731_v6 = vsel %vm5509_vm7, 0, %v5508_v54  ;;  %v3872_v50 = vshrl.u32 %v3871_v1, 23  ;;  %v4030_v22 = vadd.s32 1, %v8864_v60  ;;  %v10225_v54 = vld [vmem:[#allocation9_spill] sm:$0xff] }
 0x335   :  { %v3732_v46 = vsub.s32 32, %v3731_v6  ;;  %v3736_v20 = vsub.s32 4294967266, %v3731_v6  ;;  %v3868_v0 = vand.u32 2147483647, %v8856_v8  ;;  %vm3856_vm8 = vweird.f32 %v8586_v63 }
 0x336   :  { %v3749_v59 = vsel %vm8873_vm6, 0, %v3747_v51  ;;  %v4027_v32 = vmul.u32 %v4020_v18, %v4011_v40  ;;  %vm4029_vm9 = vc.u32 %v8868_v44, %v8863_v57  ;;  %v5514_v34 = vadd.s32 4294967169, %v3872_v50 }
 0x337   :  { %v3733_v25 = vshll.u32 %v8847_v58, %v3731_v6  ;;  %v3734_v11 = vshrl.u32 %v3716_v13, %v3732_v46  ;;  %v3737_v9 = vadd.s32 127, %v3736_v20  ;;  %v4031_v14 = vsel %vm4029_vm9, %v4030_v22, %v8864_v60 }
 0x338   :  { %vm3859_vm10 = vcmp.lt.s32.totalorder %v3858_v2, 2  ;;  %vm3860_vm11 = vcmp.eq.s32.totalorder %v3858_v2, 0  ;;  %v4032_v27 = vadd.s32 %v4031_v14, %v4027_v32  ;;  %v3878_v26 = vadd.s32 1, %v5514_v34 }
 0x339   :  { %vm3863_vm12 = vcmp.eq.s32.totalorder %v3858_v2, 2  ;;  %v3735_v10 = vor.u32 %v3734_v11, %v3733_v25  ;;  %v3738_v61 = vshll.u32 %v3737_v9, 23  ;;  %v3753_v29 = vadd.s32 3, %v3749_v59  ;;  %v1854_v59 = vpop.f32.mrf.mxu1 }
 0x33a   :  { %v6271_v15 = vpop.eup %6270  ;;  %v4033_v4 = vadd.s32 536870912, %v4032_v27  ;;  %vm3879_vm13 = vcmp.gt.s32.totalorder %v3878_v26, 0  ;;  %v1603_v58 = vadd.f32 %v6003_v56, %v10224_v42  ;;  %v3875_v52 = vand.u32 8388607, %v3868_v0 }
 0x33b   :  { %v6273_v36 = vpop.eup %6272  ;;  %v3864_v45 = vxor.u32 2147483648, %v6271_v15  ;;  %v3739_v30 = vor.u32 4788187, %v3738_v61  ;;  %v3880_v18 = vsel %vm3879_vm13, %v3878_v26, 0  ;;  %v1597_v39 = vadd.f32 %v1596_v3, %v10225_v54 }
 0x33c   :  { %v3861_v12 = vxor.u32 2147483648, %v6273_v36  ;;  %v8892_v37 = vshrl.u32 %v4033_v4, 30  ;;  %v3882_v47 = vand.u32 31, %v3880_v18  ;;  %v3742_v1 = vcvt.s32.f32 %v3735_v10 }
 0x33d   :  { %v3865_v28 = vsel %vm3863_vm12, %v3864_v45, %v6273_v36  ;;  %v3740_v33 = vand.u32 2147483647, %v3739_v30  ;;  %v8896_v51 = vand.u32 3, %v3753_v29  ;;  %v8900_v50 = vadd.f32 %v6053_v31, %v1603_v58 }
 0x33e   :  { %v3862_v60 = vsel %vm3860_vm11, %v6271_v15, %v3861_v12  ;;  %v4035_v13 = vshll.u32 %v8892_v37, 30  ;;  %v3883_v6 = vsub.s32 32, %v3882_v47  ;;  %v4028_v22 = vadd.s32 %v8863_v57, %v8868_v44 }
 0x33f   :  { %v3866_v40 = vsel %vm3859_vm10, %v3862_v60, %v3865_v28  ;;  %v3743_v20 = vmul.f32 %v3742_v1, %v3740_v33  ;;  %v3876_v56 = vor.u32 8388608, %v3875_v52  ;;  %v3885_v2 = vshll.u32 %v10175_v53, %v3882_v47 }
 0x340   :  { %v3867_v46 = vsel %vm3856_vm8, nan, %v3866_v40  ;;  %v8906_v34 = vsub.s32 %v4032_v27, %v4035_v13  ;;  %v8909_v25 = vadd.f32 %v1854_v59, %v1597_v39  ;;  %v3886_v9 = vshrl.u32 %v10176_v48, %v3883_v6 }
 0x341   :  { %v5377_v32 = vadd.f32 %v8844_v62, %v3867_v46  ;;  %v3744_v11 = vxor.u32 2147483648, %v3743_v20  ;;  %v3888_v14 = vshll.u32 %v10176_v48, %v3882_v47  ;;  %v3889_v63 = vshrl.u32 %v10177_v17, %v3883_v6 }
 0x342   :  { %v4038_v57 = vsub.s32 0, %v8906_v34  ;;  %v3891_v44 = vshll.u32 %v10177_v17, %v3882_v47  ;;  %v3892_v62 = vshrl.u32 %v10178_v23, %v3883_v6  ;;  %v1949_v27 = vmul.f32 %v8648_v21, %v8900_v50 }
 0x343   :  { %5409 = vst [vmem:[#allocation2 + $0x88] sm:$0xff] %v5377_v32  ;;  %v3745_v26 = vsel %vm3662_vm5, %v3744_v11, %v3743_v20  ;;  %v3881_v15 = vshrl.u32 %v3880_v18, 5  ;;  %v3887_v10 = vor.u32 %v3886_v9, %v3885_v2  ;;  %v3890_v61 = vor.u32 %v3889_v63, %v3888_v14 }
 0x344   :  { %v3748_v29 = vsel %vm8873_vm6, %v8666_v43, %v3745_v26  ;;  %v5519_v3 = vmin.u32 %v4038_v57, %v8906_v34  ;;  %v3893_v36 = vor.u32 %v3892_v62, %v3891_v44  ;;  %v3894_v45 = vshll.u32 %v10178_v23, %v3882_v47 }
 0x345   :  { %6274 = vcosq.f32 %v3748_v29  ;;  %v3895_v4 = vshrl.u32 %v10179_v41, %v3883_v6  ;;  %v3897_v42 = vshll.u32 %v10179_v41, %v3882_v47  ;;  %v3898_v58 = vshrl.u32 %v10180_v16, %v3883_v6 }
 0x346   :  { %6276 = vsinq.f32 %v3748_v29  ;;  %v4040_v12 = vclz %v5519_v3  ;;  %v3916_v30 = vshll.u32 %v3876_v56, 8  ;;  %v1948_v52 = vmul.f32 %v8648_v21, %v8909_v25 }
 0x347   :  { %v4058_v55 = vsub.s32 4, %v8892_v37  ;;  %v3896_v18 = vor.u32 %v3895_v4, %v3894_v45  ;;  %v3899_v31 = vor.u32 %v3898_v58, %v3897_v42  ;;  %v8933_v28 = vadd.f32 %v8583_v5, %v1949_v27 }
 0x348   :  { %v5520_v54 = vadd.s32 4294967294, %v4040_v12  ;;  %v3884_v39 = vshrl.u32 %v10175_v53, %v3883_v6  ;;  %vm3900_vm14 = vcmp.lt.s32.totalorder %v3881_v15, 1  ;;  %vm3903_vm15 = vcmp.lt.s32.totalorder %v3881_v15, 4 }
 0x349   :  { %vm3902_vm0 = vcmp.lt.s32.totalorder %v3881_v15, 3  ;;  %v3905_v47 = vsel %vm3903_vm15, %v3893_v36, 2102212464  ;;  %v3908_v60 = vsel %vm3900_vm14, %v3887_v10, %v3890_v61  ;;  %v3909_v33 = vsel %vm3903_vm15, %v3896_v18, 920167782 }
 0x34a   :  { %vm5521_vm1 = vcmp.lt.s32.totalorder %v5520_v54, 0  ;;  %vm3901_vm2 = vcmp.lt.s32.totalorder %v3881_v15, 2  ;;  %v3910_v1 = vsel %vm3902_vm0, %v3893_v36, %v3909_v33  ;;  %v3912_v21 = vsel %vm3900_vm14, %v3890_v61, %v3893_v36 }
 0x34b   :  { %v4043_v40 = vsel %vm5521_vm1, 0, %v5520_v54  ;;  %v3904_v13 = vsel %vm3900_vm14, %v3884_v39, %v3887_v10  ;;  %v3911_v46 = vsel %vm3901_vm2, %v3908_v60, %v3910_v1  ;;  %v3913_v20 = vsel %vm3903_vm15, %v3899_v31, 1326507024 }
 0x34c   :  { %v4044_v56 = vsub.s32 32, %v4043_v40  ;;  %v4048_v59 = vsub.s32 4294967266, %v4043_v40  ;;  %v3906_v32 = vsel %vm3902_vm0, %v3890_v61, %v3905_v47  ;;  %v3914_v2 = vsel %vm3902_vm0, %v3896_v18, %v3913_v20 }
 0x34d   :  { %v4045_v6 = vshll.u32 %v8906_v34, %v4043_v40  ;;  %v3915_v11 = vsel %vm3901_vm2, %v3912_v21, %v3914_v2  ;;  %v8939_v9 = vmul.u32.u64.low %v3916_v30, %v3911_v46  ;;  %v8940_v14 = vmul.u32.u64.high %v3916_v30, %v3911_v46, %v8939_v9  ;;  %v6006_v40 = vpop.f32.mrf.mxu0 }
 0x34e   :  { %v4046_v63 = vshrl.u32 %v4028_v22, %v4044_v56  ;;  %v4049_v57 = vadd.s32 127, %v4048_v59  ;;  %v8943_v44 = vmul.u32.u64.low %v3916_v30, %v3915_v11  ;;  %v8944_v62 = vmul.u32.u64.high %v3916_v30, %v3915_v11, %v8943_v44  ;;  %v10228_v11 = vld [vmem:[#allocation10_spill] sm:$0xff] }
 0x34f   :  { %vm3752_vm3 = vweird.f32 %v8666_v43  ;;  %v5344_v27 = vmul.f32 %v8840_v35, %v8626_v7  ;;  %v3907_v26 = vsel %vm3901_vm2, %v3904_v13, %v3906_v32  ;;  %v4183_v34 = vand.u32 2139095040, %v8933_v28 }
 0x350   :  { %vm8953_vm4 = vcmp.le.f32.partialorder %v3972_v38, 0.7853982  ;;  %vm3974_vm5 = vcmp.lt.s32.totalorder %v8725_v24, 0  ;;  %v4047_v22 = vor.u32 %v4046_v63, %v4045_v6  ;;  %v4050_v61 = vshll.u32 %v4049_v57, 23 }
 0x351   :  { %vm3759_vm6 = vcmp.eq.s32.totalorder %v8896_v51, 2  ;;  %v3926_v29 = vadd.s32 1, %v8940_v14  ;;  %v4184_v3 = vshrl.u32 %v4183_v34, 23  ;;  %v8961_v7 = vadd.f32 %v8583_v5, %v1948_v52 }
 0x352   :  { %v6275_v15 = vpop.eup %6274  ;;  %v4051_v36 = vor.u32 4788187, %v4050_v61  ;;  %v4059_v38 = vsel %vm3974_vm5, %v4058_v55, %v8892_v37  ;;  %v3923_v45 = vmul.u32 %v3916_v30, %v3907_v26  ;;  %vm3925_vm7 = vc.u32 %v8944_v62, %v8939_v9 }
 0x353   :  { %v6277_v4 = vpop.eup %6276  ;;  %v3760_v42 = vxor.u32 2147483648, %v6275_v15  ;;  %v3927_v58 = vsel %vm3925_vm7, %v3926_v29, %v8940_v14  ;;  %v4180_v12 = vand.u32 2147483647, %v8933_v28  ;;  %v5526_v18 = vadd.s32 4294967169, %v4184_v3 }
 0x354   :  { %v3757_v31 = vxor.u32 2147483648, %v6277_v4  ;;  %v4052_v5 = vand.u32 2147483647, %v4051_v36  ;;  %v4054_v52 = vcvt.s32.f32 %v4047_v22  ;;  %v3928_v54 = vadd.s32 %v3927_v58, %v3923_v45 }
 0x355   :  { %vm3755_vm8 = vcmp.lt.s32.totalorder %v8896_v51, 2  ;;  %vm3756_vm9 = vcmp.eq.s32.totalorder %v8896_v51, 0  ;;  %v3761_v37 = vsel %vm3759_vm6, %v3760_v42, %v6277_v4  ;;  %v4190_v30 = vadd.s32 1, %v5526_v18 }
 0x356   :  { %v3758_v55 = vsel %vm3756_vm9, %v6275_v15, %v3757_v31  ;;  %v4055_v39 = vmul.f32 %v4054_v52, %v4052_v5  ;;  %v4061_v47 = vsel %vm8953_vm4, 0, %v4059_v38  ;;  %v3929_v60 = vadd.s32 536870912, %v3928_v54 }
 0x357   :  { %v3762_v33 = vsel %vm3755_vm8, %v3758_v55, %v3761_v37  ;;  %v4187_v1 = vand.u32 8388607, %v4180_v12  ;;  %vm4191_vm10 = vcmp.gt.s32.totalorder %v4190_v30, 0  ;;  %v4079_v21 = vand.u32 2139095040, %v8961_v7 }
 0x358   :  { %v3763_v13 = vsel %vm3752_vm3, nan, %v3762_v33  ;;  %v4056_v51 = vxor.u32 2147483648, %v4055_v39  ;;  %v8981_v46 = vshrl.u32 %v3929_v60, 30  ;;  %v4192_v20 = vsel %vm4191_vm10, %v4190_v30, 0 }
 0x359   :  { %v5376_v56 = vadd.f32 %v5344_v27, %v3763_v13  ;;  %v4194_v59 = vand.u32 31, %v4192_v20  ;;  %v8987_v2 = vmul.f32 %v8840_v35, %v8668_v19  ;;  %v8991_v14 = vadd.f32 %v6006_v40, %v10228_v11 }
 0x35a   :  { %v4057_v32 = vsel %vm3974_vm5, %v4056_v51, %v4055_v39  ;;  %v3931_v6 = vshll.u32 %v8981_v46, 30  ;;  %v4065_v63 = vadd.s32 3, %v4061_v47  ;;  %v4188_v57 = vor.u32 8388608, %v4187_v1 }
 0x35b   :  { %5408 = vst [vmem:[#allocation2 + $0x80] sm:$0xff] %v5376_v56  ;;  %v4060_v43 = vsel %vm8953_vm4, %v8725_v24, %v4057_v32  ;;  %v4195_v44 = vsub.s32 32, %v4194_v59  ;;  %v4193_v26 = vshrl.u32 %v4192_v20, 5  ;;  %v4080_v34 = vshrl.u32 %v4079_v21, 23 }
 0x35c   :  { %6278 = vcosq.f32 %v4060_v43  ;;  %v8996_v27 = vsub.s32 %v3928_v54, %v3931_v6  ;;  %v4197_v19 = vshll.u32 %v10175_v53, %v4194_v59  ;;  %v4200_v61 = vshll.u32 %v10176_v48, %v4194_v59 }
 0x35d   :  { %6280 = vsinq.f32 %v4060_v43  ;;  %v4198_v22 = vshrl.u32 %v10176_v48, %v4195_v44  ;;  %v4201_v10 = vshrl.u32 %v10177_v17, %v4195_v44  ;;  %v4203_v3 = vshll.u32 %v10177_v17, %v4194_v59 }
 0x35e   :  { %v3934_v29 = vsub.s32 0, %v8996_v27  ;;  %v4204_v15 = vshrl.u32 %v10178_v23, %v4195_v44  ;;  %v9005_v36 = vand.u32 3, %v4065_v63  ;;  %v4206_v38 = vshll.u32 %v10178_v23, %v4194_v59 }
 0x35f   :  { %v4207_v45 = vshrl.u32 %v10179_v41, %v4195_v44  ;;  %v4076_v4 = vand.u32 2147483647, %v8961_v7  ;;  %v4199_v58 = vor.u32 %v4198_v22, %v4197_v19  ;;  %v4202_v18 = vor.u32 %v4201_v10, %v4200_v61 }
 0x360   :  { %v5515_v42 = vmin.u32 %v3934_v29, %v8996_v27  ;;  %v4205_v31 = vor.u32 %v4204_v15, %v4203_v3  ;;  %v4209_v52 = vshll.u32 %v10179_v41, %v4194_v59  ;;  %v4210_v54 = vshrl.u32 %v10180_v16, %v4195_v44 }
 0x361   :  { %v4208_v5 = vor.u32 %v4207_v45, %v4206_v38  ;;  %v9013_v37 = vshll.u32 %v4188_v57, 8  ;;  %v4196_v55 = vshrl.u32 %v10175_v53, %v4195_v44  ;;  %vm4212_vm11 = vcmp.lt.s32.totalorder %v4193_v26, 1 }
 0x362   :  { %v3936_v30 = vclz %v5515_v42  ;;  %v5522_v39 = vadd.s32 4294967169, %v4080_v34  ;;  %vm4071_vm12 = vcmp.eq.s32.totalorder %v9005_v36, 2  ;;  %v4211_v47 = vor.u32 %v4210_v54, %v4209_v52 }
 0x363   :  { %vm4213_vm13 = vcmp.lt.s32.totalorder %v4193_v26, 2  ;;  %vm4214_vm14 = vcmp.lt.s32.totalorder %v4193_v26, 3  ;;  %vm4215_vm15 = vcmp.lt.s32.totalorder %v4193_v26, 4  ;;  %vm4068_vm0 = vcmp.eq.s32.totalorder %v9005_v36, 0 }
 0x364   :  { %v5516_v60 = vadd.s32 4294967294, %v3936_v30  ;;  %v4217_v33 = vsel %vm4215_vm15, %v4205_v31, 2102212464  ;;  %v4220_v1 = vsel %vm4212_vm11, %v4199_v58, %v4202_v18  ;;  %v4221_v21 = vsel %vm4215_vm15, %v4208_v5, 920167782 }
 0x365   :  { %vm3870_vm1 = vcmp.lt.s32.totalorder %v8856_v8, 0  ;;  %v4216_v40 = vsel %vm4212_vm11, %v4196_v55, %v4199_v58  ;;  %v4222_v13 = vsel %vm4214_vm14, %v4205_v31, %v4221_v21  ;;  %v4224_v51 = vsel %vm4212_vm11, %v4202_v18, %v4205_v31 }
 0x366   :  { %v4225_v20 = vsel %vm4215_vm15, %v4211_v47, 1326507024  ;;  %vm4064_vm2 = vweird.f32 %v8725_v24  ;;  %vm5517_vm3 = vcmp.lt.s32.totalorder %v5516_v60, 0  ;;  %v4218_v56 = vsel %vm4214_vm14, %v4202_v18, %v4217_v33 }
 0x367   :  { %v4223_v59 = vsel %vm4213_vm13, %v4220_v1, %v4222_v13  ;;  %v4226_v32 = vsel %vm4214_vm14, %v4208_v5, %v4225_v20  ;;  %v3939_v6 = vsel %vm5517_vm3, 0, %v5516_v60  ;;  %vm9032_vm4 = vcmp.le.f32.partialorder %v3868_v0, 0.7853982  ;;  %v6056_v60 = vpop.f32.mrf.mxu1 }
 0x368   :  { %v4227_v11 = vsel %vm4213_vm13, %v4224_v51, %v4226_v32  ;;  %v9026_v43 = vmul.u32.u64.low %v9013_v37, %v4223_v59  ;;  %v9027_v63 = vmul.u32.u64.high %v9013_v37, %v4223_v59, %v9026_v43  ;;  %v3924_v44 = vadd.s32 %v8939_v9, %v8944_v62 }
 0x369   :  { %v3940_v34 = vsub.s32 32, %v3939_v6  ;;  %v3944_v19 = vsub.s32 4294967266, %v3939_v6  ;;  %v3954_v22 = vsub.s32 4, %v8981_v46  ;;  %v6279_v61 = vpop.eup %6278  ;;  %v4219_v29 = vsel %vm4213_vm13, %v4216_v40, %v4218_v56 }
 0x36a   :  { %v9041_v10 = vmul.u32.u64.low %v9013_v37, %v4227_v11  ;;  %v9042_v3 = vmul.u32.u64.high %v9013_v37, %v4227_v11, %v9041_v10  ;;  %v4086_v15 = vadd.s32 1, %v5522_v39  ;;  %v6281_v38 = vpop.eup %6280  ;;  %v4072_v0 = vxor.u32 2147483648, %v6279_v61 }
 0x36b   :  { %v3941_v45 = vshll.u32 %v8996_v27, %v3939_v6  ;;  %v3942_v42 = vshrl.u32 %v3924_v44, %v3940_v34  ;;  %v3945_v58 = vadd.s32 127, %v3944_v19  ;;  %v4069_v18 = vxor.u32 2147483648, %v6281_v38 }
 0x36c   :  { %v4238_v9 = vadd.s32 1, %v9027_v63  ;;  %v4083_v62 = vand.u32 8388607, %v4076_v4  ;;  %vm4087_vm5 = vcmp.gt.s32.totalorder %v4086_v15, 0  ;;  %v4073_v26 = vsel %vm4071_vm12, %v4072_v0, %v6281_v38 }
 0x36d   :  { %v3943_v31 = vor.u32 %v3942_v42, %v3941_v45  ;;  %v3946_v5 = vshll.u32 %v3945_v58, 23  ;;  %v4088_v52 = vsel %vm4087_vm5, %v4086_v15, 0  ;;  %vm4067_vm6 = vcmp.lt.s32.totalorder %v9005_v36, 2 }
 0x36e   :  { %v4070_v27 = vsel %vm4068_vm0, %v6279_v61, %v4069_v18  ;;  %v4235_v54 = vmul.u32 %v9013_v37, %v4219_v29  ;;  %vm4237_vm7 = vc.u32 %v9042_v3, %v9026_v43  ;;  %v3955_v39 = vsel %vm3870_vm1, %v3954_v22, %v8981_v46 }
 0x36f   :  { %v4074_v30 = vsel %vm4067_vm6, %v4070_v27, %v4073_v26  ;;  %v3947_v55 = vor.u32 4788187, %v3946_v5  ;;  %v4239_v47 = vsel %vm4237_vm7, %v4238_v9, %v9027_v63  ;;  %v4090_v36 = vand.u32 31, %v4088_v52 }
 0x370   :  { %v4075_v33 = vsel %vm4064_vm2, nan, %v4074_v30  ;;  %v4240_v1 = vadd.s32 %v4239_v47, %v4235_v54  ;;  %v9063_v21 = vadd.f32 %v6056_v60, %v8991_v14  ;;  %v3950_v13 = vcvt.s32.f32 %v3943_v31  ;;  %v9094_v31 = vld [vmem:[%s10030_s1 + $0x8] ss:$0 sm:$0xff] }
 0x371   :  { %v5379_v37 = vadd.f32 %v8987_v2, %v4075_v33  ;;  %v3948_v40 = vand.u32 2147483647, %v3947_v55  ;;  %v4084_v51 = vor.u32 8388608, %v4083_v62  ;;  %v3957_v20 = vsel %vm9032_vm4, 0, %v3955_v39 }
 0x372   :  { %v4241_v46 = vadd.s32 536870912, %v4240_v1  ;;  %v9068_v56 = vshrl.u32 %v4088_v52, 5  ;;  %v4091_v59 = vsub.s32 32, %v4090_v36  ;;  %v4093_v32 = vshll.u32 %v10175_v53, %v4090_v36 }
 0x373   :  { %5411 = vst [vmem:[#allocation2 + $0x98] sm:$0xff] %v5379_v37  ;;  %v3951_v24 = vmul.f32 %v3950_v13, %v3948_v40  ;;  %v4096_v6 = vshll.u32 %v10176_v48, %v4090_v36  ;;  %v4099_v14 = vshll.u32 %v10177_v17, %v4090_v36  ;;  %v4102_v44 = vshll.u32 %v10178_v23, %v4090_v36  ;;  %v9116_v37 = vld [vmem:[%s10030_s1 + $0x9] ss:$0 sm:$0xff] }
 0x374   :  { %v4242_v11 = vshrl.u32 %v4241_v46, 30  ;;  %v4094_v2 = vshrl.u32 %v10176_v48, %v4091_v59  ;;  %v4097_v63 = vshrl.u32 %v10177_v17, %v4091_v59  ;;  %v4100_v19 = vshrl.u32 %v10178_v23, %v4091_v59 }
 0x375   :  { %v3952_v34 = vxor.u32 2147483648, %v3951_v24  ;;  %v4103_v22 = vshrl.u32 %v10179_v41, %v4091_v59  ;;  %v4106_v61 = vshrl.u32 %v10180_v16, %v4091_v59  ;;  %v3961_v29 = vadd.s32 3, %v3957_v20 }
 0x376   :  { %v4243_v10 = vshll.u32 %v4242_v11, 30  ;;  %v4095_v15 = vor.u32 %v4094_v2, %v4093_v32  ;;  %v4105_v38 = vshll.u32 %v10179_v41, %v4090_v36  ;;  %v4098_v45 = vor.u32 %v4097_v63, %v4096_v6 }
 0x377   :  { %v3953_v0 = vsel %vm3870_vm1, %v3952_v34, %v3951_v24  ;;  %v4101_v42 = vor.u32 %v4100_v19, %v4099_v14  ;;  %v4104_v58 = vor.u32 %v4103_v22, %v4102_v44  ;;  %v9087_v26 = vshll.u32 %v4084_v51, 8 }
 0x378   :  { %v3956_v18 = vsel %vm9032_vm4, %v8856_v8, %v3953_v0  ;;  %v9085_v9 = vsub.s32 %v4240_v1, %v4243_v10  ;;  %v4107_v62 = vor.u32 %v4106_v61, %v4105_v38  ;;  %vm4108_vm8 = vcmp.lt.s32.totalorder %v9068_v56, 1  ;;  %v1608_v38 = vpop.f32.mrf.mxu0 }
 0x379   :  { %6282 = vcosq.f32 %v3956_v18  ;;  %vm4109_vm9 = vcmp.lt.s32.totalorder %v9068_v56, 2  ;;  %v1951_v5 = vmul.f32 %v9094_v31, %v9063_v21  ;;  %vm4110_vm10 = vcmp.lt.s32.totalorder %v9068_v56, 3 }
 0x37a   :  { %6284 = vsinq.f32 %v3956_v18  ;;  %v4246_v57 = vsub.s32 0, %v9085_v9  ;;  %vm4111_vm11 = vcmp.lt.s32.totalorder %v9068_v56, 4  ;;  %v4092_v52 = vshrl.u32 %v10175_v53, %v4091_v59 }
 0x37b   :  { %v4113_v27 = vsel %vm4111_vm11, %v4101_v42, 2102212464  ;;  %v4116_v54 = vsel %vm4108_vm8, %v4095_v15, %v4098_v45  ;;  %v4117_v30 = vsel %vm4111_vm11, %v4104_v58, 920167782  ;;  %v4120_v47 = vsel %vm4108_vm8, %v4098_v45, %v4101_v42 }
 0x37c   :  { %v5527_v55 = vmin.u32 %v4246_v57, %v9085_v9  ;;  %v4118_v39 = vsel %vm4110_vm10, %v4101_v42, %v4117_v30  ;;  %v4121_v60 = vsel %vm4111_vm11, %v4107_v62, 1326507024  ;;  %v4266_v33 = vsub.s32 4, %v4242_v11 }
 0x37d   :  { %v4119_v1 = vsel %vm4109_vm9, %v4116_v54, %v4118_v39  ;;  %v4122_v36 = vsel %vm4110_vm10, %v4104_v58, %v4121_v60  ;;  %v9119_v40 = vadd.f32 %v9116_v37, %v1951_v5  ;;  %v3962_v13 = vand.u32 3, %v3961_v29 }
 0x37e   :  { %v4248_v51 = vclz %v5527_v55  ;;  %v4112_v20 = vsel %vm4108_vm8, %v4092_v52, %v4095_v15  ;;  %v4114_v46 = vsel %vm4110_vm10, %v4098_v45, %v4113_v27  ;;  %v4123_v59 = vsel %vm4109_vm9, %v4120_v47, %v4122_v36  ;;  %v10233_v27 = vld [vmem:[#allocation11_spill] sm:$0xff] }
 0x37f   :  { %v9128_v24 = vmul.u32.u64.low %v9087_v26, %v4119_v1  ;;  %v9129_v32 = vmul.u32.u64.high %v9087_v26, %v4119_v1, %v9128_v24  ;;  %vm4182_vm12 = vcmp.lt.s32.totalorder %v8933_v28, 0  ;;  %v5346_v63 = vmul.f32 %v8840_v35, %v8794_v49 }
 0x380   :  { %v5528_v6 = vadd.s32 4294967294, %v4248_v51  ;;  %v9134_v14 = vmul.u32.u64.low %v9087_v26, %v4123_v59  ;;  %v9135_v2 = vmul.u32.u64.high %v9087_v26, %v4123_v59, %v9134_v14  ;;  %v4267_v44 = vsel %vm4182_vm12, %v4266_v33, %v4242_v11  ;;  %v1866_v51 = vpop.f32.mrf.mxu1 }
 0x381   :  { %v4391_v34 = vand.u32 2139095040, %v9119_v40  ;;  %vm3963_vm13 = vcmp.lt.s32.totalorder %v3962_v13, 2  ;;  %vm9144_vm14 = vcmp.le.f32.partialorder %v4180_v12, 0.7853982  ;;  %v4115_v22 = vsel %vm4109_vm9, %v4112_v20, %v4114_v46 }
 0x382   :  { %vm5529_vm15 = vcmp.lt.s32.totalorder %v5528_v6, 0  ;;  %vm3960_vm0 = vweird.f32 %v8856_v8  ;;  %vm3964_vm1 = vcmp.eq.s32.totalorder %v3962_v13, 0  ;;  %v4134_v61 = vadd.s32 1, %v9129_v32 }
 0x383   :  { %v4251_v49 = vsel %vm5529_vm15, 0, %v5528_v6  ;;  %v4392_v11 = vshrl.u32 %v4391_v34, 23  ;;  %v4236_v29 = vadd.s32 %v9026_v43, %v9042_v3  ;;  %v4269_v12 = vsel %vm9144_vm14, 0, %v4267_v44  ;;  %v6009_v6 = vpop.f32.mrf.mxu0 }
 0x384   :  { %v4252_v10 = vsub.s32 32, %v4251_v49  ;;  %v4256_v15 = vsub.s32 4294967266, %v4251_v49  ;;  %v4131_v0 = vmul.u32 %v9087_v26, %v4115_v22  ;;  %vm4133_vm2 = vc.u32 %v9135_v2, %v9128_v24 }
 0x385   :  { %v4388_v56 = vand.u32 2147483647, %v9119_v40  ;;  %v5534_v45 = vadd.s32 4294967169, %v4392_v11  ;;  %v4253_v58 = vshll.u32 %v9085_v9, %v4251_v49  ;;  %v4135_v43 = vsel %vm4133_vm2, %v4134_v61, %v9129_v32 }
 0x386   :  { %v6283_v42 = vpop.eup %6282  ;;  %v4254_v18 = vshrl.u32 %v4236_v29, %v4252_v10  ;;  %v4257_v62 = vadd.s32 127, %v4256_v15  ;;  %v4136_v57 = vadd.s32 %v4135_v43, %v4131_v0  ;;  %v1609_v54 = vadd.f32 %v1608_v38, %v10233_v27  ;;  %v10234_v10 = vld [vmem:[#allocation12_spill] sm:$0xff] }
 0x387   :  { %v6285_v3 = vpop.eup %6284  ;;  %v3968_v5 = vxor.u32 2147483648, %v6283_v42  ;;  %v4398_v52 = vadd.s32 1, %v5534_v45  ;;  %vm3967_vm3 = vcmp.eq.s32.totalorder %v3962_v13, 2  ;;  %v4273_v47 = vadd.s32 3, %v4269_v12 }
 0x388   :  { %v3965_v26 = vxor.u32 2147483648, %v6285_v3  ;;  %v4255_v30 = vor.u32 %v4254_v18, %v4253_v58  ;;  %v4258_v55 = vshll.u32 %v4257_v62, 23  ;;  %v4137_v60 = vadd.s32 536870912, %v4136_v57 }
 0x389   :  { %v3969_v39 = vsel %vm3967_vm3, %v3968_v5, %v6285_v3  ;;  %vm4399_vm4 = vcmp.gt.s32.totalorder %v4398_v52, 0  ;;  %v4395_v1 = vand.u32 8388607, %v4388_v56  ;;  %v9169_v32 = vadd.f32 %v1866_v51, %v1609_v54 }
 0x38a   :  { %v3966_v9 = vsel %vm3964_vm1, %v6283_v42, %v3965_v26  ;;  %v4259_v33 = vor.u32 4788187, %v4258_v55  ;;  %v4400_v36 = vsel %vm4399_vm4, %v4398_v52, 0  ;;  %v9167_v46 = vshrl.u32 %v4137_v60, 30 }
 0x38b   :  { %v3970_v20 = vsel %vm3963_vm13, %v3966_v9, %v3969_v39  ;;  %v4402_v59 = vand.u32 31, %v4400_v36  ;;  %v4262_v34 = vcvt.s32.f32 %v4255_v30  ;;  %v9174_v29 = vand.u32 3, %v4273_v47  ;;  %v6059_v47 = vpop.f32.mrf.mxu1 }
 0x38c   :  { %v3971_v14 = vsel %vm3960_vm0, nan, %v3970_v20  ;;  %v4260_v44 = vand.u32 2147483647, %v4259_v33  ;;  %v4139_v49 = vshll.u32 %v9167_v46, 30  ;;  %v4396_v13 = vor.u32 8388608, %v4395_v1 }
 0x38d   :  { %v5378_v22 = vadd.f32 %v5346_v63, %v3971_v14  ;;  %v4403_v61 = vsub.s32 32, %v4402_v59  ;;  %v1627_v15 = vadd.f32 %v6009_v6, %v10234_v10  ;;  %v4132_v12 = vadd.s32 %v9128_v24, %v9135_v2 }
 0x38e   :  { %v4263_v11 = vmul.f32 %v4262_v34, %v4260_v44  ;;  %v9179_v38 = vsub.s32 %v4136_v57, %v4139_v49  ;;  %v1950_v63 = vmul.f32 %v9094_v31, %v9169_v32  ;;  %v4405_v45 = vshll.u32 %v10175_v53, %v4402_v59 }
 0x38f   :  { %5410 = vst [vmem:[#allocation2 + $0x90] sm:$0xff] %v5378_v22  ;;  %v4406_v8 = vshrl.u32 %v10176_v48, %v4403_v61  ;;  %v4409_v42 = vshrl.u32 %v10177_v17, %v4403_v61  ;;  %v4412_v58 = vshrl.u32 %v10178_v23, %v4403_v61  ;;  %v4401_v62 = vshrl.u32 %v4400_v36, 5 }
 0x390   :  { %v4264_v0 = vxor.u32 2147483648, %v4263_v11  ;;  %v4142_v18 = vsub.s32 0, %v9179_v38  ;;  %v4408_v43 = vshll.u32 %v10176_v48, %v4402_v59  ;;  %v4411_v24 = vshll.u32 %v10177_v17, %v4402_v59 }
 0x391   :  { %v4407_v3 = vor.u32 %v4406_v8, %v4405_v45  ;;  %v4414_v5 = vshll.u32 %v10178_v23, %v4402_v59  ;;  %v4415_v57 = vshrl.u32 %v10179_v41, %v4403_v61  ;;  %v4417_v55 = vshll.u32 %v10179_v41, %v4402_v59 }
 0x392   :  { %v4265_v2 = vsel %vm4182_vm12, %v4264_v0, %v4263_v11  ;;  %v5523_v27 = vmin.u32 %v4142_v18, %v9179_v38  ;;  %v4410_v54 = vor.u32 %v4409_v42, %v4408_v43  ;;  %v4413_v26 = vor.u32 %v4412_v58, %v4411_v24 }
 0x393   :  { %v4268_v52 = vsel %vm9144_vm14, %v8933_v28, %v4265_v2  ;;  %v4416_v30 = vor.u32 %v4415_v57, %v4414_v5  ;;  %v4418_v39 = vshrl.u32 %v10180_v16, %v4403_v61  ;;  %vm4078_vm5 = vcmp.lt.s32.totalorder %v8961_v7, 0 }
 0x394   :  { %6286 = vcosq.f32 %v4268_v52  ;;  %v4144_v60 = vclz %v5523_v27  ;;  %v4436_v9 = vshll.u32 %v4396_v13, 8  ;;  %v9201_v33 = vadd.f32 %v6059_v47, %v1627_v15 }
 0x395   :  { %6288 = vsinq.f32 %v4268_v52  ;;  %v4404_v19 = vshrl.u32 %v10175_v53, %v4403_v61  ;;  %v4419_v1 = vor.u32 %v4418_v39, %v4417_v55  ;;  %vm4420_vm6 = vcmp.lt.s32.totalorder %v4401_v62, 1 }
 0x396   :  { %v9205_v36 = vadd.f32 %v9116_v37, %v1950_v63  ;;  %v5524_v51 = vadd.s32 4294967294, %v4144_v60  ;;  %vm4422_vm7 = vcmp.lt.s32.totalorder %v4401_v62, 3  ;;  %vm4423_vm8 = vcmp.lt.s32.totalorder %v4401_v62, 4 }
 0x397   :  { %v4428_v20 = vsel %vm4420_vm6, %v4407_v3, %v4410_v54  ;;  %v4425_v59 = vsel %vm4423_vm8, %v4413_v26, 2102212464  ;;  %v4429_v6 = vsel %vm4423_vm8, %v4416_v30, 920167782  ;;  %v4432_v14 = vsel %vm4420_vm6, %v4410_v54, %v4413_v26 }
 0x398   :  { %v4433_v44 = vsel %vm4423_vm8, %v4419_v1, 1326507024  ;;  %vm5525_vm9 = vcmp.lt.s32.totalorder %v5524_v51, 0  ;;  %vm4421_vm10 = vcmp.lt.s32.totalorder %v4401_v62, 2  ;;  %v4430_v34 = vsel %vm4422_vm7, %v4413_v26, %v4429_v6 }
 0x399   :  { %v4434_v22 = vsel %vm4422_vm7, %v4416_v30, %v4433_v44  ;;  %v4147_v49 = vsel %vm5525_vm9, 0, %v5524_v51  ;;  %v4162_v61 = vsub.s32 4, %v9167_v46  ;;  %v4431_v11 = vsel %vm4421_vm10, %v4428_v20, %v4430_v34 }
 0x39a   :  { %v4435_v13 = vsel %vm4421_vm10, %v4432_v14, %v4434_v22  ;;  %v4148_v10 = vsub.s32 32, %v4147_v49  ;;  %v4152_v15 = vsub.s32 4294967266, %v4147_v49  ;;  %v4424_v8 = vsel %vm4420_vm6, %v4404_v19, %v4407_v3 }
 0x39b   :  { %v4426_v63 = vsel %vm4422_vm7, %v4410_v54, %v4425_v59  ;;  %v9216_v0 = vmul.u32.u64.low %v4436_v9, %v4435_v13  ;;  %v9217_v45 = vmul.u32.u64.high %v4436_v9, %v4435_v13, %v9216_v0  ;;  %v4149_v18 = vshll.u32 %v9179_v38, %v4147_v49 }
 0x39c   :  { %v9219_v42 = vmul.u32.u64.low %v4436_v9, %v4431_v11  ;;  %v9220_v58 = vmul.u32.u64.high %v4436_v9, %v4431_v11, %v9219_v42  ;;  %v4150_v43 = vshrl.u32 %v4132_v12, %v4148_v10  ;;  %v4153_v24 = vadd.s32 127, %v4152_v15 }
 0x39d   :  { %v4287_v2 = vand.u32 2139095040, %v9205_v36  ;;  %v5349_v5 = vmul.f32 %v8840_v35, %v8900_v50  ;;  %v4163_v3 = vsel %vm4078_vm5, %v4162_v61, %v9167_v46  ;;  %v4427_v57 = vsel %vm4421_vm10, %v4424_v8, %v4426_v63  ;;  %v9265_v63 = vld [vmem:[%s10030_s1 + $0xa] ss:$0 sm:$0xff] }
 0x39e   :  { %v1953_v52 = vmul.f32 %v9094_v31, %v9201_v33  ;;  %vm9235_vm11 = vcmp.le.f32.partialorder %v4076_v4, 0.7853982  ;;  %v4151_v12 = vor.u32 %v4150_v43, %v4149_v18  ;;  %v4154_v27 = vshll.u32 %v4153_v24, 23 }
 0x39f   :  { %v4288_v54 = vshrl.u32 %v4287_v2, 23  ;;  %vm4279_vm12 = vcmp.eq.s32.totalorder %v9174_v29, 2  ;;  %vm4445_vm13 = vc.u32 %v9217_v45, %v9219_v42  ;;  %v4446_v35 = vadd.s32 1, %v9220_v58 }
 0x3a0   :  { %v4284_v50 = vand.u32 2147483647, %v9205_v36  ;;  %v4155_v62 = vor.u32 4788187, %v4154_v27  ;;  %v4165_v4 = vsel %vm9235_vm11, 0, %v4163_v3  ;;  %v4443_v26 = vmul.u32 %v4436_v9, %v4427_v57 }
 0x3a1   :  { %v6287_v46 = vpop.eup %6286  ;;  %v5530_v30 = vadd.s32 4294967169, %v4288_v54  ;;  %v4158_v47 = vcvt.s32.f32 %v4151_v12  ;;  %v4447_v60 = vsel %vm4445_vm13, %v4446_v35, %v9220_v58  ;;  %v9248_v19 = vadd.f32 %v9116_v37, %v1953_v52  ;;  %v1620_v52 = vpop.f32.mrf.mxu0 }
 0x3a2   :  { %v6289_v55 = vpop.eup %6288  ;;  %v4280_v39 = vxor.u32 2147483648, %v6287_v46  ;;  %v4156_v51 = vand.u32 2147483647, %v4155_v62  ;;  %v4448_v20 = vadd.s32 %v4447_v60, %v4443_v26  ;;  %vm4272_vm14 = vweird.f32 %v8933_v28 }
 0x3a3   :  { %v4277_v1 = vxor.u32 2147483648, %v6289_v55  ;;  %v4294_v59 = vadd.s32 1, %v5530_v30  ;;  %vm4275_vm15 = vcmp.lt.s32.totalorder %v9174_v29, 2  ;;  %vm4276_vm0 = vcmp.eq.s32.totalorder %v9174_v29, 0  ;;  %v10237_v30 = vld [vmem:[#allocation13_spill] sm:$0xff] }
 0x3a4   :  { %v4281_v9 = vsel %vm4279_vm12, %v4280_v39, %v6289_v55  ;;  %v4159_v14 = vmul.f32 %v4158_v47, %v4156_v51  ;;  %v4449_v44 = vadd.s32 536870912, %v4448_v20  ;;  %v4169_v22 = vadd.s32 3, %v4165_v4 }
 0x3a5   :  { %v4278_v6 = vsel %vm4276_vm0, %v6287_v46, %v4277_v1  ;;  %vm4295_vm1 = vcmp.gt.s32.totalorder %v4294_v59, 0  ;;  %v4291_v49 = vand.u32 8388607, %v4284_v50  ;;  %v4599_v10 = vand.u32 2139095040, %v9248_v19 }
 0x3a6   :  { %v4282_v34 = vsel %vm4275_vm15, %v4278_v6, %v4281_v9  ;;  %v4296_v61 = vsel %vm4295_vm1, %v4294_v59, 0  ;;  %v4160_v13 = vxor.u32 2147483648, %v4159_v14  ;;  %v9257_v28 = vshrl.u32 %v4449_v44, 30 }
 0x3a7   :  { %v4283_v11 = vsel %vm4272_vm14, nan, %v4282_v34  ;;  %v4298_v8 = vand.u32 31, %v4296_v61  ;;  %v9269_v0 = vmul.f32 %v9265_v63, %v8909_v25  ;;  %v9275_v43 = vand.u32 3, %v4169_v22 }
 0x3a8   :  { %v5381_v15 = vadd.f32 %v5349_v5, %v4283_v11  ;;  %v4161_v29 = vsel %vm4078_vm5, %v4160_v13, %v4159_v14  ;;  %v4451_v58 = vshll.u32 %v9257_v28, 30  ;;  %v4292_v24 = vor.u32 8388608, %v4291_v49 }
 0x3a9   :  { %v4164_v18 = vsel %vm9235_vm11, %v8961_v7, %v4161_v29  ;;  %v4299_v2 = vsub.s32 32, %v4298_v8  ;;  %v4297_v3 = vshrl.u32 %v4296_v61, 5  ;;  %v4600_v57 = vshrl.u32 %v4599_v10, 23 }
 0x3aa   :  { %5413 = vst [vmem:[#allocation2 + $0xa8] sm:$0xff] %v5381_v15  ;;  %6290 = vcosq.f32 %v4164_v18  ;;  %v9277_v5 = vsub.s32 %v4448_v20, %v4451_v58  ;;  %v4301_v25 = vshll.u32 %v10175_v53, %v4298_v8  ;;  %v4304_v27 = vshll.u32 %v10176_v48, %v4298_v8 }
 0x3ab   :  { %6292 = vsinq.f32 %v4164_v18  ;;  %v4302_v12 = vshrl.u32 %v10176_v48, %v4299_v2  ;;  %v4305_v54 = vshrl.u32 %v10177_v17, %v4299_v2  ;;  %v4307_v35 = vshll.u32 %v10177_v17, %v4298_v8 }
 0x3ac   :  { %v4454_v38 = vsub.s32 0, %v9277_v5  ;;  %v4308_v46 = vshrl.u32 %v10178_v23, %v4299_v2  ;;  %v4310_v4 = vshll.u32 %v10178_v23, %v4298_v8  ;;  %v4311_v26 = vshrl.u32 %v10179_v41, %v4299_v2 }
 0x3ad   :  { %v4303_v62 = vor.u32 %v4302_v12, %v4301_v25  ;;  %v9289_v55 = vadd.f32 %v1620_v52, %v10237_v30  ;;  %v4306_v47 = vor.u32 %v4305_v54, %v4304_v27  ;;  %v9292_v1 = vshll.u32 %v4292_v24, 8 }
 0x3ae   :  { %v5535_v39 = vmin.u32 %v4454_v38, %v9277_v5  ;;  %v4309_v60 = vor.u32 %v4308_v46, %v4307_v35  ;;  %v4312_v51 = vor.u32 %v4311_v26, %v4310_v4  ;;  %v4313_v20 = vshll.u32 %v10179_v41, %v4298_v8 }
 0x3af   :  { %v4314_v59 = vshrl.u32 %v10180_v16, %v4299_v2  ;;  %v4596_v9 = vand.u32 2147483647, %v9248_v19  ;;  %v4300_v14 = vshrl.u32 %v10175_v53, %v4299_v2  ;;  %vm4316_vm2 = vcmp.lt.s32.totalorder %v4297_v3, 1 }
 0x3b0   :  { %v4456_v6 = vclz %v5535_v39  ;;  %v5542_v44 = vadd.s32 4294967169, %v4600_v57  ;;  %vm4175_vm3 = vcmp.eq.s32.totalorder %v9275_v43, 2  ;;  %vm4318_vm4 = vcmp.lt.s32.totalorder %v4297_v3, 3 }
 0x3b1   :  { %v4315_v34 = vor.u32 %v4314_v59, %v4313_v20  ;;  %vm4319_vm5 = vcmp.lt.s32.totalorder %v4297_v3, 4  ;;  %v4324_v22 = vsel %vm4316_vm2, %v4303_v62, %v4306_v47  ;;  %vm4172_vm6 = vcmp.eq.s32.totalorder %v9275_v43, 0 }
 0x3b2   :  { %vm4390_vm7 = vcmp.lt.s32.totalorder %v9119_v40, 0  ;;  %v5536_v49 = vadd.s32 4294967294, %v4456_v6  ;;  %v4321_v61 = vsel %vm4319_vm5, %v4309_v60, 2102212464  ;;  %v4325_v11 = vsel %vm4319_vm5, %v4312_v51, 920167782 }
 0x3b3   :  { %v4328_v13 = vsel %vm4316_vm2, %v4306_v47, %v4309_v60  ;;  %vm4171_vm8 = vcmp.lt.s32.totalorder %v9275_v43, 2  ;;  %vm4317_vm9 = vcmp.lt.s32.totalorder %v4297_v3, 2  ;;  %v4320_v10 = vsel %vm4316_vm2, %v4300_v14, %v4303_v62 }
 0x3b4   :  { %v4326_v15 = vsel %vm4318_vm4, %v4309_v60, %v4325_v11  ;;  %v4329_v8 = vsel %vm4319_vm5, %v4315_v34, 1326507024  ;;  %vm4168_vm10 = vweird.f32 %v8961_v7  ;;  %vm5537_vm11 = vcmp.lt.s32.totalorder %v5536_v49, 0  ;;  %v1878_v11 = vpop.f32.mrf.mxu1 }
 0x3b5   :  { %v4322_v29 = vsel %vm4318_vm4, %v4306_v47, %v4321_v61  ;;  %v4327_v58 = vsel %vm4317_vm9, %v4324_v22, %v4326_v15  ;;  %v4330_v18 = vsel %vm4318_vm4, %v4312_v51, %v4329_v8  ;;  %v4459_v24 = vsel %vm5537_vm11, 0, %v5536_v49 }
 0x3b6   :  { %v4331_v2 = vsel %vm4317_vm9, %v4328_v13, %v4330_v18  ;;  %v9309_v57 = vmul.u32.u64.low %v9292_v1, %v4327_v58  ;;  %v9310_v52 = vmul.u32.u64.high %v9292_v1, %v4327_v58, %v9309_v57  ;;  %v4444_v25 = vadd.s32 %v9219_v42, %v9217_v45 }
 0x3b7   :  { %v4460_v12 = vsub.s32 32, %v4459_v24  ;;  %v4464_v27 = vsub.s32 4294967266, %v4459_v24  ;;  %v4474_v38 = vsub.s32 4, %v9257_v28  ;;  %v6291_v54 = vpop.eup %6290  ;;  %v4323_v35 = vsel %vm4317_vm9, %v4320_v10, %v4322_v29 }
 0x3b8   :  { %v9318_v46 = vmul.u32.u64.low %v9292_v1, %v4331_v2  ;;  %v9319_v62 = vmul.u32.u64.high %v9292_v1, %v4331_v2, %v9318_v46  ;;  %v4606_v4 = vadd.s32 1, %v5542_v44  ;;  %v6293_v26 = vpop.eup %6292  ;;  %v4176_v30 = vxor.u32 2147483648, %v6291_v54 }
 0x3b9   :  { %v4461_v39 = vshll.u32 %v9277_v5, %v4459_v24  ;;  %v4462_v47 = vshrl.u32 %v4444_v25, %v4460_v12  ;;  %v4465_v60 = vadd.s32 127, %v4464_v27  ;;  %v4173_v51 = vxor.u32 2147483648, %v6293_v26 }
 0x3ba   :  { %v4342_v45 = vadd.s32 1, %v9310_v52  ;;  %v4603_v42 = vand.u32 8388607, %v4596_v9  ;;  %vm4607_vm12 = vcmp.gt.s32.totalorder %v4606_v4, 0  ;;  %v4177_v3 = vsel %vm4175_vm3, %v4176_v30, %v6293_v26 }
 0x3bb   :  { %v4463_v20 = vor.u32 %v4462_v47, %v4461_v39  ;;  %v4466_v59 = vshll.u32 %v4465_v60, 23  ;;  %v4608_v6 = vsel %vm4607_vm12, %v4606_v4, 0  ;;  %v4174_v14 = vsel %vm4172_vm6, %v6291_v54, %v4173_v51 }
 0x3bc   :  { %v4475_v5 = vsel %vm4390_vm7, %v4474_v38, %v9257_v28  ;;  %v4339_v44 = vmul.u32 %v9292_v1, %v4323_v35  ;;  %vm4341_vm13 = vc.u32 %v9319_v62, %v9309_v57  ;;  %v4178_v34 = vsel %vm4171_vm8, %v4174_v14, %v4177_v3 }
 0x3bd   :  { %vm9339_vm14 = vcmp.le.f32.partialorder %v4388_v56, 0.7853982  ;;  %v4467_v49 = vor.u32 4788187, %v4466_v59  ;;  %v4343_v61 = vsel %vm4341_vm13, %v4342_v45, %v9310_v52  ;;  %v4179_v28 = vsel %vm4168_vm10, nan, %v4178_v34 }
 0x3be   :  { %v4344_v1 = vadd.s32 %v4343_v61, %v4339_v44  ;;  %v4610_v13 = vand.u32 31, %v4608_v6  ;;  %v9347_v10 = vadd.f32 %v1878_v11, %v9289_v55  ;;  %v5380_v43 = vadd.f32 %v9269_v0, %v4179_v28 }
 0x3bf   :  { %v4468_v15 = vand.u32 2147483647, %v4467_v49  ;;  %v4470_v8 = vcvt.s32.f32 %v4463_v20  ;;  %v4477_v56 = vsel %vm9339_vm14, 0, %v4475_v5  ;;  %v4604_v58 = vor.u32 8388608, %v4603_v42 }
 0x3c0   :  { %v4345_v29 = vadd.s32 536870912, %v4344_v1  ;;  %v9352_v18 = vshrl.u32 %v4608_v6, 5  ;;  %v4611_v24 = vsub.s32 32, %v4610_v13  ;;  %5412 = vst [vmem:[#allocation2 + $0xa0] sm:$0xff] %v5380_v43  ;;  %v4613_v2 = vshll.u32 %v10175_v53, %v4610_v13 }
 0x3c1   :  { %v4471_v7 = vmul.f32 %v4470_v8, %v4468_v15  ;;  %v4616_v52 = vshll.u32 %v10176_v48, %v4610_v13  ;;  %v4619_v55 = vshll.u32 %v10177_v17, %v4610_v13  ;;  %v4622_v27 = vshll.u32 %v10178_v23, %v4610_v13 }
 0x3c2   :  { %v4346_v25 = vshrl.u32 %v4345_v29, 30  ;;  %v4614_v0 = vshrl.u32 %v10176_v48, %v4611_v24  ;;  %v4617_v12 = vshrl.u32 %v10177_v17, %v4611_v24  ;;  %v4620_v54 = vshrl.u32 %v10178_v23, %v4611_v24 }
 0x3c3   :  { %v4472_v38 = vxor.u32 2147483648, %v4471_v7  ;;  %v4623_v35 = vshrl.u32 %v10179_v41, %v4611_v24  ;;  %v4626_v46 = vshrl.u32 %v10180_v16, %v4611_v24  ;;  %v4481_v4 = vadd.s32 3, %v4477_v56 }
 0x3c4   :  { %v4347_v26 = vshll.u32 %v4346_v25, 30  ;;  %v4615_v30 = vor.u32 %v4614_v0, %v4613_v2  ;;  %v4625_v39 = vshll.u32 %v10179_v41, %v4610_v13  ;;  %v4618_v60 = vor.u32 %v4617_v12, %v4616_v52 }
 0x3c5   :  { %v4473_v47 = vsel %vm4390_vm7, %v4472_v38, %v4471_v7  ;;  %v4621_v51 = vor.u32 %v4620_v54, %v4619_v55  ;;  %v4624_v45 = vor.u32 %v4623_v35, %v4622_v27  ;;  %v4644_v59 = vshll.u32 %v4604_v58, 8 }
 0x3c6   :  { %v4476_v42 = vsel %vm9339_vm14, %v9119_v40, %v4473_v47  ;;  %v9369_v3 = vsub.s32 %v4344_v1, %v4347_v26  ;;  %v4627_v20 = vor.u32 %v4626_v46, %v4625_v39  ;;  %vm4628_vm15 = vcmp.lt.s32.totalorder %v9352_v18, 1  ;;  %v6012_v39 = vpop.f32.mrf.mxu0 }
 0x3c7   :  { %6294 = vcosq.f32 %v4476_v42  ;;  %vm4629_vm0 = vcmp.lt.s32.totalorder %v9352_v18, 2  ;;  %v1952_v6 = vmul.f32 %v9094_v31, %v9347_v10  ;;  %vm4630_vm1 = vcmp.lt.s32.totalorder %v9352_v18, 3 }
 0x3c8   :  { %6296 = vsinq.f32 %v4476_v42  ;;  %v4350_v14 = vsub.s32 0, %v9369_v3  ;;  %vm4631_vm2 = vcmp.lt.s32.totalorder %v9352_v18, 4  ;;  %v4612_v5 = vshrl.u32 %v10175_v53, %v4611_v24 }
 0x3c9   :  { %v4633_v44 = vsel %vm4631_vm2, %v4621_v51, 2102212464  ;;  %v4636_v34 = vsel %vm4628_vm15, %v4615_v30, %v4618_v60  ;;  %v4637_v22 = vsel %vm4631_vm2, %v4624_v45, 920167782  ;;  %v4640_v11 = vsel %vm4628_vm15, %v4618_v60, %v4621_v51 }
 0x3ca   :  { %v5531_v49 = vmin.u32 %v4350_v14, %v9369_v3  ;;  %v4638_v61 = vsel %vm4630_vm1, %v4621_v51, %v4637_v22  ;;  %v4641_v28 = vsel %vm4631_vm2, %v4627_v20, 1326507024  ;;  %v4370_v1 = vsub.s32 4, %v4346_v25 }
 0x3cb   :  { %v4639_v13 = vsel %vm4629_vm0, %v4636_v34, %v4638_v61  ;;  %v4642_v43 = vsel %vm4630_vm1, %v4624_v45, %v4641_v28  ;;  %v9391_v15 = vadd.f32 %v9116_v37, %v1952_v6  ;;  %v4482_v8 = vand.u32 3, %v4481_v4 }
 0x3cc   :  { %v4352_v56 = vclz %v5531_v49  ;;  %v4632_v29 = vsel %vm4628_vm15, %v4612_v5, %v4615_v30  ;;  %v4634_v58 = vsel %vm4630_vm1, %v4618_v60, %v4633_v44  ;;  %v4643_v24 = vsel %vm4629_vm0, %v4640_v11, %v4642_v43  ;;  %v10242_v44 = vld [vmem:[#allocation14_spill] sm:$0xff] }
 0x3cd   :  { %v9399_v7 = vmul.u32.u64.low %v4644_v59, %v4639_v13  ;;  %v9400_v2 = vmul.u32.u64.high %v4644_v59, %v4639_v13, %v9399_v7  ;;  %vm4286_vm3 = vcmp.lt.s32.totalorder %v9205_v36, 0  ;;  %v5351_v12 = vmul.f32 %v9265_v63, %v9063_v21 }
 0x3ce   :  { %v5532_v52 = vadd.s32 4294967294, %v4352_v56  ;;  %v9404_v55 = vmul.u32.u64.low %v4644_v59, %v4643_v24  ;;  %v9405_v0 = vmul.u32.u64.high %v4644_v59, %v4643_v24, %v9404_v55  ;;  %v4371_v27 = vsel %vm4286_vm3, %v4370_v1, %v4346_v25  ;;  %v6062_v56 = vpop.f32.mrf.mxu1 }
 0x3cf   :  { %v4495_v38 = vand.u32 2139095040, %v9391_v15  ;;  %vm4483_vm4 = vcmp.lt.s32.totalorder %v4482_v8, 2  ;;  %vm9414_vm5 = vcmp.le.f32.partialorder %v4284_v50, 0.7853982  ;;  %v4635_v35 = vsel %vm4629_vm0, %v4632_v29, %v4634_v58 }
 0x3d0   :  { %vm5533_vm6 = vcmp.lt.s32.totalorder %v5532_v52, 0  ;;  %vm4480_vm7 = vweird.f32 %v9119_v40  ;;  %vm4484_vm8 = vcmp.eq.s32.totalorder %v4482_v8, 0  ;;  %v4654_v46 = vadd.s32 1, %v9400_v2 }
 0x3d1   :  { %v4355_v21 = vsel %vm5533_vm6, 0, %v5532_v52  ;;  %v4496_v25 = vshrl.u32 %v4495_v38, 23  ;;  %v4340_v4 = vadd.s32 %v9309_v57, %v9319_v62  ;;  %v4373_v50 = vsel %vm9414_vm5, 0, %v4371_v27  ;;  %v1632_v52 = vpop.f32.mrf.mxu0 }
 0x3d2   :  { %v4356_v26 = vsub.s32 32, %v4355_v21  ;;  %v4360_v30 = vsub.s32 4294967266, %v4355_v21  ;;  %v4651_v47 = vmul.u32 %v4644_v59, %v4635_v35  ;;  %vm4653_vm9 = vc.u32 %v9405_v0, %v9399_v7 }
 0x3d3   :  { %v4492_v18 = vand.u32 2147483647, %v9391_v15  ;;  %v5538_v60 = vadd.s32 4294967169, %v4496_v25  ;;  %v4357_v45 = vshll.u32 %v9369_v3, %v4355_v21  ;;  %v4655_v57 = vsel %vm4653_vm9, %v4654_v46, %v9400_v2 }
 0x3d4   :  { %v6295_v51 = vpop.eup %6294  ;;  %v4358_v42 = vshrl.u32 %v4340_v4, %v4356_v26  ;;  %v4361_v20 = vadd.s32 127, %v4360_v30  ;;  %v4656_v14 = vadd.s32 %v4655_v57, %v4651_v47  ;;  %v1639_v34 = vadd.f32 %v6012_v39, %v10242_v44  ;;  %v10243_v26 = vld [vmem:[#allocation15_spill] sm:$0xff] }
 0x3d5   :  { %v6297_v62 = vpop.eup %6296  ;;  %v4488_v6 = vxor.u32 2147483648, %v6295_v51  ;;  %v4502_v5 = vadd.s32 1, %v5538_v60  ;;  %vm4487_vm10 = vcmp.eq.s32.totalorder %v4482_v8, 2  ;;  %v4377_v11 = vadd.s32 3, %v4373_v50 }
 0x3d6   :  { %v4485_v59 = vxor.u32 2147483648, %v6297_v62  ;;  %v4359_v22 = vor.u32 %v4358_v42, %v4357_v45  ;;  %v4362_v49 = vshll.u32 %v4361_v20, 23  ;;  %v4657_v28 = vadd.s32 536870912, %v4656_v14 }
 0x3d7   :  { %v4489_v61 = vsel %vm4487_vm10, %v4488_v6, %v6297_v62  ;;  %vm4503_vm11 = vcmp.gt.s32.totalorder %v4502_v5, 0  ;;  %v4499_v13 = vand.u32 8388607, %v4492_v18  ;;  %v9438_v2 = vadd.f32 %v6062_v56, %v1639_v34 }
 0x3d8   :  { %v4486_v3 = vsel %vm4484_vm8, %v6295_v51, %v4485_v59  ;;  %v4363_v1 = vor.u32 4788187, %v4362_v49  ;;  %v4504_v43 = vsel %vm4503_vm11, %v4502_v5, 0  ;;  %v9436_v58 = vshrl.u32 %v4657_v28, 30 }
 0x3d9   :  { %v4490_v29 = vsel %vm4483_vm4, %v4486_v3, %v4489_v61  ;;  %v4506_v24 = vand.u32 31, %v4504_v43  ;;  %v4366_v38 = vcvt.s32.f32 %v4359_v22  ;;  %v9443_v4 = vand.u32 3, %v4377_v11  ;;  %v1890_v11 = vpop.f32.mrf.mxu1 }
 0x3da   :  { %v4491_v55 = vsel %vm4480_vm7, nan, %v4490_v29  ;;  %v4364_v27 = vand.u32 2147483647, %v4363_v1  ;;  %v4659_v21 = vshll.u32 %v9436_v58, 30  ;;  %v4500_v8 = vor.u32 8388608, %v4499_v13 }
 0x3db   :  { %v5383_v35 = vadd.f32 %v5351_v12, %v4491_v55  ;;  %v4507_v46 = vsub.s32 32, %v4506_v24  ;;  %v1633_v30 = vadd.f32 %v1632_v52, %v10243_v26  ;;  %v4652_v50 = vadd.s32 %v9399_v7, %v9405_v0 }
 0x3dc   :  { %v4367_v25 = vmul.f32 %v4366_v38, %v4364_v27  ;;  %v9448_v39 = vsub.s32 %v4656_v14, %v4659_v21  ;;  %v1955_v12 = vmul.f32 %v9094_v31, %v9438_v2  ;;  %v4509_v60 = vshll.u32 %v10175_v53, %v4506_v24 }
 0x3dd   :  { %5415 = vst [vmem:[#allocation2 + $0xb8] sm:$0xff] %v5383_v35  ;;  %v4510_v40 = vshrl.u32 %v10176_v48, %v4507_v46  ;;  %v4513_v51 = vshrl.u32 %v10177_v17, %v4507_v46  ;;  %v4516_v45 = vshrl.u32 %v10178_v23, %v4507_v46  ;;  %v4505_v20 = vshrl.u32 %v4504_v43, 5 }
 0x3de   :  { %v4368_v47 = vxor.u32 2147483648, %v4367_v25  ;;  %v4662_v42 = vsub.s32 0, %v9448_v39  ;;  %v4512_v57 = vshll.u32 %v10176_v48, %v4506_v24  ;;  %v4515_v7 = vshll.u32 %v10177_v17, %v4506_v24 }
 0x3df   :  { %v4511_v62 = vor.u32 %v4510_v40, %v4509_v60  ;;  %v4518_v6 = vshll.u32 %v10178_v23, %v4506_v24  ;;  %v4519_v14 = vshrl.u32 %v10179_v41, %v4507_v46  ;;  %v4521_v49 = vshll.u32 %v10179_v41, %v4506_v24 }
 0x3e0   :  { %v4369_v0 = vsel %vm4286_vm3, %v4368_v47, %v4367_v25  ;;  %v5543_v44 = vmin.u32 %v4662_v42, %v9448_v39  ;;  %v4514_v34 = vor.u32 %v4513_v51, %v4512_v57  ;;  %v4517_v59 = vor.u32 %v4516_v45, %v4515_v7 }
 0x3e1   :  { %v4372_v5 = vsel %vm9414_vm5, %v9205_v36, %v4369_v0  ;;  %v4520_v22 = vor.u32 %v4519_v14, %v4518_v6  ;;  %v4522_v61 = vshrl.u32 %v10180_v16, %v4507_v46  ;;  %vm4598_vm12 = vcmp.lt.s32.totalorder %v9248_v19, 0 }
 0x3e2   :  { %6298 = vcosq.f32 %v4372_v5  ;;  %v4664_v28 = vclz %v5543_v44  ;;  %v4540_v3 = vshll.u32 %v4500_v8, 8  ;;  %v9470_v1 = vadd.f32 %v1890_v11, %v1633_v30 }
 0x3e3   :  { %6300 = vsinq.f32 %v4372_v5  ;;  %v4508_v54 = vshrl.u32 %v10175_v53, %v4507_v46  ;;  %v4523_v13 = vor.u32 %v4522_v61, %v4521_v49  ;;  %vm4524_vm13 = vcmp.lt.s32.totalorder %v4505_v20, 1 }
 0x3e4   :  { %v9474_v43 = vadd.f32 %v9116_v37, %v1955_v12  ;;  %v5544_v56 = vadd.s32 4294967294, %v4664_v28  ;;  %vm4526_vm14 = vcmp.lt.s32.totalorder %v4505_v20, 3  ;;  %vm4527_vm15 = vcmp.lt.s32.totalorder %v4505_v20, 4 }
 0x3e5   :  { %v4532_v29 = vsel %vm4524_vm13, %v4511_v62, %v4514_v34  ;;  %v4529_v24 = vsel %vm4527_vm15, %v4517_v59, 2102212464  ;;  %v4533_v52 = vsel %vm4527_vm15, %v4520_v22, 920167782  ;;  %v4536_v55 = vsel %vm4524_vm13, %v4514_v34, %v4517_v59 }
 0x3e6   :  { %v4537_v27 = vsel %vm4527_vm15, %v4523_v13, 1326507024  ;;  %vm5545_vm0 = vcmp.lt.s32.totalorder %v5544_v56, 0  ;;  %vm4525_vm1 = vcmp.lt.s32.totalorder %v4505_v20, 2  ;;  %v4534_v38 = vsel %vm4526_vm14, %v4517_v59, %v4533_v52 }
 0x3e7   :  { %v4538_v35 = vsel %vm4526_vm14, %v4520_v22, %v4537_v27  ;;  %v4667_v21 = vsel %vm5545_vm0, 0, %v5544_v56  ;;  %v4682_v46 = vsub.s32 4, %v9436_v58  ;;  %v4535_v25 = vsel %vm4525_vm1, %v4532_v29, %v4534_v38 }
 0x3e8   :  { %v4539_v8 = vsel %vm4525_vm1, %v4536_v55, %v4538_v35  ;;  %v4668_v26 = vsub.s32 32, %v4667_v21  ;;  %v4672_v30 = vsub.s32 4294967266, %v4667_v21  ;;  %v4528_v40 = vsel %vm4524_vm13, %v4508_v54, %v4511_v62 }
 0x3e9   :  { %v4530_v12 = vsel %vm4526_vm14, %v4514_v34, %v4529_v24  ;;  %v9485_v47 = vmul.u32.u64.low %v4540_v3, %v4539_v8  ;;  %v9486_v60 = vmul.u32.u64.high %v4540_v3, %v4539_v8, %v9485_v47  ;;  %v4669_v42 = vshll.u32 %v9448_v39, %v4667_v21 }
 0x3ea   :  { %v9488_v51 = vmul.u32.u64.low %v4540_v3, %v4535_v25  ;;  %v9489_v45 = vmul.u32.u64.high %v4540_v3, %v4535_v25, %v9488_v51  ;;  %v4670_v57 = vshrl.u32 %v4652_v50, %v4668_v26  ;;  %v4673_v7 = vadd.s32 127, %v4672_v30 }
 0x3eb   :  { %v4807_v0 = vand.u32 2139095040, %v9474_v43  ;;  %v5350_v6 = vmul.f32 %v9265_v63, %v9169_v32  ;;  %v4683_v62 = vsel %vm4598_vm12, %v4682_v46, %v9436_v58  ;;  %v4531_v14 = vsel %vm4525_vm1, %v4528_v40, %v4530_v12 }
 0x3ec   :  { %v1954_v5 = vmul.f32 %v9094_v31, %v9470_v1  ;;  %vm9504_vm2 = vcmp.le.f32.partialorder %v4596_v9, 0.7853982  ;;  %v4671_v50 = vor.u32 %v4670_v57, %v4669_v42  ;;  %v4674_v44 = vshll.u32 %v4673_v7, 23 }
 0x3ed   :  { %v4808_v34 = vshrl.u32 %v4807_v0, 23  ;;  %vm4383_vm3 = vcmp.eq.s32.totalorder %v9443_v4, 2  ;;  %vm4549_vm4 = vc.u32 %v9486_v60, %v9488_v51  ;;  %v4550_v32 = vadd.s32 1, %v9489_v45 }
 0x3ee   :  { %v4804_v58 = vand.u32 2147483647, %v9474_v43  ;;  %v4675_v31 = vor.u32 4788187, %v4674_v44  ;;  %v4685_v9 = vsel %vm9504_vm2, 0, %v4683_v62  ;;  %v4547_v59 = vmul.u32 %v4540_v3, %v4531_v14  ;;  %v6015_v62 = vpop.f32.mrf.mxu0 }
 0x3ef   :  { %v6299_v20 = vpop.eup %6298  ;;  %v5550_v22 = vadd.s32 4294967169, %v4808_v34  ;;  %v4678_v11 = vcvt.s32.f32 %v4671_v50  ;;  %v4551_v28 = vsel %vm4549_vm4, %v4550_v32, %v9489_v45  ;;  %v9517_v54 = vadd.f32 %v9116_v37, %v1954_v5 }
 0x3f0   :  { %v6301_v49 = vpop.eup %6300  ;;  %v4384_v61 = vxor.u32 2147483648, %v6299_v20  ;;  %v4676_v56 = vand.u32 2147483647, %v4675_v31  ;;  %v4552_v29 = vadd.s32 %v4551_v28, %v4547_v59  ;;  %vm4376_vm5 = vweird.f32 %v9205_v36 }
 0x3f1   :  { %v4381_v13 = vxor.u32 2147483648, %v6301_v49  ;;  %v4814_v24 = vadd.s32 1, %v5550_v22  ;;  %vm4379_vm6 = vcmp.lt.s32.totalorder %v9443_v4, 2  ;;  %vm4380_vm7 = vcmp.eq.s32.totalorder %v9443_v4, 0 }
 0x3f2   :  { %v4385_v3 = vsel %vm4383_vm3, %v4384_v61, %v6301_v49  ;;  %v4679_v55 = vmul.f32 %v4678_v11, %v4676_v56  ;;  %v4553_v27 = vadd.s32 536870912, %v4552_v29  ;;  %v4689_v37 = vadd.s32 3, %v4685_v9  ;;  %v10246_v9 = vld [vmem:[#allocation16_spill] sm:$0xff] }
 0x3f3   :  { %v4382_v52 = vsel %vm4380_vm7, %v6299_v20, %v4381_v13  ;;  %vm4815_vm8 = vcmp.gt.s32.totalorder %v4814_v24, 0  ;;  %v4811_v35 = vand.u32 8388607, %v4804_v58  ;;  %v4703_v8 = vand.u32 2139095040, %v9517_v54 }
 0x3f4   :  { %v4386_v38 = vsel %vm4379_vm6, %v4382_v52, %v4385_v3  ;;  %v4816_v21 = vsel %vm4815_vm8, %v4814_v24, 0  ;;  %v4680_v25 = vxor.u32 2147483648, %v4679_v55  ;;  %v9526_v36 = vshrl.u32 %v4553_v27, 30 }
 0x3f5   :  { %v4387_v46 = vsel %vm4376_vm5, nan, %v4386_v38  ;;  %v4818_v30 = vand.u32 31, %v4816_v21  ;;  %v9533_v40 = vmul.f32 %v9265_v63, %v9201_v33  ;;  %v9539_v45 = vand.u32 3, %v4689_v37 }
 0x3f6   :  { %v5382_v26 = vadd.f32 %v5350_v6, %v4387_v46  ;;  %v4681_v4 = vsel %vm4598_vm12, %v4680_v25, %v4679_v55  ;;  %v4555_v12 = vshll.u32 %v9526_v36, 30  ;;  %v4812_v42 = vor.u32 8388608, %v4811_v35 }
 0x3f7   :  { %v4684_v47 = vsel %vm9504_vm2, %v9248_v19, %v4681_v4  ;;  %v4819_v57 = vsub.s32 32, %v4818_v30  ;;  %v4817_v0 = vshrl.u32 %v4816_v21, 5  ;;  %v4704_v6 = vshrl.u32 %v4703_v8, 23 }
 0x3f8   :  { %5414 = vst [vmem:[#allocation2 + $0xb0] sm:$0xff] %v5382_v26  ;;  %6302 = vcosq.f32 %v4684_v47  ;;  %v9541_v7 = vsub.s32 %v4552_v29, %v4555_v12  ;;  %v4821_v33 = vshll.u32 %v10175_v53, %v4818_v30  ;;  %v4824_v5 = vshll.u32 %v10176_v48, %v4818_v30 }
 0x3f9   :  { %6304 = vsinq.f32 %v4684_v47  ;;  %v4822_v14 = vshrl.u32 %v10176_v48, %v4819_v57  ;;  %v4825_v50 = vshrl.u32 %v10177_v17, %v4819_v57  ;;  %v4827_v44 = vshll.u32 %v10177_v17, %v4818_v30 }
 0x3fa   :  { %v4558_v39 = vsub.s32 0, %v9541_v7  ;;  %v4828_v34 = vshrl.u32 %v10178_v23, %v4819_v57  ;;  %v4830_v20 = vshll.u32 %v10178_v23, %v4818_v30  ;;  %v4831_v31 = vshrl.u32 %v10179_v41, %v4819_v57 }
 0x3fb   :  { %v4823_v32 = vor.u32 %v4822_v14, %v4821_v33  ;;  %v9553_v59 = vadd.f32 %v6015_v62, %v10246_v9  ;;  %v4826_v49 = vor.u32 %v4825_v50, %v4824_v5  ;;  %v9556_v11 = vshll.u32 %v4812_v42, 8 }
 0x3fc   :  { %v5539_v22 = vmin.u32 %v4558_v39, %v9541_v7  ;;  %v4829_v61 = vor.u32 %v4828_v34, %v4827_v44  ;;  %v4832_v28 = vor.u32 %v4831_v31, %v4830_v20  ;;  %v4833_v13 = vshll.u32 %v10179_v41, %v4818_v30 }
 0x3fd   :  { %v4834_v56 = vshrl.u32 %v10180_v16, %v4819_v57  ;;  %v4700_v29 = vand.u32 2147483647, %v9517_v54  ;;  %v4820_v3 = vshrl.u32 %v10175_v53, %v4819_v57  ;;  %vm4836_vm9 = vcmp.lt.s32.totalorder %v4817_v0, 1 }
 0x3fe   :  { %v4560_v24 = vclz %v5539_v22  ;;  %v5546_v52 = vadd.s32 4294967169, %v4704_v6  ;;  %vm4695_vm10 = vcmp.eq.s32.totalorder %v9539_v45, 2  ;;  %vm4838_vm11 = vcmp.lt.s32.totalorder %v4817_v0, 3 }
 0x3ff   :  { %v4835_v55 = vor.u32 %v4834_v56, %v4833_v13  ;;  %vm4839_vm12 = vcmp.lt.s32.totalorder %v4817_v0, 4  ;;  %v4844_v27 = vsel %vm4836_vm9, %v4823_v32, %v4826_v49  ;;  %vm4692_vm13 = vcmp.eq.s32.totalorder %v9539_v45, 0 }
 0x400   :  { %vm4494_vm14 = vcmp.lt.s32.totalorder %v9391_v15, 0  ;;  %v5540_v38 = vadd.s32 4294967294, %v4560_v24  ;;  %v4841_v37 = vsel %vm4839_vm12, %v4829_v61, 2102212464  ;;  %v4845_v35 = vsel %vm4839_vm12, %v4832_v28, 920167782 }
 0x401   :  { %v4848_v21 = vsel %vm4836_vm9, %v4826_v49, %v4829_v61  ;;  %vm4691_vm15 = vcmp.lt.s32.totalorder %v9539_v45, 2  ;;  %vm4837_vm0 = vcmp.lt.s32.totalorder %v4817_v0, 2  ;;  %v4840_v46 = vsel %vm4836_vm9, %v4820_v3, %v4823_v32 }
 0x402   :  { %v4846_v25 = vsel %vm4838_vm11, %v4829_v61, %v4845_v35  ;;  %v4849_v8 = vsel %vm4839_vm12, %v4835_v55, 1326507024  ;;  %vm4688_vm1 = vweird.f32 %v9248_v19  ;;  %vm5541_vm2 = vcmp.lt.s32.totalorder %v5540_v38, 0 }
 0x403   :  { %v4842_v26 = vsel %vm4838_vm11, %v4826_v49, %v4841_v37  ;;  %v4847_v30 = vsel %vm4837_vm0, %v4844_v27, %v4846_v25  ;;  %v4850_v4 = vsel %vm4838_vm11, %v4832_v28, %v4849_v8  ;;  %v4563_v12 = vsel %vm5541_vm2, 0, %v5540_v38  ;;  %v6065_v38 = vpop.f32.mrf.mxu1 }
 0x404   :  { %v4851_v47 = vsel %vm4837_vm0, %v4848_v21, %v4850_v4  ;;  %v9573_v42 = vmul.u32.u64.low %v9556_v11, %v4847_v30  ;;  %v9574_v57 = vmul.u32.u64.high %v9556_v11, %v4847_v30, %v9573_v42  ;;  %v4548_v6 = vadd.s32 %v9488_v51, %v9486_v60 }
 0x405   :  { %v4564_v62 = vsub.s32 32, %v4563_v12  ;;  %v4568_v33 = vsub.s32 4294967266, %v4563_v12  ;;  %v4578_v14 = vsub.s32 4, %v9526_v36  ;;  %v6303_v5 = vpop.eup %6302  ;;  %v4843_v39 = vsel %vm4837_vm0, %v4840_v46, %v4842_v26 }
 0x406   :  { %v9582_v50 = vmul.u32.u64.low %v9556_v11, %v4851_v47  ;;  %v9583_v44 = vmul.u32.u64.high %v9556_v11, %v4851_v47, %v9582_v50  ;;  %v4710_v34 = vadd.s32 1, %v5546_v52  ;;  %v6305_v32 = vpop.eup %6304  ;;  %v4696_v20 = vxor.u32 2147483648, %v6303_v5 }
 0x407   :  { %v4565_v31 = vshll.u32 %v9541_v7, %v4563_v12  ;;  %v4566_v9 = vshrl.u32 %v4548_v6, %v4564_v62  ;;  %v4569_v22 = vadd.s32 127, %v4568_v33  ;;  %v4693_v49 = vxor.u32 2147483648, %v6305_v32 }
 0x408   :  { %v4862_v60 = vadd.s32 1, %v9574_v57  ;;  %v4707_v51 = vand.u32 8388607, %v4700_v29  ;;  %vm4711_vm3 = vcmp.gt.s32.totalorder %v4710_v34, 0  ;;  %v4697_v0 = vsel %vm4695_vm10, %v4696_v20, %v6305_v32 }
 0x409   :  { %v4567_v61 = vor.u32 %v4566_v9, %v4565_v31  ;;  %v4570_v28 = vshll.u32 %v4569_v22, 23  ;;  %v4712_v13 = vsel %vm4711_vm3, %v4710_v34, 0  ;;  %v4694_v56 = vsel %vm4692_vm13, %v6303_v5, %v4693_v49 }
 0x40a   :  { %v4579_v7 = vsel %vm4494_vm14, %v4578_v14, %v9526_v36  ;;  %v4859_v24 = vmul.u32 %v9556_v11, %v4843_v39  ;;  %vm4861_vm4 = vc.u32 %v9583_v44, %v9573_v42  ;;  %v4698_v3 = vsel %vm4691_vm15, %v4694_v56, %v4697_v0 }
 0x40b   :  { %vm9603_vm5 = vcmp.le.f32.partialorder %v4492_v18, 0.7853982  ;;  %v4571_v55 = vor.u32 4788187, %v4570_v28  ;;  %v4863_v27 = vsel %vm4861_vm4, %v4862_v60, %v9574_v57  ;;  %v4699_v36 = vsel %vm4688_vm1, nan, %v4698_v3 }
 0x40c   :  { %v4864_v11 = vadd.s32 %v4863_v27, %v4859_v24  ;;  %v4714_v37 = vand.u32 31, %v4712_v13  ;;  %v9611_v35 = vadd.f32 %v6065_v38, %v9553_v59  ;;  %v5385_v45 = vadd.f32 %v9533_v40, %v4699_v36 }
 0x40d   :  { %v4572_v21 = vand.u32 2147483647, %v4571_v55  ;;  %v4574_v46 = vcvt.s32.f32 %v4567_v61  ;;  %v4581_v18 = vsel %vm9603_vm5, 0, %v4579_v7  ;;  %v4708_v8 = vor.u32 8388608, %v4707_v51  ;;  %v9642_v61 = vld [vmem:[%s10030_s1 + $0x8] ss:$0 sm:$0xff] }
 0x40e   :  { %v4865_v25 = vadd.s32 536870912, %v4864_v11  ;;  %v9616_v26 = vshrl.u32 %v4712_v13, 5  ;;  %v4715_v30 = vsub.s32 32, %v4714_v37  ;;  %5417 = vst [vmem:[#allocation2 + $0xc8] sm:$0xff] %v5385_v45  ;;  %v4717_v4 = vshll.u32 %v10175_v53, %v4714_v37  ;;  %v9664_v45 = vld [vmem:[%s10030_s1 + $0x9] ss:$0 sm:$0xff] }
 0x40f   :  { %v4575_v19 = vmul.f32 %v4574_v46, %v4572_v21  ;;  %v4720_v12 = vshll.u32 %v10176_v48, %v4714_v37  ;;  %v4723_v59 = vshll.u32 %v10177_v17, %v4714_v37  ;;  %v4726_v6 = vshll.u32 %v10178_v23, %v4714_v37 }
 0x410   :  { %v4866_v47 = vshrl.u32 %v4865_v25, 30  ;;  %v4718_v40 = vshrl.u32 %v10176_v48, %v4715_v30  ;;  %v4721_v57 = vshrl.u32 %v10177_v17, %v4715_v30  ;;  %v4724_v33 = vshrl.u32 %v10178_v23, %v4715_v30 }
 0x411   :  { %v4576_v62 = vxor.u32 2147483648, %v4575_v19  ;;  %v4727_v14 = vshrl.u32 %v10179_v41, %v4715_v30  ;;  %v4730_v5 = vshrl.u32 %v10180_v16, %v4715_v30  ;;  %v4585_v39 = vadd.s32 3, %v4581_v18 }
 0x412   :  { %v4867_v50 = vshll.u32 %v4866_v47, 30  ;;  %v4719_v34 = vor.u32 %v4718_v40, %v4717_v4  ;;  %v4729_v32 = vshll.u32 %v10179_v41, %v4714_v37  ;;  %v4722_v31 = vor.u32 %v4721_v57, %v4720_v12 }
 0x413   :  { %v4577_v20 = vsel %vm4494_vm14, %v4576_v62, %v4575_v19  ;;  %v4725_v9 = vor.u32 %v4724_v33, %v4723_v59  ;;  %v4728_v22 = vor.u32 %v4727_v14, %v4726_v6  ;;  %v9635_v0 = vshll.u32 %v4708_v8, 8 }
 0x414   :  { %v4580_v49 = vsel %vm9603_vm5, %v9391_v15, %v4577_v20  ;;  %v9633_v60 = vsub.s32 %v4864_v11, %v4867_v50  ;;  %v4731_v51 = vor.u32 %v4730_v5, %v4729_v32  ;;  %vm4732_vm6 = vcmp.lt.s32.totalorder %v9616_v26, 1 }
 0x415   :  { %6306 = vcosq.f32 %v4580_v49  ;;  %vm4733_vm7 = vcmp.lt.s32.totalorder %v9616_v26, 2  ;;  %v1957_v28 = vmul.f32 %v9642_v61, %v9611_v35  ;;  %vm4734_vm8 = vcmp.lt.s32.totalorder %v9616_v26, 3 }
 0x416   :  { %6308 = vsinq.f32 %v4580_v49  ;;  %v4870_v13 = vsub.s32 0, %v9633_v60  ;;  %vm4735_vm9 = vcmp.lt.s32.totalorder %v9616_v26, 4  ;;  %v4716_v56 = vshrl.u32 %v10175_v53, %v4715_v30 }
 0x417   :  { %v4737_v7 = vsel %vm4735_vm9, %v4725_v9, 2102212464  ;;  %v4740_v24 = vsel %vm4732_vm6, %v4719_v34, %v4722_v31  ;;  %v4741_v3 = vsel %vm4735_vm9, %v4728_v22, 920167782  ;;  %v4744_v27 = vsel %vm4732_vm6, %v4722_v31, %v4725_v9 }
 0x418   :  { %v5551_v52 = vmin.u32 %v4870_v13, %v9633_v60  ;;  %v4742_v55 = vsel %vm4734_vm8, %v4725_v9, %v4741_v3  ;;  %v4745_v38 = vsel %vm4735_vm9, %v4731_v51, 1326507024  ;;  %v4890_v36 = vsub.s32 4, %v4866_v47 }
 0x419   :  { %v4743_v11 = vsel %vm4733_vm7, %v4740_v24, %v4742_v55  ;;  %v4746_v37 = vsel %vm4734_vm8, %v4728_v22, %v4745_v38  ;;  %v9667_v21 = vadd.f32 %v9664_v45, %v1957_v28  ;;  %v4586_v46 = vand.u32 3, %v4585_v39 }
 0x41a   :  { %v4872_v18 = vclz %v5551_v52  ;;  %v4736_v25 = vsel %vm4732_vm6, %v4716_v56, %v4719_v34  ;;  %v4738_v8 = vsel %vm4734_vm8, %v4722_v31, %v4737_v7  ;;  %v4747_v30 = vsel %vm4733_vm7, %v4744_v27, %v4746_v37  ;;  %v1644_v34 = vpop.f32.mrf.mxu0  ;;  %v10251_v56 = vld [vmem:[#allocation17_spill] sm:$0xff]  ;;  %v1902_v37 = vpop.f32.mrf.mxu1 }
 0x41b   :  { %v9676_v19 = vmul.u32.u64.low %v9635_v0, %v4743_v11  ;;  %v9677_v4 = vmul.u32.u64.high %v9635_v0, %v4743_v11, %v9676_v19  ;;  %vm4806_vm10 = vcmp.lt.s32.totalorder %v9474_v43, 0  ;;  %v5352_v57 = vmul.f32 %v9265_v63, %v9347_v10 }
 0x41c   :  { %v5552_v12 = vadd.s32 4294967294, %v4872_v18  ;;  %v9682_v59 = vmul.u32.u64.low %v9635_v0, %v4747_v30  ;;  %v9683_v40 = vmul.u32.u64.high %v9635_v0, %v4747_v30, %v9682_v59  ;;  %v4891_v6 = vsel %vm4806_vm10, %v4890_v36, %v4866_v47 }
 0x41d   :  { %v5015_v62 = vand.u32 2139095040, %v9667_v21  ;;  %vm4587_vm11 = vcmp.lt.s32.totalorder %v4586_v46, 2  ;;  %vm9692_vm12 = vcmp.le.f32.partialorder %v4804_v58, 0.7853982  ;;  %v4739_v14 = vsel %vm4733_vm7, %v4736_v25, %v4738_v8 }
 0x41e   :  { %vm5553_vm13 = vcmp.lt.s32.totalorder %v5552_v12, 0  ;;  %vm4584_vm14 = vweird.f32 %v9391_v15  ;;  %vm4588_vm15 = vcmp.eq.s32.totalorder %v4586_v46, 0  ;;  %v4758_v10 = vadd.s32 1, %v9677_v4 }
 0x41f   :  { %v4875_v63 = vsel %vm5553_vm13, 0, %v5552_v12  ;;  %v5016_v47 = vshrl.u32 %v5015_v62, 23  ;;  %v4860_v5 = vadd.s32 %v9573_v42, %v9583_v44  ;;  %v4893_v58 = vsel %vm9692_vm12, 0, %v4891_v6 }
 0x420   :  { %v4876_v39 = vsub.s32 32, %v4875_v63  ;;  %v4880_v50 = vsub.s32 4294967266, %v4875_v63  ;;  %v4755_v32 = vmul.u32 %v9635_v0, %v4739_v14  ;;  %vm4757_vm0 = vc.u32 %v9683_v40, %v9676_v19 }
 0x421   :  { %v5012_v26 = vand.u32 2147483647, %v9667_v21  ;;  %v5558_v20 = vadd.s32 4294967169, %v5016_v47  ;;  %v4877_v9 = vshll.u32 %v9633_v60, %v4875_v63  ;;  %v4759_v42 = vsel %vm4757_vm0, %v4758_v10, %v9677_v4  ;;  %v6018_v4 = vpop.f32.mrf.mxu0 }
 0x422   :  { %v6307_v31 = vpop.eup %6306  ;;  %v4878_v22 = vshrl.u32 %v4860_v5, %v4876_v39  ;;  %v4881_v49 = vadd.s32 127, %v4880_v50  ;;  %v4760_v28 = vadd.s32 %v4759_v42, %v4755_v32  ;;  %v1645_v7 = vadd.f32 %v1644_v34, %v10251_v56  ;;  %v10252_v5 = vld [vmem:[#allocation18_spill] sm:$0xff] }
 0x423   :  { %v6309_v44 = vpop.eup %6308  ;;  %v4592_v51 = vxor.u32 2147483648, %v6307_v31  ;;  %v5022_v13 = vadd.s32 1, %v5558_v20  ;;  %vm4591_vm1 = vcmp.eq.s32.totalorder %v4586_v46, 2  ;;  %v4897_v55 = vadd.s32 3, %v4893_v58 }
 0x424   :  { %v4589_v0 = vxor.u32 2147483648, %v6309_v44  ;;  %v4879_v24 = vor.u32 %v4878_v22, %v4877_v9  ;;  %v4882_v3 = vshll.u32 %v4881_v49, 23  ;;  %v4761_v27 = vadd.s32 536870912, %v4760_v28 }
 0x425   :  { %v4593_v52 = vsel %vm4591_vm1, %v4592_v51, %v6309_v44  ;;  %vm5023_vm2 = vcmp.gt.s32.totalorder %v5022_v13, 0  ;;  %v5019_v36 = vand.u32 8388607, %v5012_v26  ;;  %v9717_v30 = vadd.f32 %v1902_v37, %v1645_v7 }
 0x426   :  { %v4590_v60 = vsel %vm4588_vm15, %v6307_v31, %v4589_v0  ;;  %v4883_v38 = vor.u32 4788187, %v4882_v3  ;;  %v5024_v11 = vsel %vm5023_vm2, %v5022_v13, 0  ;;  %v9715_v25 = vshrl.u32 %v4761_v27, 30 }
 0x427   :  { %v4594_v18 = vsel %vm4587_vm11, %v4590_v60, %v4593_v52  ;;  %v5026_v8 = vand.u32 31, %v5024_v11  ;;  %v4886_v6 = vcvt.s32.f32 %v4879_v24  ;;  %v9722_v47 = vand.u32 3, %v4897_v55  ;;  %v6068_v52 = vpop.f32.mrf.mxu1 }
 0x428   :  { %v4595_v12 = vsel %vm4584_vm14, nan, %v4594_v18  ;;  %v4884_v59 = vand.u32 2147483647, %v4883_v38  ;;  %v4763_v14 = vshll.u32 %v9715_v25, 30  ;;  %v5020_v46 = vor.u32 8388608, %v5019_v36 }
 0x429   :  { %v5384_v62 = vadd.f32 %v5352_v57, %v4595_v12  ;;  %v5027_v63 = vsub.s32 32, %v5026_v8  ;;  %v1663_v39 = vadd.f32 %v6018_v4, %v10252_v5  ;;  %v4756_v50 = vadd.s32 %v9676_v19, %v9683_v40 }
 0x42a   :  { %v4887_v10 = vmul.f32 %v4886_v6, %v4884_v59  ;;  %v9727_v58 = vsub.s32 %v4760_v28, %v4763_v14  ;;  %v1956_v57 = vmul.f32 %v9642_v61, %v9717_v30  ;;  %v5029_v32 = vshll.u32 %v10175_v53, %v5026_v8 }
 0x42b   :  { %5416 = vst [vmem:[#allocation2 + $0xc0] sm:$0xff] %v5384_v62  ;;  %v5030_v15 = vshrl.u32 %v10176_v48, %v5027_v63  ;;  %v5033_v20 = vshrl.u32 %v10177_v17, %v5027_v63  ;;  %v5036_v31 = vshrl.u32 %v10178_v23, %v5027_v63  ;;  %v5025_v22 = vshrl.u32 %v5024_v11, 5 }
 0x42c   :  { %v4888_v34 = vxor.u32 2147483648, %v4887_v10  ;;  %v4766_v9 = vsub.s32 0, %v9727_v58  ;;  %v5032_v49 = vshll.u32 %v10176_v48, %v5026_v8  ;;  %v5035_v19 = vshll.u32 %v10177_v17, %v5026_v8 }
 0x42d   :  { %v5031_v42 = vor.u32 %v5030_v15, %v5029_v32  ;;  %v5038_v44 = vshll.u32 %v10178_v23, %v5026_v8  ;;  %v5039_v51 = vshrl.u32 %v10179_v41, %v5027_v63  ;;  %v5041_v24 = vshll.u32 %v10179_v41, %v5026_v8 }
 0x42e   :  { %v4889_v40 = vsel %vm4806_vm10, %v4888_v34, %v4887_v10  ;;  %v5547_v13 = vmin.u32 %v4766_v9, %v9727_v58  ;;  %v5034_v56 = vor.u32 %v5033_v20, %v5032_v49  ;;  %v5037_v7 = vor.u32 %v5036_v31, %v5035_v19 }
 0x42f   :  { %v4892_v28 = vsel %vm9692_vm12, %v9474_v43, %v4889_v40  ;;  %v5040_v0 = vor.u32 %v5039_v51, %v5038_v44  ;;  %v5042_v3 = vshrl.u32 %v10180_v16, %v5027_v63  ;;  %v5060_v27 = vshll.u32 %v5020_v46, 8  ;;  %v9776_v40 = vld [vmem:[%s10030_s1 + $0xa] ss:$0 sm:$0xff]  ;;  %s6377_s1 = smov [#allocation2]  }
 0x430   :  { %6310 = vcosq.f32 %v4892_v28  ;;  %v4768_v55 = vclz %v5547_v13  ;;  %v9748_v60 = vadd.f32 %v6068_v52, %v1663_v39  ;;  %v5028_v38 = vshrl.u32 %v10175_v53, %v5027_v63  ;;  %s5429_s25 = sshll.u32 %s6377_s1, 4  ;;  %s5430_s25 = int_to_ptr.vmem [resolvable:$true] %s5429_s25 }
 0x431   :  { %6312 = vsinq.f32 %v4892_v28  ;;  %v5043_v33 = vor.u32 %v5042_v3, %v5041_v24  ;;  %vm5044_vm3 = vcmp.lt.s32.totalorder %v5025_v22, 1  ;;  %v9752_v36 = vadd.f32 %v9664_v45, %v1956_v57  ;;  %s6349_s26 = scalar_lea.vmem %s5430_s25, 4096  ;;  %p6354_p1 = scmp.lt.s32.totalorder %s5430_s25, %s5430_s25 }
 0x432   :  { %v5548_v11 = vadd.s32 4294967294, %v4768_v55  ;;  %vm5046_vm4 = vcmp.lt.s32.totalorder %v5025_v22, 3  ;;  %vm5047_vm5 = vcmp.lt.s32.totalorder %v5025_v22, 4  ;;  %v5052_v37 = vsel %vm5044_vm3, %v5031_v42, %v5034_v56  ;;  %p6350_p0 = scmp.ne.s32.totalorder %s5430_s25, %s6349_s26  ;;  %p6355_p2 = scmp.lt.s32.totalorder %s6349_s26, %s6349_s26 }
 0x433   :  { %v5049_v18 = vsel %vm5047_vm5, %v5037_v7, 2102212464  ;;  %v5053_v8 = vsel %vm5047_vm5, %v5040_v0, 920167782  ;;  %v5056_v4 = vsel %vm5044_vm3, %v5034_v56, %v5037_v7  ;;  %v5057_v12 = vsel %vm5047_vm5, %v5043_v33, 1326507024 }
 0x434   :  { %vm5549_vm6 = vcmp.lt.s32.totalorder %v5548_v11, 0  ;;  %vm5045_vm7 = vcmp.lt.s32.totalorder %v5025_v22, 2  ;;  %v5054_v59 = vsel %vm5046_vm4, %v5037_v7, %v5053_v8  ;;  %v5058_v6 = vsel %vm5046_vm4, %v5040_v0, %v5057_v12  ;;  %p6356_p3 = por %p6355_p2, %p6354_p1 }
 0x435   :  { %v4771_v62 = vsel %vm5549_vm6, 0, %v5548_v11  ;;  %v4786_v14 = vsub.s32 4, %v9715_v25  ;;  %v5055_v63 = vsel %vm5045_vm7, %v5052_v37, %v5054_v59  ;;  %v5059_v10 = vsel %vm5045_vm7, %v5056_v4, %v5058_v6 }
 0x436   :  { %v4772_v46 = vsub.s32 32, %v4771_v62  ;;  %v4776_v5 = vsub.s32 4294967266, %v4771_v62  ;;  %v5048_v39 = vsel %vm5044_vm3, %v5028_v38, %v5031_v42  ;;  %v5050_v15 = vsel %vm5046_vm4, %v5034_v56, %v5049_v18  ;;  %p6357_p4 = pnand %p6356_p3, %p6350_p0 }
 0x437   :  { %v9763_v57 = vmul.u32.u64.low %v5060_v27, %v5059_v10  ;;  %v9764_v34 = vmul.u32.u64.high %v5060_v27, %v5059_v10, %v9763_v57  ;;  %v9766_v32 = vmul.u32.u64.low %v5060_v27, %v5055_v63  ;;  %v9767_v20 = vmul.u32.u64.high %v5060_v27, %v5055_v63, %v9766_v32 }
 0x438   :  { %v4773_v31 = vshll.u32 %v9727_v58, %v4771_v62  ;;  %v4774_v9 = vshrl.u32 %v4756_v50, %v4772_v46  ;;  %v4777_v49 = vadd.s32 127, %v4776_v5  ;;  %v4911_v19 = vand.u32 2139095040, %v9752_v36 }
 0x439   :  { %vm4896_vm8 = vweird.f32 %v9474_v43  ;;  %v5355_v42 = vmul.f32 %v9776_v40, %v9438_v2  ;;  %v5051_v44 = vsel %vm5045_vm7, %v5048_v39, %v5050_v15  ;;  %v1959_v51 = vmul.f32 %v9642_v61, %v9748_v60 }
 0x43a   :  { %vm4702_vm9 = vcmp.lt.s32.totalorder %v9517_v54, 0  ;;  %v4775_v50 = vor.u32 %v4774_v9, %v4773_v31  ;;  %v4778_v58 = vshll.u32 %v4777_v49, 23  ;;  %v4912_v28 = vshrl.u32 %v4911_v19, 23 }
 0x43b   :  { %vm4903_vm10 = vcmp.eq.s32.totalorder %v9722_v47, 2  ;;  %vm5069_vm11 = vc.u32 %v9764_v34, %v9766_v32  ;;  %v5070_v13 = vadd.s32 1, %v9767_v20  ;;  %v4908_v56 = vand.u32 2147483647, %v9752_v36 }
 0x43c   :  { %v4779_v22 = vor.u32 4788187, %v4778_v58  ;;  %v4787_v7 = vsel %vm4702_vm9, %v4786_v14, %v9715_v25  ;;  %v5067_v0 = vmul.u32 %v5060_v27, %v5051_v44  ;;  %v5554_v24 = vadd.s32 4294967169, %v4912_v28 }
 0x43d   :  { %v6311_v2 = vpop.eup %6310  ;;  %v4782_v55 = vcvt.s32.f32 %v4775_v50  ;;  %v5071_v38 = vsel %vm5069_vm11, %v5070_v13, %v9767_v20  ;;  %v9794_v33 = vadd.f32 %v9664_v45, %v1959_v51  ;;  %vm4899_vm12 = vcmp.lt.s32.totalorder %v9722_v47, 2 }
 0x43e   :  { %v6313_v3 = vpop.eup %6312  ;;  %v4904_v52 = vxor.u32 2147483648, %v6311_v2  ;;  %v4780_v37 = vand.u32 2147483647, %v4779_v22  ;;  %v5072_v18 = vadd.s32 %v5071_v38, %v5067_v0  ;;  %v4918_v8 = vadd.s32 1, %v5554_v24 }
 0x43f   :  { %v4901_v11 = vxor.u32 2147483648, %v6313_v3  ;;  %vm4900_vm13 = vcmp.eq.s32.totalorder %v9722_v47, 0  ;;  %vm9802_vm14 = vcmp.le.f32.partialorder %v4700_v29, 0.7853982  ;;  %v4915_v14 = vand.u32 8388607, %v4908_v56 }
 0x440   :  { %v4905_v25 = vsel %vm4903_vm10, %v4904_v52, %v6313_v3  ;;  %v4783_v12 = vmul.f32 %v4782_v55, %v4780_v37  ;;  %v5073_v59 = vadd.s32 536870912, %v5072_v18  ;;  %vm4919_vm15 = vcmp.gt.s32.totalorder %v4918_v8, 0 }
 0x441   :  { %v4902_v4 = vsel %vm4900_vm13, %v6311_v2, %v4901_v11  ;;  %v4789_v62 = vsel %vm9802_vm14, 0, %v4787_v7  ;;  %v4920_v63 = vsel %vm4919_vm15, %v4918_v8, 0  ;;  %v5223_v46 = vand.u32 2139095040, %v9794_v33 }
 0x442   :  { %v4906_v6 = vsel %vm4899_vm12, %v4902_v4, %v4905_v25  ;;  %v4784_v10 = vxor.u32 2147483648, %v4783_v12  ;;  %v9812_v29 = vshrl.u32 %v5073_v59, 30  ;;  %v4922_v39 = vand.u32 31, %v4920_v63 }
 0x443   :  { %v4907_v47 = vsel %vm4896_vm8, nan, %v4906_v6  ;;  %v4793_v31 = vadd.s32 3, %v4789_v62  ;;  %v4916_v43 = vor.u32 8388608, %v4915_v14  ;;  %v4921_v19 = vshrl.u32 %v4920_v63, 5 }
 0x444   :  { %v5387_v5 = vadd.f32 %v5355_v42, %v4907_v47  ;;  %v4785_v15 = vsel %vm4702_vm9, %v4784_v10, %v4783_v12  ;;  %v5075_v57 = vshll.u32 %v9812_v29, 30  ;;  %v4923_v9 = vsub.s32 32, %v4922_v39 }
 0x445   :  { %v4788_v20 = vsel %vm9802_vm14, %v9517_v54, %v4785_v15  ;;  %v5224_v44 = vshrl.u32 %v5223_v46, 23  ;;  %v4925_v42 = vshll.u32 %v10175_v53, %v4922_v39  ;;  %v4928_v50 = vshll.u32 %v10176_v48, %v4922_v39  ;;  %v1656_v46 = vpop.f32.mrf.mxu0 }
 0x446   :  { %5419 = vst [vmem:[#allocation2 + $0xd8] sm:$0xff] %v5387_v5  ;;  %6314 = vcosq.f32 %v4788_v20  ;;  %v9821_v49 = vsub.s32 %v5072_v18, %v5075_v57  ;;  %v4926_v51 = vshrl.u32 %v10176_v48, %v4923_v9  ;;  %v4929_v28 = vshrl.u32 %v10177_v17, %v4923_v9 }
 0x447   :  { %6316 = vsinq.f32 %v4788_v20  ;;  %v4931_v13 = vshll.u32 %v10177_v17, %v4922_v39  ;;  %v4932_v2 = vshrl.u32 %v10178_v23, %v4923_v9  ;;  %v9830_v22 = vand.u32 3, %v4793_v31 }
 0x448   :  { %v5078_v58 = vsub.s32 0, %v9821_v49  ;;  %v4927_v7 = vor.u32 %v4926_v51, %v4925_v42  ;;  %v4934_v0 = vshll.u32 %v10178_v23, %v4922_v39  ;;  %v4935_v24 = vshrl.u32 %v10179_v41, %v4923_v9  ;;  %v10255_v51 = vld [vmem:[#allocation19_spill] sm:$0xff] }
 0x449   :  { %v9836_v3 = vmul.f32 %v9776_v40, %v9470_v1  ;;  %v4930_v55 = vor.u32 %v4929_v28, %v4928_v50  ;;  %v4933_v38 = vor.u32 %v4932_v2, %v4931_v13  ;;  %v4937_v37 = vshll.u32 %v10179_v41, %v4922_v39 }
 0x44a   :  { %v5559_v52 = vmin.u32 %v5078_v58, %v9821_v49  ;;  %v4936_v11 = vor.u32 %v4935_v24, %v4934_v0  ;;  %v4938_v18 = vshrl.u32 %v10180_v16, %v4923_v9  ;;  %v9841_v8 = vshll.u32 %v4916_v43, 8 }
 0x44b   :  { %v4924_v27 = vshrl.u32 %v10175_v53, %v4923_v9  ;;  %vm4940_vm0 = vcmp.lt.s32.totalorder %v4921_v19, 1  ;;  %v5566_v4 = vadd.s32 4294967169, %v5224_v44  ;;  %vm4799_vm1 = vcmp.eq.s32.totalorder %v9830_v22, 2 }
 0x44c   :  { %v5080_v25 = vclz %v5559_v52  ;;  %v4939_v1 = vor.u32 %v4938_v18, %v4937_v37  ;;  %vm4942_vm2 = vcmp.lt.s32.totalorder %v4921_v19, 3  ;;  %vm4943_vm3 = vcmp.lt.s32.totalorder %v4921_v19, 4 }
 0x44d   :  { %v4948_v12 = vsel %vm4940_vm0, %v4927_v7, %v4930_v55  ;;  %vm4796_vm4 = vcmp.eq.s32.totalorder %v9830_v22, 0  ;;  %v4945_v6 = vsel %vm4943_vm3, %v4933_v38, 2102212464  ;;  %v4949_v62 = vsel %vm4943_vm3, %v4936_v11, 920167782 }
 0x44e   :  { %v5560_v59 = vadd.s32 4294967294, %v5080_v25  ;;  %v4952_v14 = vsel %vm4940_vm0, %v4930_v55, %v4933_v38  ;;  %vm4795_vm5 = vcmp.lt.s32.totalorder %v9830_v22, 2  ;;  %vm4941_vm6 = vcmp.lt.s32.totalorder %v4921_v19, 2 }
 0x44f   :  { %v4944_v63 = vsel %vm4940_vm0, %v4924_v27, %v4927_v7  ;;  %v4950_v47 = vsel %vm4942_vm2, %v4933_v38, %v4949_v62  ;;  %v4953_v10 = vsel %vm4943_vm3, %v4939_v1, 1326507024  ;;  %vm4792_vm7 = vweird.f32 %v9517_v54  ;;  %v1914_v62 = vpop.f32.mrf.mxu1 }
 0x450   :  { %vm5561_vm8 = vcmp.lt.s32.totalorder %v5560_v59, 0  ;;  %v4946_v5 = vsel %vm4942_vm2, %v4930_v55, %v4945_v6  ;;  %v4951_v39 = vsel %vm4941_vm6, %v4948_v12, %v4950_v47  ;;  %v4954_v15 = vsel %vm4942_vm2, %v4936_v11, %v4953_v10 }
 0x451   :  { %v5083_v57 = vsel %vm5561_vm8, 0, %v5560_v59  ;;  %v4955_v20 = vsel %vm4941_vm6, %v4952_v14, %v4954_v15  ;;  %v9854_v31 = vmul.u32.u64.low %v9841_v8, %v4951_v39  ;;  %v9855_v43 = vmul.u32.u64.high %v9841_v8, %v4951_v39, %v9854_v31 }
 0x452   :  { %vm5014_vm9 = vcmp.lt.s32.totalorder %v9667_v21, 0  ;;  %v5068_v9 = vadd.s32 %v9766_v32, %v9764_v34  ;;  %v5084_v44 = vsub.s32 32, %v5083_v57  ;;  %v5088_v42 = vsub.s32 4294967266, %v5083_v57 }
 0x453   :  { %v1657_v50 = vadd.f32 %v1656_v46, %v10255_v51  ;;  %v6315_v58 = vpop.eup %6314  ;;  %v4947_v28 = vsel %vm4941_vm6, %v4944_v63, %v4946_v5  ;;  %v9864_v13 = vmul.u32.u64.low %v9841_v8, %v4955_v20  ;;  %v9865_v2 = vmul.u32.u64.high %v9841_v8, %v4955_v20, %v9864_v13 }
 0x454   :  { %v5230_v7 = vadd.s32 1, %v5566_v4  ;;  %v6317_v0 = vpop.eup %6316  ;;  %v4800_v24 = vxor.u32 2147483648, %v6315_v58  ;;  %v5085_v52 = vshll.u32 %v9821_v49, %v5083_v57  ;;  %v5086_v55 = vshrl.u32 %v5068_v9, %v5084_v44 }
 0x455   :  { %v5089_v38 = vadd.s32 127, %v5088_v42  ;;  %v4797_v11 = vxor.u32 2147483648, %v6317_v0  ;;  %v4966_v34 = vadd.s32 1, %v9855_v43  ;;  %v5220_v32 = vand.u32 2147483647, %v9794_v33 }
 0x456   :  { %vm5231_vm10 = vcmp.gt.s32.totalorder %v5230_v7, 0  ;;  %v4801_v19 = vsel %vm4799_vm1, %v4800_v24, %v6317_v0  ;;  %v5087_v37 = vor.u32 %v5086_v55, %v5085_v52  ;;  %v5098_v4 = vsub.s32 4, %v9812_v29 }
 0x457   :  { %v5090_v18 = vshll.u32 %v5089_v38, 23  ;;  %v5232_v25 = vsel %vm5231_vm10, %v5230_v7, 0  ;;  %v4798_v27 = vsel %vm4796_vm4, %v6315_v58, %v4797_v11  ;;  %v4963_v49 = vmul.u32 %v9841_v8, %v4947_v28 }
 0x458   :  { %vm4965_vm11 = vc.u32 %v9865_v2, %v9854_v31  ;;  %v4802_v1 = vsel %vm4795_vm5, %v4798_v27, %v4801_v19  ;;  %vm9882_vm12 = vcmp.le.f32.partialorder %v5012_v26, 0.7853982  ;;  %v5234_v63 = vand.u32 31, %v5232_v25 }
 0x459   :  { %v5091_v59 = vor.u32 4788187, %v5090_v18  ;;  %v4967_v6 = vsel %vm4965_vm11, %v4966_v34, %v9855_v43  ;;  %v4803_v14 = vsel %vm4792_vm7, nan, %v4802_v1  ;;  %v9889_v47 = vadd.f32 %v1914_v62, %v1657_v50 }
 0x45a   :  { %v4968_v8 = vadd.s32 %v4967_v6, %v4963_v49  ;;  %v5386_v22 = vadd.f32 %v9836_v3, %v4803_v14  ;;  %v5094_v46 = vcvt.s32.f32 %v5087_v37  ;;  %v5227_v26 = vand.u32 8388607, %v5220_v32 }
 0x45b   :  { %v5092_v10 = vand.u32 2147483647, %v5091_v59  ;;  %v5099_v5 = vsel %vm5014_vm9, %v5098_v4, %v9812_v29  ;;  %v5233_v15 = vshrl.u32 %v5232_v25, 5  ;;  %v5235_v57 = vsub.s32 32, %v5234_v63 }
 0x45c   :  { %v4969_v39 = vadd.s32 536870912, %v4968_v8  ;;  %5418 = vst [vmem:[#allocation2 + $0xd0] sm:$0xff] %v5386_v22  ;;  %v5237_v20 = vshll.u32 %v10175_v53, %v5234_v63  ;;  %v5240_v43 = vshll.u32 %v10176_v48, %v5234_v63  ;;  %v5243_v3 = vshll.u32 %v10177_v17, %v5234_v63 }
 0x45d   :  { %v5095_v54 = vmul.f32 %v5094_v46, %v5092_v10  ;;  %v5238_v44 = vshrl.u32 %v10176_v48, %v5235_v57  ;;  %v5241_v42 = vshrl.u32 %v10177_v17, %v5235_v57  ;;  %v5246_v51 = vshll.u32 %v10178_v23, %v5234_v63 }
 0x45e   :  { %v9900_v9 = vshrl.u32 %v4969_v39, 30  ;;  %v5244_v50 = vshrl.u32 %v10178_v23, %v5235_v57  ;;  %v5247_v58 = vshrl.u32 %v10179_v41, %v5235_v57  ;;  %v5250_v28 = vshrl.u32 %v10180_v16, %v5235_v57 }
 0x45f   :  { %v5096_v29 = vxor.u32 2147483648, %v5095_v54  ;;  %v5101_v13 = vsel %vm9882_vm12, 0, %v5099_v5  ;;  %v5239_v0 = vor.u32 %v5238_v44, %v5237_v20  ;;  %v5249_v24 = vshll.u32 %v10179_v41, %v5234_v63 }
 0x460   :  { %v4971_v7 = vshll.u32 %v9900_v9, 30  ;;  %v5242_v55 = vor.u32 %v5241_v42, %v5240_v43  ;;  %v5245_v38 = vor.u32 %v5244_v50, %v5243_v3  ;;  %v5248_v11 = vor.u32 %v5247_v58, %v5246_v51 }
 0x461   :  { %v5097_v52 = vsel %vm5014_vm9, %v5096_v29, %v5095_v54  ;;  %v5228_v37 = vor.u32 8388608, %v5227_v26  ;;  %v5251_v18 = vor.u32 %v5250_v28, %v5249_v24  ;;  %vm5252_vm13 = vcmp.lt.s32.totalorder %v5233_v15, 1 }
 0x462   :  { %v5100_v34 = vsel %vm9882_vm12, %v9667_v21, %v5097_v52  ;;  %v4972_v19 = vsub.s32 %v4968_v8, %v4971_v7  ;;  %vm5253_vm14 = vcmp.lt.s32.totalorder %v5233_v15, 2  ;;  %v1958_v25 = vmul.f32 %v9642_v61, %v9889_v47 }
 0x463   :  { %6318 = vcosq.f32 %v5100_v34  ;;  %vm5254_vm15 = vcmp.lt.s32.totalorder %v5233_v15, 3  ;;  %vm5255_vm0 = vcmp.lt.s32.totalorder %v5233_v15, 4  ;;  %v5236_v4 = vshrl.u32 %v10175_v53, %v5235_v57 }
 0x464   :  { %6320 = vsinq.f32 %v5100_v34  ;;  %v4974_v27 = vsub.s32 0, %v4972_v19  ;;  %v5257_v49 = vsel %vm5255_vm0, %v5245_v38, 2102212464  ;;  %v5260_v1 = vsel %vm5252_vm13, %v5239_v0, %v5242_v55 }
 0x465   :  { %v5261_v12 = vsel %vm5255_vm0, %v5248_v11, 920167782  ;;  %v5264_v62 = vsel %vm5252_vm13, %v5242_v55, %v5245_v38  ;;  %v5265_v14 = vsel %vm5255_vm0, %v5251_v18, 1326507024  ;;  %v5268_v63 = vshll.u32 %v5228_v37, 8 }
 0x466   :  { %v5555_v59 = vmin.u32 %v4974_v27, %v4972_v19  ;;  %v5262_v6 = vsel %vm5254_vm15, %v5245_v38, %v5261_v12  ;;  %v5266_v61 = vsel %vm5254_vm15, %v5248_v11, %v5265_v14  ;;  %v9926_v22 = vadd.f32 %v9664_v45, %v1958_v25 }
 0x467   :  { %v5263_v8 = vsel %vm5253_vm14, %v5260_v1, %v5262_v6  ;;  %v5105_v10 = vadd.s32 3, %v5101_v13  ;;  %v5256_v26 = vsel %vm5252_vm13, %v5236_v4, %v5239_v0  ;;  %v5258_v5 = vsel %vm5254_vm15, %v5242_v55, %v5257_v49 }
 0x468   :  { %v4976_v46 = vclz %v5555_v59  ;;  %v5267_v39 = vsel %vm5253_vm14, %v5264_v62, %v5266_v61  ;;  %v9931_v57 = vmul.u32.u64.low %v5268_v63, %v5263_v8  ;;  %v9932_v54 = vmul.u32.u64.high %v5268_v63, %v5263_v8, %v9931_v57 }
 0x469   :  { %v9935_v43 = vmul.u32.u64.low %v5268_v63, %v5267_v39  ;;  %v9936_v3 = vmul.u32.u64.high %v5268_v63, %v5267_v39, %v9935_v43  ;;  %v5119_v44 = vand.u32 2139095040, %v9926_v22  ;;  %v5259_v45 = vsel %vm5253_vm14, %v5256_v26, %v5258_v5 }
 0x46a   :  { %v5556_v20 = vadd.s32 4294967294, %v4976_v46  ;;  %vm5104_vm2 = vweird.f32 %v9667_v21  ;;  %v5106_v42 = vand.u32 3, %v5105_v10  ;;  %v5278_v29 = vadd.s32 1, %v9932_v54 }
 0x46b   :  { %v5120_v50 = vshrl.u32 %v5119_v44, 23  ;;  %v5357_v58 = vmul.f32 %v9776_v40, %v9611_v35  ;;  %v4964_v28 = vadd.s32 %v9854_v31, %v9865_v2  ;;  %vm4910_vm3 = vcmp.lt.s32.totalorder %v9752_v36, 0 }
 0x46c   :  { %vm5557_vm1 = vcmp.lt.s32.totalorder %v5556_v20, 0  ;;  %v5275_v0 = vmul.u32 %v5268_v63, %v5259_v45  ;;  %vm5277_vm4 = vc.u32 %v9936_v3, %v9931_v57  ;;  %vm5111_vm5 = vcmp.eq.s32.totalorder %v5106_v42, 2 }
 0x46d   :  { %v4979_v51 = vsel %vm5557_vm1, 0, %v5556_v20  ;;  %v5562_v15 = vadd.s32 4294967169, %v5120_v50  ;;  %v5279_v11 = vsel %vm5277_vm4, %v5278_v29, %v9932_v54  ;;  %v4994_v27 = vsub.s32 4, %v9900_v9 }
 0x46e   :  { %v4980_v13 = vsub.s32 32, %v4979_v51  ;;  %v4984_v7 = vsub.s32 4294967266, %v4979_v51  ;;  %v4981_v52 = vshll.u32 %v4972_v19, %v4979_v51  ;;  %v5280_v37 = vadd.s32 %v5279_v11, %v5275_v0 }
 0x46f   :  { %v5126_v31 = vadd.s32 1, %v5562_v15  ;;  %vm5108_vm6 = vcmp.eq.s32.totalorder %v5106_v42, 0  ;;  %vm5107_vm8 = vcmp.lt.s32.totalorder %v5106_v42, 2  ;;  %v5116_v62 = vand.u32 2147483647, %v9926_v22 }
 0x470   :  { %v6319_v24 = vpop.eup %6318  ;;  %v4982_v55 = vshrl.u32 %v4964_v28, %v4980_v13  ;;  %v4985_v38 = vadd.s32 127, %v4984_v7  ;;  %v5281_v49 = vadd.s32 536870912, %v5280_v37  ;;  %v4995_v10 = vsel %vm4910_vm3, %v4994_v27, %v9900_v9 }
 0x471   :  { %v6321_v34 = vpop.eup %6320  ;;  %v5112_v35 = vxor.u32 2147483648, %v6319_v24  ;;  %vm5127_vm7 = vcmp.gt.s32.totalorder %v5126_v31, 0  ;;  %vm9962_vm9 = vcmp.le.f32.partialorder %v4908_v56, 0.7853982  ;;  %v5123_v43 = vand.u32 8388607, %v5116_v62 }
 0x472   :  { %v5109_v2 = vxor.u32 2147483648, %v6321_v34  ;;  %v4983_v18 = vor.u32 %v4982_v55, %v4981_v52  ;;  %v4986_v25 = vshll.u32 %v4985_v38, 23  ;;  %v5128_v12 = vsel %vm5127_vm7, %v5126_v31, 0 }
 0x473   :  { %v5113_v4 = vsel %vm5111_vm5, %v5112_v35, %v6321_v34  ;;  %v9951_v6 = vshrl.u32 %v5281_v49, 30  ;;  %v5130_v14 = vand.u32 31, %v5128_v12  ;;  %v4997_v21 = vsel %vm9962_vm9, 0, %v4995_v10 }
 0x474   :  { %v5110_v19 = vsel %vm5108_vm6, %v6319_v24, %v5109_v2  ;;  %v4987_v1 = vor.u32 4788187, %v4986_v25  ;;  %v4990_v63 = vcvt.s32.f32 %v4983_v18  ;;  %v5129_v29 = vshrl.u32 %v5128_v12, 5 }
 0x475   :  { %v5114_v59 = vsel %vm5107_vm8, %v5110_v19, %v5113_v4  ;;  %v5283_v26 = vshll.u32 %v9951_v6, 30  ;;  %v5131_v5 = vsub.s32 32, %v5130_v14  ;;  %v5133_v45 = vshll.u32 %v10175_v53, %v5130_v14 }
 0x476   :  { %v5115_v8 = vsel %vm5104_vm2, nan, %v5114_v59  ;;  %v4988_v61 = vand.u32 2147483647, %v4987_v1  ;;  %v5136_v50 = vshll.u32 %v10176_v48, %v5130_v14  ;;  %v5142_v7 = vshll.u32 %v10178_v23, %v5130_v14 }
 0x477   :  { %v5389_v46 = vadd.f32 %v5357_v58, %v5115_v8  ;;  %v5284_v20 = vsub.s32 %v5280_v37, %v5283_v26  ;;  %v5134_v9 = vshrl.u32 %v10176_v48, %v5131_v5  ;;  %v5137_v42 = vshrl.u32 %v10177_v17, %v5131_v5 }
 0x478   :  { %v4991_v54 = vmul.f32 %v4990_v63, %v4988_v61  ;;  %v5140_v56 = vshrl.u32 %v10178_v23, %v5131_v5  ;;  %v5139_v58 = vshll.u32 %v10177_v17, %v5130_v14  ;;  %v5143_v0 = vshrl.u32 %v10179_v41, %v5131_v5 }
 0x479   :  { %5421 = vst [vmem:[#allocation2 + $0xe8] sm:$0xff] %v5389_v46  ;;  %v5286_v51 = vsub.s32 0, %v5284_v20  ;;  %v5135_v13 = vor.u32 %v5134_v9, %v5133_v45  ;;  %v5138_v52 = vor.u32 %v5137_v42, %v5136_v50  ;;  %v5145_v48 = vshll.u32 %v10179_v41, %v5130_v14 }
 0x47a   :  { %v4992_v44 = vxor.u32 2147483648, %v4991_v54  ;;  %v5141_v55 = vor.u32 %v5140_v56, %v5139_v58  ;;  %v5144_v38 = vor.u32 %v5143_v0, %v5142_v7  ;;  %v5146_v17 = vshrl.u32 %v10180_v16, %v5131_v5 }
 0x47b   :  { %v5567_v24 = vmin.u32 %v5286_v51, %v5284_v20  ;;  %v5001_v11 = vadd.s32 3, %v4997_v21  ;;  %v5124_v35 = vor.u32 8388608, %v5123_v43  ;;  %v5276_v23 = vadd.s32 %v9931_v57, %v9936_v3 }
 0x47c   :  { %v4993_v28 = vsel %vm4910_vm3, %v4992_v44, %v4991_v54  ;;  %v5132_v37 = vshrl.u32 %v10175_v53, %v5131_v5  ;;  %v5147_v31 = vor.u32 %v5146_v17, %v5145_v48  ;;  %vm5148_vm10 = vcmp.lt.s32.totalorder %v5129_v29, 1 }
 0x47d   :  { %v4996_v15 = vsel %vm9962_vm9, %v9752_v36, %v4993_v28  ;;  %v5288_v34 = vclz %v5567_v24  ;;  %vm5150_vm11 = vcmp.lt.s32.totalorder %v5129_v29, 3  ;;  %vm5151_vm12 = vcmp.lt.s32.totalorder %v5129_v29, 4 }
 0x47e   :  { %6322 = vcosq.f32 %v4996_v15  ;;  %v5156_v18 = vsel %vm5148_vm10, %v5135_v13, %v5138_v52  ;;  %v5153_v25 = vsel %vm5151_vm12, %v5141_v55, 2102212464  ;;  %v5157_v41 = vsel %vm5151_vm12, %v5144_v38, 920167782 }
 0x47f   :  { %6324 = vsinq.f32 %v4996_v15  ;;  %v5568_v2 = vadd.s32 4294967294, %v5288_v34  ;;  %v5160_v16 = vsel %vm5148_vm10, %v5138_v52, %v5141_v55  ;;  %v5161_v27 = vsel %vm5151_vm12, %v5147_v31, 1326507024 }
 0x480   :  { %vm5149_vm14 = vcmp.lt.s32.totalorder %v5129_v29, 2  ;;  %v5158_v4 = vsel %vm5150_vm11, %v5141_v55, %v5157_v41  ;;  %v5162_v57 = vsel %vm5150_vm11, %v5144_v38, %v5161_v27  ;;  %v5164_v19 = vshll.u32 %v5124_v35, 8 }
 0x481   :  { %vm5569_vm13 = vcmp.lt.s32.totalorder %v5568_v2, 0  ;;  %v5159_v53 = vsel %vm5149_vm14, %v5156_v18, %v5158_v4  ;;  %v5163_v49 = vsel %vm5149_vm14, %v5160_v16, %v5162_v57  ;;  %v5152_v59 = vsel %vm5148_vm10, %v5132_v37, %v5135_v13 }
 0x482   :  { %v5291_v3 = vsel %vm5569_vm13, 0, %v5568_v2  ;;  %v5154_v14 = vsel %vm5150_vm11, %v5138_v52, %v5153_v25  ;;  %v9996_v8 = vmul.u32.u64.low %v5164_v19, %v5163_v49  ;;  %v9997_v61 = vmul.u32.u64.high %v5164_v19, %v5163_v49, %v9996_v8 }
 0x483   :  { %v5292_v1 = vsub.s32 32, %v5291_v3  ;;  %v5296_v12 = vsub.s32 4294967266, %v5291_v3  ;;  %v9999_v63 = vmul.u32.u64.low %v5164_v19, %v5159_v53  ;;  %v10000_v10 = vmul.u32.u64.high %v5164_v19, %v5159_v53, %v9999_v63 }
 0x484   :  { %v5293_v46 = vshll.u32 %v5284_v20, %v5291_v3  ;;  %v5002_v39 = vand.u32 3, %v5001_v11  ;;  %v5155_v54 = vsel %vm5149_vm14, %v5152_v59, %v5154_v14  ;;  %vm5000_vm3 = vweird.f32 %v9752_v36 }
 0x485   :  { %v5294_v26 = vshrl.u32 %v5276_v23, %v5292_v1  ;;  %v5297_v5 = vadd.s32 127, %v5296_v12  ;;  %vm5173_vm15 = vc.u32 %v9997_v61, %v9999_v63  ;;  %v5174_v9 = vadd.s32 1, %v10000_v10 }
 0x486   :  { %v5171_v42 = vmul.u32 %v5164_v19, %v5155_v54  ;;  %vm5007_vm0 = vcmp.eq.s32.totalorder %v5002_v39, 2  ;;  %vm5004_vm1 = vcmp.eq.s32.totalorder %v5002_v39, 0  ;;  %vm5003_vm2 = vcmp.lt.s32.totalorder %v5002_v39, 2 }
 0x487   :  { %v5295_v21 = vor.u32 %v5294_v26, %v5293_v46  ;;  %v5298_v43 = vshll.u32 %v5297_v5, 23  ;;  %v5175_v50 = vsel %vm5173_vm15, %v5174_v9, %v10000_v10  ;;  %v5356_v52 = vmul.f32 %v9776_v40, %v9717_v30 }
 0x488   :  { %v5176_v13 = vadd.s32 %v5175_v50, %v5171_v42  ;;  %vm5222_vm4 = vcmp.lt.s32.totalorder %v9794_v33, 0  ;;  %v5306_v11 = vsub.s32 4, %v9951_v6  ;;  %vm5221_vm5 = vcmp.le.f32.partialorder %v5220_v32, 0.7853982 }
 0x489   :  { %v5299_v45 = vor.u32 4788187, %v5298_v43  ;;  %v5302_v28 = vcvt.s32.f32 %v5295_v21  ;;  %v5172_v32 = vadd.s32 %v9999_v63, %v9997_v61  ;;  %vm5312_vm10 = vweird.f32 %v9794_v33 }
 0x48a   :  { %v5177_v15 = vadd.s32 536870912, %v5176_v13  ;;  %v5307_v30 = vsel %vm5222_vm4, %v5306_v11, %v9951_v6  ;;  %v5359_v61 = vmul.f32 %v9776_v40, %v9748_v60  ;;  %vm5118_vm11 = vcmp.lt.s32.totalorder %v9926_v22, 0 }
 0x48b   :  { %v6323_v44 = vpop.eup %6322  ;;  %v5300_v58 = vand.u32 2147483647, %v5299_v45  ;;  %v5309_v31 = vsel %vm5221_vm5, 0, %v5307_v30  ;;  %vm5117_vm12 = vcmp.le.f32.partialorder %v5116_v62, 0.7853982 }
 0x48c   :  { %v6325_v56 = vpop.eup %6324  ;;  %v5008_v51 = vxor.u32 2147483648, %v6323_v44  ;;  %v5178_v48 = vshrl.u32 %v5177_v15, 30  ;;  %v5313_v25 = vadd.s32 3, %v5309_v31 }
 0x48d   :  { %v5005_v20 = vxor.u32 2147483648, %v6325_v56  ;;  %v5303_v0 = vmul.f32 %v5302_v28, %v5300_v58 }
 0x48e   :  { %v5009_v29 = vsel %vm5007_vm0, %v5008_v51, %v6325_v56  ;;  %v5179_v35 = vshll.u32 %v5178_v48, 30  ;;  %v5314_v16 = vand.u32 3, %v5313_v25  ;;  %v5202_v9 = vsub.s32 4, %v5178_v48 }
 0x48f   :  { %v5006_v7 = vsel %vm5004_vm1, %v6323_v44, %v5005_v20  ;;  %v5304_v38 = vxor.u32 2147483648, %v5303_v0  ;;  %vm5208_vm0 = vweird.f32 %v9926_v22 }
 0x490   :  { %v5010_v24 = vsel %vm5003_vm2, %v5006_v7, %v5009_v29  ;;  %v5180_v23 = vsub.s32 %v5176_v13, %v5179_v35  ;;  %vm5319_vm7 = vcmp.eq.s32.totalorder %v5314_v16, 2  ;;  %vm5316_vm8 = vcmp.eq.s32.totalorder %v5314_v16, 0 }
 0x491   :  { %v5011_v55 = vsel %vm5000_vm3, nan, %v5010_v24  ;;  %v5305_v34 = vsel %vm5222_vm4, %v5304_v38, %v5303_v0  ;;  %vm5315_vm9 = vcmp.lt.s32.totalorder %v5314_v16, 2  ;;  %v5203_v45 = vsel %vm5118_vm11, %v5202_v9, %v5178_v48 }
 0x492   :  { %v5388_v17 = vadd.f32 %v5356_v52, %v5011_v55  ;;  %v5308_v36 = vsel %vm5221_vm5, %v9794_v33, %v5305_v34  ;;  %v5182_v37 = vsub.s32 0, %v5180_v23  ;;  %v5205_v60 = vsel %vm5117_vm12, 0, %v5203_v45 }
 0x493   :  { %6326 = vcosq.f32 %v5308_v36  ;;  %v5209_v42 = vadd.s32 3, %v5205_v60  ;;  %v5358_v29 = vmul.f32 %v9776_v40, %v9889_v47 }
 0x494   :  { %5420 = vst [vmem:[#allocation2 + $0xe0] sm:$0xff] %v5388_v17  ;;  %6328 = vsinq.f32 %v5308_v36  ;;  %v5563_v2 = vmin.u32 %v5182_v37, %v5180_v23 }
 0x495   :  { %v5210_v56 = vand.u32 3, %v5209_v42 }
 0x496   :  { %v5184_v18 = vclz %v5563_v2 }
 0x497   :  { %vm5215_vm13 = vcmp.eq.s32.totalorder %v5210_v56, 2  ;;  %vm5212_vm14 = vcmp.eq.s32.totalorder %v5210_v56, 0  ;;  %vm5211_vm15 = vcmp.lt.s32.totalorder %v5210_v56, 2 }
 0x498   :  { %v5564_v41 = vadd.s32 4294967294, %v5184_v18 }
 0x49a   :  { %vm5565_vm6 = vcmp.lt.s32.totalorder %v5564_v41, 0 }
 0x49b   :  { %v5187_v27 = vsel %vm5565_vm6, 0, %v5564_v41 }
 0x49c   :  { %v5188_v4 = vsub.s32 32, %v5187_v27  ;;  %v5192_v57 = vsub.s32 4294967266, %v5187_v27  ;;  %v5189_v19 = vshll.u32 %v5180_v23, %v5187_v27 }
 0x49e   :  { %v5190_v1 = vshrl.u32 %v5172_v32, %v5188_v4  ;;  %v5193_v6 = vadd.s32 127, %v5192_v57 }
 0x4a0   :  { %v6327_v3 = vpop.eup %6326  ;;  %v5191_v14 = vor.u32 %v5190_v1, %v5189_v19  ;;  %v5194_v8 = vshll.u32 %v5193_v6, 23 }
 0x4a1   :  { %v6329_v53 = vpop.eup %6328  ;;  %v5320_v49 = vxor.u32 2147483648, %v6327_v3 }
 0x4a2   :  { %v5317_v12 = vxor.u32 2147483648, %v6329_v53  ;;  %v5195_v63 = vor.u32 4788187, %v5194_v8  ;;  %v5198_v54 = vcvt.s32.f32 %v5191_v14 }
 0x4a3   :  { %v5321_v59 = vsel %vm5319_vm7, %v5320_v49, %v6329_v53 }
 0x4a4   :  { %v5318_v10 = vsel %vm5316_vm8, %v6327_v3, %v5317_v12  ;;  %v5196_v39 = vand.u32 2147483647, %v5195_v63 }
 0x4a5   :  { %v5322_v46 = vsel %vm5315_vm9, %v5318_v10, %v5321_v59 }
 0x4a6   :  { %v5323_v26 = vsel %vm5312_vm10, nan, %v5322_v46  ;;  %v5199_v21 = vmul.f32 %v5198_v54, %v5196_v39 }
 0x4a7   :  { %v5391_v5 = vadd.f32 %v5359_v61, %v5323_v26 }
 0x4a8   :  { %v5200_v43 = vxor.u32 2147483648, %v5199_v21 }
 0x4a9   :  { %5423 = vst [vmem:[#allocation2 + $0xf8] sm:$0xff] %v5391_v5 }
 0x4aa   :  { %v5201_v44 = vsel %vm5118_vm11, %v5200_v43, %v5199_v21 }
 0x4ab   :  { %v5204_v33 = vsel %vm5117_vm12, %v9926_v22, %v5201_v44 }
 0x4ac   :  { %6330 = vcosq.f32 %v5204_v33 }
 0x4ad   :  { %6332 = vsinq.f32 %v5204_v33 }
 0x4b9   :  { %v6331_v51 = vpop.eup %6330 }
 0x4ba   :  { %v6333_v50 = vpop.eup %6332  ;;  %v5216_v20 = vxor.u32 2147483648, %v6331_v51 }
 0x4bb   :  { %v5213_v58 = vxor.u32 2147483648, %v6333_v50 }
 0x4bc   :  { %v5217_v28 = vsel %vm5215_vm13, %v5216_v20, %v6333_v50 }
 0x4bd   :  { %v5214_v13 = vsel %vm5212_vm14, %v6331_v51, %v5213_v58 }
 0x4be   :  { %v5218_v62 = vsel %vm5211_vm15, %v5214_v13, %v5217_v28 }
 0x4bf   :  { %v5219_v7 = vsel %vm5208_vm0, nan, %v5218_v62 }
 0x4c0   :  { %v5390_v0 = vadd.f32 %v5358_v29, %v5219_v7 }
 0x4c2   :  { %5422 = vst [vmem:[#allocation2 + $0xf0] sm:$0xff] %v5390_v0 }
 0x4c3   :  { %6360 = shalt.err (!%p6357_p4)
}
 0x4c4   :  { %s6378_s27 = smov 128   ;;  %s6379_s28 = smov 8  }
 0x4c5   :  { %5435 = dma.vmem_to_hbm [thread:$0]  %s5430_s25, 4096, %s10031_s2, [#allocation3], %s6378_s27, %s6378_s27, %s6379_s28  }
 0x4c6   :  { %6369 = dma.done.wait [#allocation3], 4096  }
 0x4c7   :  { %6370 = vsyncadd [#allocation3], 4294963200 }
 0x4c8   :  { %5439 = vsyncpa [#allocation3], 1 }

</bundles_post_ra>
